<compile_context>
chip_gen: v5e
topology: v5e:2x2
jax: 0.10.0
libtpu: 0.0.40
codegen_flags: <defaults>
</compile_context>

<pallas_src>
import functools
import math

import jax
import jax.numpy as jnp
from jax.experimental import pallas as pl
from jax.experimental.pallas import tpu as pltpu

LN_EPS = 1e-5  # PyTorch nn.LayerNorm default


# ----------------------------------------------------------------------------
# Kernel 1: RoPE (half-split rotate) + fused QKV projection.
# Grid: (M // tm,). W_qkv uses a constant index_map -> fetched from HBM once.
# ----------------------------------------------------------------------------
def _rope_qkv_kernel(x_ref, cos_ref, sin_ref, wqkv_ref, bqkv_ref, out_ref):
    half = x_ref.shape[-1] // 2
    x1 = x_ref[:, :half].astype(jnp.float32)
    x2 = x_ref[:, half:].astype(jnp.float32)
    c = cos_ref[...].astype(jnp.float32)
    s = sin_ref[...].astype(jnp.float32)
    w_dtype = wqkv_ref.dtype
    # rotate-half RoPE: [x1*c - x2*s, x2*c + x1*s]; the "last token unrotated"
    # rule is folded into the tables (c=1, s=0) by the wrapper.
    xr1 = (x1 * c - x2 * s).astype(w_dtype)   # bf16 MXU inputs
    xr2 = (x2 * c + x1 * s).astype(w_dtype)
    acc = jnp.dot(xr1, wqkv_ref[:half, :], preferred_element_type=jnp.float32)
    acc = acc + jnp.dot(xr2, wqkv_ref[half:, :], preferred_element_type=jnp.float32)
    acc = acc + bqkv_ref[...].astype(jnp.float32)
    out_ref[...] = acc.astype(out_ref.dtype)


# ----------------------------------------------------------------------------
# Kernel 2: flash attention (online softmax), one (batch, head) per grid step.
# Grid: (B*H, q_tiles, kv_tiles); kv reduction axis last ("arbitrary").
# MXU inputs stay bf16; softmax statistics and accumulator are f32 scratch.
# ----------------------------------------------------------------------------
def _flash_attn_kernel(q_ref, k_ref, v_ref, o_ref, m_sc, l_sc, acc_sc, *, scale):
    ki = pl.program_id(2)

    @pl.when(ki == 0)
    def _init():
        m_sc[...] = jnp.full(m_sc.shape, -jnp.inf, m_sc.dtype)
        l_sc[...] = jnp.zeros(l_sc.shape, l_sc.dtype)
        acc_sc[...] = jnp.zeros(acc_sc.shape, acc_sc.dtype)

    q = q_ref[...]                                   # (tq, Dh) bf16
    k = k_ref[...]                                   # (tk, Dh) bf16
    s = jax.lax.dot_general(q, k, (((1,), (1,)), ((), ())),
                            preferred_element_type=jnp.float32)
    s = s * scale                                    # scale on the VPU, post-MXU

    m_prev = m_sc[...]
    m_new = jnp.maximum(m_prev, s.max(axis=-1, keepdims=True))
    alpha = jnp.exp(m_prev - m_new)
    p = jnp.exp(s - m_new)
    l_sc[...] = alpha * l_sc[...] + p.sum(axis=-1, keepdims=True)
    acc_sc[...] = alpha * acc_sc[...] + jax.lax.dot_general(
        p.astype(v_ref.dtype), v_ref[...], (((1,), (0,)), ((), ())),
        preferred_element_type=jnp.float32)
    m_sc[...] = m_new

    @pl.when(ki == pl.num_programs(2) - 1)
    def _finalize():
        # TODO(synk): pl.reciprocal(l, approx=True) moves this onto the EUP slot
        # in production; plain divide kept for maximum portability.
        o_ref[...] = (acc_sc[...] / l_sc[...]).astype(o_ref.dtype)


# ----------------------------------------------------------------------------
# Kernel 3: attention out-projection (consumed directly in head-major layout)
# + residual + LayerNorm1.  Grid: (B, S // ts).  W_o is resident as (H, Dh, D)
# and the head sum is an unrolled in-kernel loop -> no post-attention transpose.
# ----------------------------------------------------------------------------
def _attn_out_residual_ln_kernel(attn_ref, xin_ref, wo_ref, bo_ref,
                                 g_ref, b_ref, out_ref):
    n_heads = attn_ref.shape[0]
    acc = jnp.dot(attn_ref[0], wo_ref[0], preferred_element_type=jnp.float32)
    for h in range(1, n_heads):      # static unroll over heads
        acc = acc + jnp.dot(attn_ref[h], wo_ref[h],
                            preferred_element_type=jnp.float32)
    z = xin_ref[...].astype(jnp.float32) + acc + bo_ref[...].astype(jnp.float32)
    mu = jnp.mean(z, axis=-1, keepdims=True)
    var = jnp.mean(jnp.square(z - mu), axis=-1, keepdims=True)
    zn = (z - mu) * jax.lax.rsqrt(var + LN_EPS)
    out_ref[...] = (zn * g_ref[...].astype(jnp.float32)
                    + b_ref[...].astype(jnp.float32)).astype(out_ref.dtype)


# ----------------------------------------------------------------------------
# Kernel 4a: FFN with W1/W2 fully resident (v5e/v6e, 128 MiB VMEM) + residual
# + LayerNorm2.  Grid: (M // tm,).  No weight re-streaming across m tiles.
# ----------------------------------------------------------------------------
def _ffn_resident_ln_kernel(y_ref, w1_ref, b1_ref, w2_ref, b2_ref,
                            g_ref, beta_ref, out_ref):
    h = jnp.dot(y_ref[...], w1_ref[...], preferred_element_type=jnp.float32)
    h = h + b1_ref[...].astype(jnp.float32)
    h = jnp.maximum(h, 0.0)   # TODO(synk): activation_fn assumed ReLU.
    ff = jnp.dot(h.astype(w2_ref.dtype), w2_ref[...],
                 preferred_element_type=jnp.float32)
    z = y_ref[...].astype(jnp.float32) + ff + b2_ref[...].astype(jnp.float32)
    mu = jnp.mean(z, axis=-1, keepdims=True)
    var = jnp.mean(jnp.square(z - mu), axis=-1, keepdims=True)
    zn = (z - mu) * jax.lax.rsqrt(var + LN_EPS)
    out_ref[...] = (zn * g_ref[...].astype(jnp.float32)
                    + beta_ref[...].astype(jnp.float32)).astype(out_ref.dtype)


# ----------------------------------------------------------------------------
# Kernel 4b: FFN with hidden-dim (F) tiling (v7x, 64 MiB VMEM) + residual + LN2.
# Grid: (M // tm, F // tf); F is the reduction axis (last, "arbitrary") with an
# f32 VMEM accumulator and pl.when init/finalize.
# ----------------------------------------------------------------------------
def _ffn_tiled_ln_kernel(y_ref, w1_ref, b1_ref, w2_ref, b2_ref,
                         g_ref, beta_ref, out_ref, acc_ref):
    f = pl.program_id(1)

    @pl.when(f == 0)
    def _init():
        acc_ref[...] = jnp.zeros(acc_ref.shape, acc_ref.dtype)

    h = jnp.dot(y_ref[...], w1_ref[...], preferred_element_type=jnp.float32)
    h = h + b1_ref[...].astype(jnp.float32)
    h = jnp.maximum(h, 0.0)   # TODO(synk): activation_fn assumed ReLU.
    acc_ref[...] += jnp.dot(h.astype(w2_ref.dtype), w2_ref[...],
                            preferred_element_type=jnp.float32)

    @pl.when(f == pl.num_programs(1) - 1)
    def _finalize():
        z = (y_ref[...].astype(jnp.float32) + acc_ref[...]
             + b2_ref[...].astype(jnp.float32))
        mu = jnp.mean(z, axis=-1, keepdims=True)
        var = jnp.mean(jnp.square(z - mu), axis=-1, keepdims=True)
        zn = (z - mu) * jax.lax.rsqrt(var + LN_EPS)
        out_ref[...] = (zn * g_ref[...].astype(jnp.float32)
                        + beta_ref[...].astype(jnp.float32)).astype(out_ref.dtype)


# ----------------------------------------------------------------------------
# Helpers
# ----------------------------------------------------------------------------
def _pick_tile(n, pref, multiple=8):
    """Largest multiple of `multiple` that divides n and is <= pref; falls back
    to the full extent (always a legal block) otherwise."""
    if n <= pref:
        return n
    t = (pref // multiple) * multiple
    while t >= multiple:
        if n % t == 0:
            return t
        t -= multiple
    return n


def _cparams(semantics, est_bytes):
    # Raise the scoped-VMEM limit above the 16/32 MiB defaults so real-size
    # configs (resident weights + double-buffered tiles) compile; clamp below
    # physical VMEM.  v7x note: cap near ~56 MiB and shrink tiles accordingly.
    limit = int(min(100 * 2**20, max(32 * 2**20, 2 * int(est_bytes))))
    return pltpu.CompilerParams(dimension_semantics=semantics,
                                vmem_limit_bytes=limit)


# ----------------------------------------------------------------------------
# Wrapper: full TransformerEncoderLayer forward (eval mode, dropout = identity).
# ----------------------------------------------------------------------------
def transformer_encoder_layer(position, tokens, params, *, nhead,
                              tm=256, tq=256, tk=256, ts=256, tf=1024,
                              ffn_resident=None):
    B, S, D = tokens.shape
    H = nhead
    assert D % H == 0, "d_model must be divisible by nhead"
    Dh = D // H
    M = B * S
    F = params["w1"].shape[1]
    dtype = tokens.dtype
    half = D // 2
    it = jnp.dtype(dtype).itemsize

    tm = _pick_tile(M, tm, 8)
    tq = _pick_tile(S, tq, 8)
    tk = _pick_tile(S, tk, 8)
    ts = _pick_tile(S, ts, 8)
    tf = _pick_tile(F, tf, 128)

    # Wrapper-side half-width RoPE tables in the activation dtype (bf16):
    # half the width and half the bytes/element vs. full-width f32 tables.
    inv_freq = 1.0 / (10000.0 ** (jnp.arange(half, dtype=jnp.float32) / half))
    ang = position.astype(jnp.float32)[..., None] * inv_freq            # (B,S,half)
    is_last = (jnp.arange(S) == S - 1)[None, :, None]
    cos_h = jnp.where(is_last, 1.0, jnp.cos(ang)).reshape(M, half).astype(dtype)
    sin_h = jnp.where(is_last, 0.0, jnp.sin(ang)).reshape(M, half).astype(dtype)

    x_flat = tokens.reshape(M, D)

    # ---- (1) RoPE + fused QKV projection on (M, D) row tiles -----------------
    est1 = ((D * 3 * D + 3 * D) * it
            + 2 * (tm * D + 2 * tm * half + tm * 3 * D) * it)
    qkv = pl.pallas_call(
        _rope_qkv_kernel,
        out_shape=jax.ShapeDtypeStruct((M, 3 * D), dtype),
        grid_spec=pltpu.PrefetchScalarGridSpec(
            num_scalar_prefetch=0,
            grid=(M // tm,),
            in_specs=[
                pl.BlockSpec((tm, D), lambda m: (m, 0)),
                pl.BlockSpec((tm, half), lambda m: (m, 0)),
                pl.BlockSpec((tm, half), lambda m: (m, 0)),
                pl.BlockSpec((D, 3 * D), lambda m: (0, 0)),   # resident weight
                pl.BlockSpec((1, 3 * D), lambda m: (0, 0)),
            ],
            out_specs=pl.BlockSpec((tm, 3 * D), lambda m: (m, 0)),
        ),
        compiler_params=_cparams(("parallel",), est1),
    )(x_flat, cos_h, sin_h, params["w_qkv"], params["b_qkv"])

    # ---- (2) single fused head-major transpose, then flash attention ---------
    # (M, 3D) -> (3, B*H, S, Dh): the only layout copy in the whole layer; it
    # replaces the previous jnp.split + per-tensor transposes (and the output
    # side needs none at all).
    qkv_hm = (qkv.reshape(B, S, 3, H, Dh)
                 .transpose(2, 0, 3, 1, 4)
                 .reshape(3, B * H, S, Dh))
    scale = 1.0 / math.sqrt(Dh)

    est2 = (2 * (tq * Dh + 2 * tk * Dh + tq * Dh) * it
            + (tq * Dh + 2 * tq) * 4)
    attn = pl.pallas_call(
        functools.partial(_flash_attn_kernel, scale=scale),
        out_shape=jax.ShapeDtypeStruct((B * H, S, Dh), dtype),
        grid_spec=pltpu.PrefetchScalarGridSpec(
            num_scalar_prefetch=0,
            grid=(B * H, S // tq, S // tk),
            in_specs=[
                pl.BlockSpec((None, None, tq, Dh), lambda bh, qi, ki: (0, bh, qi, 0)),
                pl.BlockSpec((None, None, tk, Dh), lambda bh, qi, ki: (1, bh, ki, 0)),
                pl.BlockSpec((None, None, tk, Dh), lambda bh, qi, ki: (2, bh, ki, 0)),
            ],
            out_specs=pl.BlockSpec((None, tq, Dh), lambda bh, qi, ki: (bh, qi, 0)),
            scratch_shapes=[
                pltpu.VMEM((tq, 1), jnp.float32),    # running max m
                pltpu.VMEM((tq, 1), jnp.float32),    # running sum l
                pltpu.VMEM((tq, Dh), jnp.float32),   # output accumulator
            ],
        ),
        compiler_params=_cparams(("parallel", "parallel", "arbitrary"), est2),
    )(qkv_hm, qkv_hm, qkv_hm)

    # ---- (3) out-projection (head-major input) + residual + LayerNorm1 -------
    attn_bh = attn.reshape(B, H, S, Dh)          # free reshape
    wo_h = params["w_o"].reshape(H, Dh, D)       # free reshape, resident in VMEM
    est3 = ((H * Dh * D + 4 * D) * it
            + 2 * (H * ts * Dh + 2 * ts * D) * it)
    y = pl.pallas_call(
        _attn_out_residual_ln_kernel,
        out_shape=jax.ShapeDtypeStruct((B, S, D), dtype),
        grid_spec=pltpu.PrefetchScalarGridSpec(
            num_scalar_prefetch=0,
            grid=(B, S // ts),
            in_specs=[
                pl.BlockSpec((None, H, ts, Dh), lambda b, st: (b, 0, st, 0)),
                pl.BlockSpec((None, ts, D), lambda b, st: (b, st, 0)),
                pl.BlockSpec((H, Dh, D), lambda b, st: (0, 0, 0)),
                pl.BlockSpec((1, D), lambda b, st: (0, 0)),
                pl.BlockSpec((1, D), lambda b, st: (0, 0)),
                pl.BlockSpec((1, D), lambda b, st: (0, 0)),
            ],
            out_specs=pl.BlockSpec((None, ts, D), lambda b, st: (b, st, 0)),
        ),
        compiler_params=_cparams(("parallel", "parallel"), est3),
    )(attn_bh, tokens, wo_h, params["b_o"], params["g1"], params["be1"])

    y_flat = y.reshape(M, D)

    # ---- (4) FFN + residual + LayerNorm2 --------------------------------------
    w_bytes = (params["w1"].size + params["w2"].size) * it
    if ffn_resident is None:
        # v5e/v6e (128 MiB VMEM): keep W1/W2 resident (no weight re-streaming).
        # v7x (64 MiB): prefer the F-tiled path (pass ffn_resident=False) with a
        # larger tf once the resident footprint exceeds the budget.
        ffn_resident = w_bytes <= 24 * 2**20

    if ffn_resident:
        est4 = (w_bytes + (F + 3 * D) * it + 2 * (2 * tm * D) * it + tm * F * 4)
        out = pl.pallas_call(
            _ffn_resident_ln_kernel,
            out_shape=jax.ShapeDtypeStruct((M, D), dtype),
            grid_spec=pltpu.PrefetchScalarGridSpec(
                num_scalar_prefetch=0,
                grid=(M // tm,),
                in_specs=[
                    pl.BlockSpec((tm, D), lambda m: (m, 0)),
                    pl.BlockSpec((D, F), lambda m: (0, 0)),   # resident W1
                    pl.BlockSpec((1, F), lambda m: (0, 0)),
                    pl.BlockSpec((F, D), lambda m: (0, 0)),   # resident W2
                    pl.BlockSpec((1, D), lambda m: (0, 0)),
                    pl.BlockSpec((1, D), lambda m: (0, 0)),
                    pl.BlockSpec((1, D), lambda m: (0, 0)),
                ],
                out_specs=pl.BlockSpec((tm, D), lambda m: (m, 0)),
            ),
            compiler_params=_cparams(("parallel",), est4),
        )(y_flat, params["w1"], params["b1"], params["w2"], params["b2"],
          params["g2"], params["be2"])
    else:
        est4 = (2 * (D * tf + tf * D + tf) * it + 3 * D * it
                + 2 * (2 * tm * D) * it + tm * D * 4 + tm * tf * 4)
        out = pl.pallas_call(
            _ffn_tiled_ln_kernel,
            out_shape=jax.ShapeDtypeStruct((M, D), dtype),
            grid_spec=pltpu.PrefetchScalarGridSpec(
                num_scalar_prefetch=0,
                grid=(M // tm, F // tf),
                in_specs=[
                    pl.BlockSpec((tm, D), lambda m, f: (m, 0)),
                    pl.BlockSpec((D, tf), lambda m, f: (0, f)),
                    pl.BlockSpec((1, tf), lambda m, f: (0, f)),
                    pl.BlockSpec((tf, D), lambda m, f: (f, 0)),
                    pl.BlockSpec((1, D), lambda m, f: (0, 0)),
                    pl.BlockSpec((1, D), lambda m, f: (0, 0)),
                    pl.BlockSpec((1, D), lambda m, f: (0, 0)),
                ],
                out_specs=pl.BlockSpec((tm, D), lambda m, f: (m, 0)),
                scratch_shapes=[pltpu.VMEM((tm, D), jnp.float32)],
            ),
            compiler_params=_cparams(("parallel", "arbitrary"), est4),
        )(y_flat, params["w1"], params["b1"], params["w2"], params["b2"],
          params["g2"], params["be2"])

    return out.reshape(B, S, D)


# ----------------------------------------------------------------------------
# Pure-JAX f32 reference (dense softmax, explicit slice+concat RoPE) for parity.
# ----------------------------------------------------------------------------
def reference_forward(position, tokens, params, *, nhead):
    B, S, D = tokens.shape
    H = nhead
    Dh = D // H
    half = D // 2
    x = tokens.astype(jnp.float32)
    p = {k: v.astype(jnp.float32) for k, v in params.items()}

    inv_freq = 1.0 / (10000.0 ** (jnp.arange(half, dtype=jnp.float32) / half))
    ang = position.astype(jnp.float32)[..., None] * inv_freq
    cos, sin = jnp.cos(ang), jnp.sin(ang)
    x1, x2 = x[..., :half], x[..., half:]
    x_rope = jnp.concatenate([x1 * cos - x2 * sin, x2 * cos + x1 * sin], axis=-1)
    xp = jnp.concatenate([x_rope[:, :-1, :], x[:, -1:, :]], axis=1)

    qkv = xp @ p["w_qkv"] + p["b_qkv"]
    q, k, v = jnp.split(qkv, 3, axis=-1)

    def heads(t):
        return t.reshape(B, S, H, Dh).transpose(0, 2, 1, 3)

    qh, kh, vh = heads(q), heads(k), heads(v)
    scores = jnp.einsum("bhqd,bhkd->bhqk", qh, kh) / jnp.sqrt(jnp.float32(Dh))
    attnp = jax.nn.softmax(scores, axis=-1)
    ctx = jnp.einsum("bhqk,bhkd->bhqd", attnp, vh)
    ctx = ctx.transpose(0, 2, 1, 3).reshape(B, S, D)
    o = ctx @ p["w_o"] + p["b_o"]

    def layer_norm(z, g, b):
        mu = jnp.mean(z, axis=-1, keepdims=True)
        var = jnp.mean(jnp.square(z - mu), axis=-1, keepdims=True)
        return (z - mu) * jax.lax.rsqrt(var + LN_EPS) * g + b

    y = layer_norm(x + o, p["g1"], p["be1"])
    h = jnp.maximum(y @ p["w1"] + p["b1"], 0.0)
    ff = h @ p["w2"] + p["b2"]
    return layer_norm(y + ff, p["g2"], p["be2"])


if __name__ == "__main__":
    B, S = 2, 32
    D, H, F = 256, 2, 512      # d_model, nhead, dim_feedforward; Dh = 128 (lane-dense)
    dtype = jnp.bfloat16       # bf16 weights/activations end-to-end, f32 accumulation

    key = jax.random.PRNGKey(0)
    ks = jax.random.split(key, 10)
    sd = 0.05

    def rnd(k, shape):
        return (jax.random.normal(k, shape, jnp.float32) * sd).astype(dtype)

    params = {
        "w_qkv": rnd(ks[0], (D, 3 * D)),
        "b_qkv": rnd(ks[1], (1, 3 * D)),
        "w_o":   rnd(ks[2], (D, D)),
        "b_o":   rnd(ks[3], (1, D)),
        "w1":    rnd(ks[4], (D, F)),
        "b1":    rnd(ks[5], (1, F)),
        "w2":    rnd(ks[6], (F, D)),
        "b2":    rnd(ks[7], (1, D)),
        "g1":    jnp.ones((1, D), dtype),
        "be1":   jnp.zeros((1, D), dtype),
        "g2":    jnp.ones((1, D), dtype),
        "be2":   jnp.zeros((1, D), dtype),
    }
    tokens = jax.random.normal(ks[8], (B, S, D), jnp.float32).astype(dtype)
    position = jax.random.uniform(ks[9], (B, S), jnp.float32, 0.0, 10.0)

    # Small tiles here purely to exercise the multi-step pipelined grid paths at
    # toy shapes; production defaults are tm=256, tq=tk=256, tf=1024.
    fwd = jax.jit(functools.partial(
        transformer_encoder_layer, nhead=H, tm=32, tq=16, tk=16, ts=32, tf=512))
    out = jax.block_until_ready(fwd(position, tokens, params))

    # Also exercise the F-tiled FFN path (v7x-style, 64 MiB VMEM budget).
    fwd_tiled = jax.jit(functools.partial(
        transformer_encoder_layer, nhead=H, tm=32, tq=16, tk=16, ts=32, tf=256,
        ffn_resident=False))
    out_tiled = jax.block_until_ready(fwd_tiled(position, tokens, params))

    ref = reference_forward(position, tokens, params, nhead=H)
    err = float(jnp.max(jnp.abs(out.astype(jnp.float32) - ref)))
    err_t = float(jnp.max(jnp.abs(out_tiled.astype(jnp.float32) - ref)))

    assert out.shape == (B, S, D) and out_tiled.shape == (B, S, D)
    assert bool(jnp.all(jnp.isfinite(out.astype(jnp.float32))))
    # bf16 end-to-end (inputs, weights, inter-kernel activations, bf16 MXU paths)
    # vs. an f32 reference: quantization noise is O(1e-2) on the O(1) LayerNorm
    # outputs; 1e-1 is a conservative bound that still catches real bugs (O(1)).
    assert err < 1e-1, f"max abs error vs reference (resident FFN): {err}"
    assert err_t < 1e-1, f"max abs error vs reference (tiled FFN): {err_t}"
    print("KERNEL_OK")
</pallas_src>

<mosaic_0001>
module attributes {stable_mosaic.version = 11 : i64} {
  func.func @_rope_qkv_kernel(%arg0: i32, %arg1: memref<32x256xbf16, #tpu.memory_space<vmem>>, %arg2: memref<32x128xbf16, #tpu.memory_space<vmem>>, %arg3: memref<32x128xbf16, #tpu.memory_space<vmem>>, %arg4: memref<256x768xbf16, #tpu.memory_space<vmem>>, %arg5: memref<1x768xbf16, #tpu.memory_space<vmem>>, %arg6: memref<32x768xbf16, #tpu.memory_space<vmem>>) attributes {dimension_semantics = [#tpu.dimension_semantics<parallel>], iteration_bounds = array<i64: 2>, scalar_prefetch = 0 : i64, scratch_operands = 0 : i64, tpu.core_type = #tpu.core_type<tc>, window_params = [{transform_indices = @transform_0, window_bounds = array<i64: 32, 256>}, {transform_indices = @transform_1, window_bounds = array<i64: 32, 128>}, {transform_indices = @transform_2, window_bounds = array<i64: 32, 128>}, {pipeline_mode = #tpu.pipeline_mode<synchronous>, transform_indices = @transform_3, window_bounds = array<i64: 256, 768>}, {pipeline_mode = #tpu.pipeline_mode<synchronous>, transform_indices = @transform_4, window_bounds = array<i64: 1, 768>}, {transform_indices = @transform_5, window_bounds = array<i64: 32, 768>}]} {
    %c0 = arith.constant 0 : index
    %c0_0 = arith.constant 0 : index
    %0 = vector.load %arg1[%c0, %c0_0] : memref<32x256xbf16, #tpu.memory_space<vmem>>, vector<32x128xbf16>
    %1 = arith.extf %0 : vector<32x128xbf16> to vector<32x128xf32>
    %c0_1 = arith.constant 0 : index
    %c128 = arith.constant 128 : index
    %2 = vector.load %arg1[%c0_1, %c128] : memref<32x256xbf16, #tpu.memory_space<vmem>>, vector<32x128xbf16>
    %3 = arith.extf %2 : vector<32x128xbf16> to vector<32x128xf32>
    %c0_2 = arith.constant 0 : index
    %c0_3 = arith.constant 0 : index
    %4 = vector.load %arg2[%c0_2, %c0_3] : memref<32x128xbf16, #tpu.memory_space<vmem>>, vector<32x128xbf16>
    %5 = arith.extf %4 : vector<32x128xbf16> to vector<32x128xf32>
    %c0_4 = arith.constant 0 : index
    %c0_5 = arith.constant 0 : index
    %6 = vector.load %arg3[%c0_4, %c0_5] : memref<32x128xbf16, #tpu.memory_space<vmem>>, vector<32x128xbf16>
    %7 = arith.extf %6 : vector<32x128xbf16> to vector<32x128xf32>
    %8 = arith.mulf %1, %5 : vector<32x128xf32>
    %9 = arith.mulf %3, %7 : vector<32x128xf32>
    %10 = arith.subf %8, %9 : vector<32x128xf32>
    %11 = arith.truncf %10 : vector<32x128xf32> to vector<32x128xbf16>
    %12 = arith.mulf %3, %5 : vector<32x128xf32>
    %13 = arith.mulf %1, %7 : vector<32x128xf32>
    %14 = arith.addf %12, %13 : vector<32x128xf32>
    %15 = arith.truncf %14 : vector<32x128xf32> to vector<32x128xbf16>
    %c0_6 = arith.constant 0 : index
    %c0_7 = arith.constant 0 : index
    %16 = vector.load %arg4[%c0_6, %c0_7] : memref<256x768xbf16, #tpu.memory_space<vmem>>, vector<128x768xbf16>
    %cst = arith.constant dense<0.000000e+00> : vector<32x768xf32>
    %17 = tpu.matmul %11, %16, %cst {dimension_numbers = #tpu.dot_dimension_numbers<[1], [0], [0], [1], [0, 0, 1, 1], [], []>} : vector<32x128xbf16>, vector<128x768xbf16>, vector<32x768xf32> -> vector<32x768xf32>
    %c128_8 = arith.constant 128 : index
    %c0_9 = arith.constant 0 : index
    %18 = vector.load %arg4[%c128_8, %c0_9] : memref<256x768xbf16, #tpu.memory_space<vmem>>, vector<128x768xbf16>
    %cst_10 = arith.constant dense<0.000000e+00> : vector<32x768xf32>
    %19 = tpu.matmul %15, %18, %cst_10 {dimension_numbers = #tpu.dot_dimension_numbers<[1], [0], [0], [1], [0, 0, 1, 1], [], []>} : vector<32x128xbf16>, vector<128x768xbf16>, vector<32x768xf32> -> vector<32x768xf32>
    %20 = arith.addf %17, %19 : vector<32x768xf32>
    %c0_11 = arith.constant 0 : index
    %c0_12 = arith.constant 0 : index
    %21 = vector.load %arg5[%c0_11, %c0_12] : memref<1x768xbf16, #tpu.memory_space<vmem>>, vector<1x768xbf16>
    %22 = arith.extf %21 : vector<1x768xbf16> to vector<1x768xf32>
    %23 = vector.broadcast %22 : vector<1x768xf32> to vector<32x768xf32>
    %24 = arith.addf %20, %23 : vector<32x768xf32>
    %25 = arith.truncf %24 : vector<32x768xf32> to vector<32x768xbf16>
    %c0_13 = arith.constant 0 : index
    %c0_14 = arith.constant 0 : index
    %26 = vector.load %arg6[%c0_13, %c0_14] : memref<32x768xbf16, #tpu.memory_space<vmem>>, vector<32x768xbf16>
    tpu.vector_store %arg6[%c0_13, %c0_14], %25 {strides = array<i32>} : memref<32x768xbf16, #tpu.memory_space<vmem>>, vector<32x768xbf16>,
    return
  }
  func.func @transform_0(%arg0: i32) -> (i32, i32) {
    %c0_i32 = arith.constant 0 : i32
    %c0_i32_0 = arith.constant 0 : i32
    return %arg0, %c0_i32 : i32, i32
  }
  func.func @transform_1(%arg0: i32) -> (i32, i32) {
    %c0_i32 = arith.constant 0 : i32
    %c0_i32_0 = arith.constant 0 : i32
    return %arg0, %c0_i32 : i32, i32
  }
  func.func @transform_2(%arg0: i32) -> (i32, i32) {
    %c0_i32 = arith.constant 0 : i32
    %c0_i32_0 = arith.constant 0 : i32
    return %arg0, %c0_i32 : i32, i32
  }
  func.func @transform_3(%arg0: i32) -> (i32, i32) {
    %c0_i32 = arith.constant 0 : i32
    %c0_i32_0 = arith.constant 0 : i32
    %c0_i32_1 = arith.constant 0 : i32
    return %c0_i32, %c0_i32_0 : i32, i32
  }
  func.func @transform_4(%arg0: i32) -> (i32, i32) {
    %c0_i32 = arith.constant 0 : i32
    %c0_i32_0 = arith.constant 0 : i32
    %c0_i32_1 = arith.constant 0 : i32
    return %c0_i32, %c0_i32_0 : i32, i32
  }
  func.func @transform_5(%arg0: i32) -> (i32, i32) {
    %c0_i32 = arith.constant 0 : i32
    %c0_i32_0 = arith.constant 0 : i32
    return %arg0, %c0_i32 : i32, i32
  }
}

module attributes {stable_mosaic.version = 11 : i64} {
  func.func @_attn_out_residual_ln_kernel(%arg0: i32, %arg1: i32, %arg2: memref<1x2x32x128xbf16, #tpu.memory_space<vmem>>, %arg3: memref<1x32x256xbf16, #tpu.memory_space<vmem>>, %arg4: memref<2x128x256xbf16, #tpu.memory_space<vmem>>, %arg5: memref<1x256xbf16, #tpu.memory_space<vmem>>, %arg6: memref<1x256xbf16, #tpu.memory_space<vmem>>, %arg7: memref<1x256xbf16, #tpu.memory_space<vmem>>, %arg8: memref<1x32x256xbf16, #tpu.memory_space<vmem>>) attributes {dimension_semantics = [#tpu.dimension_semantics<parallel>, #tpu.dimension_semantics<parallel>], iteration_bounds = array<i64: 2, 1>, scalar_prefetch = 0 : i64, scratch_operands = 0 : i64, tpu.core_type = #tpu.core_type<tc>, window_params = [{transform_indices = @transform_0, window_bounds = array<i64: 1, 2, 32, 128>}, {transform_indices = @transform_1, window_bounds = array<i64: 1, 32, 256>}, {pipeline_mode = #tpu.pipeline_mode<synchronous>, transform_indices = @transform_2, window_bounds = array<i64: 2, 128, 256>}, {pipeline_mode = #tpu.pipeline_mode<synchronous>, transform_indices = @transform_3, window_bounds = array<i64: 1, 256>}, {pipeline_mode = #tpu.pipeline_mode<synchronous>, transform_indices = @transform_4, window_bounds = array<i64: 1, 256>}, {pipeline_mode = #tpu.pipeline_mode<synchronous>, transform_indices = @transform_5, window_bounds = array<i64: 1, 256>}, {transform_indices = @transform_6, window_bounds = array<i64: 1, 32, 256>}]} {
    %c0 = arith.constant 0 : index
    %c0_0 = arith.constant 0 : index
    %c0_1 = arith.constant 0 : index
    %c0_2 = arith.constant 0 : index
    %0 = vector.load %arg2[%c0, %c0_0, %c0_1, %c0_2] : memref<1x2x32x128xbf16, #tpu.memory_space<vmem>>, vector<1x1x32x128xbf16>
    %1 = vector.shape_cast %0 : vector<1x1x32x128xbf16> to vector<32x128xbf16>
    %c0_3 = arith.constant 0 : index
    %c0_4 = arith.constant 0 : index
    %c0_5 = arith.constant 0 : index
    %2 = vector.load %arg4[%c0_3, %c0_4, %c0_5] : memref<2x128x256xbf16, #tpu.memory_space<vmem>>, vector<1x128x256xbf16>
    %3 = vector.shape_cast %2 : vector<1x128x256xbf16> to vector<128x256xbf16>
    %cst = arith.constant dense<0.000000e+00> : vector<32x256xf32>
    %4 = tpu.matmul %1, %3, %cst {dimension_numbers = #tpu.dot_dimension_numbers<[1], [0], [0], [1], [0, 0, 1, 1], [], []>} : vector<32x128xbf16>, vector<128x256xbf16>, vector<32x256xf32> -> vector<32x256xf32>
    %c0_6 = arith.constant 0 : index
    %c1 = arith.constant 1 : index
    %c0_7 = arith.constant 0 : index
    %c0_8 = arith.constant 0 : index
    %5 = vector.load %arg2[%c0_6, %c1, %c0_7, %c0_8] : memref<1x2x32x128xbf16, #tpu.memory_space<vmem>>, vector<1x1x32x128xbf16>
    %6 = vector.shape_cast %5 : vector<1x1x32x128xbf16> to vector<32x128xbf16>
    %c1_9 = arith.constant 1 : index
    %c0_10 = arith.constant 0 : index
    %c0_11 = arith.constant 0 : index
    %7 = vector.load %arg4[%c1_9, %c0_10, %c0_11] : memref<2x128x256xbf16, #tpu.memory_space<vmem>>, vector<1x128x256xbf16>
    %8 = vector.shape_cast %7 : vector<1x128x256xbf16> to vector<128x256xbf16>
    %cst_12 = arith.constant dense<0.000000e+00> : vector<32x256xf32>
    %9 = tpu.matmul %6, %8, %cst_12 {dimension_numbers = #tpu.dot_dimension_numbers<[1], [0], [0], [1], [0, 0, 1, 1], [], []>} : vector<32x128xbf16>, vector<128x256xbf16>, vector<32x256xf32> -> vector<32x256xf32>
    %10 = arith.addf %4, %9 : vector<32x256xf32>
    %c0_13 = arith.constant 0 : index
    %c0_14 = arith.constant 0 : index
    %c0_15 = arith.constant 0 : index
    %11 = vector.load %arg3[%c0_13, %c0_14, %c0_15] : memref<1x32x256xbf16, #tpu.memory_space<vmem>>, vector<1x32x256xbf16>
    %12 = vector.shape_cast %11 : vector<1x32x256xbf16> to vector<32x256xbf16>
    %13 = arith.extf %12 : vector<32x256xbf16> to vector<32x256xf32>
    %14 = arith.addf %13, %10 : vector<32x256xf32>
    %c0_16 = arith.constant 0 : index
    %c0_17 = arith.constant 0 : index
    %15 = vector.load %arg5[%c0_16, %c0_17] : memref<1x256xbf16, #tpu.memory_space<vmem>>, vector<1x256xbf16>
    %16 = arith.extf %15 : vector<1x256xbf16> to vector<1x256xf32>
    %17 = vector.broadcast %16 : vector<1x256xf32> to vector<32x256xf32>
    %18 = arith.addf %14, %17 : vector<32x256xf32>
    %cst_18 = arith.constant dense<0.000000e+00> : vector<32xf32>
    %19 = vector.multi_reduction <add>, %18, %cst_18 [1] : vector<32x256xf32> to vector<32xf32>
    %20 = vector.shape_cast %19 : vector<32xf32> to vector<32x1xf32>
    %cst_19 = arith.constant 2.560000e+02 : f32
    %21 = vector.broadcast %cst_19 : f32 to vector<32x1xf32>
    %22 = arith.divf %20, %21 : vector<32x1xf32>
    %23 = vector.broadcast %22 : vector<32x1xf32> to vector<32x256xf32>
    %24 = arith.subf %18, %23 : vector<32x256xf32>
    %25 = arith.mulf %24, %24 : vector<32x256xf32>
    %cst_20 = arith.constant dense<0.000000e+00> : vector<32xf32>
    %26 = vector.multi_reduction <add>, %25, %cst_20 [1] : vector<32x256xf32> to vector<32xf32>
    %27 = vector.shape_cast %26 : vector<32xf32> to vector<32x1xf32>
    %cst_21 = arith.constant 2.560000e+02 : f32
    %28 = vector.broadcast %cst_21 : f32 to vector<32x1xf32>
    %29 = arith.divf %27, %28 : vector<32x1xf32>
    %30 = vector.broadcast %22 : vector<32x1xf32> to vector<32x256xf32>
    %31 = arith.subf %18, %30 : vector<32x256xf32>
    %cst_22 = arith.constant 9.99999974E-6 : f32
    %32 = vector.broadcast %cst_22 : f32 to vector<32x1xf32>
    %33 = arith.addf %29, %32 : vector<32x1xf32>
    %34 = math.rsqrt %33 : vector<32x1xf32>
    %35 = vector.broadcast %34 : vector<32x1xf32> to vector<32x256xf32>
    %36 = arith.mulf %31, %35 : vector<32x256xf32>
    %c0_23 = arith.constant 0 : index
    %c0_24 = arith.constant 0 : index
    %37 = vector.load %arg6[%c0_23, %c0_24] : memref<1x256xbf16, #tpu.memory_space<vmem>>, vector<1x256xbf16>
    %38 = arith.extf %37 : vector<1x256xbf16> to vector<1x256xf32>
    %39 = vector.broadcast %38 : vector<1x256xf32> to vector<32x256xf32>
    %40 = arith.mulf %36, %39 : vector<32x256xf32>
    %c0_25 = arith.constant 0 : index
    %c0_26 = arith.constant 0 : index
    %41 = vector.load %arg7[%c0_25, %c0_26] : memref<1x256xbf16, #tpu.memory_space<vmem>>, vector<1x256xbf16>
    %42 = arith.extf %41 : vector<1x256xbf16> to vector<1x256xf32>
    %43 = vector.broadcast %42 : vector<1x256xf32> to vector<32x256xf32>
    %44 = arith.addf %40, %43 : vector<32x256xf32>
    %45 = arith.truncf %44 : vector<32x256xf32> to vector<32x256xbf16>
    %c0_27 = arith.constant 0 : index
    %c0_28 = arith.constant 0 : index
    %c0_29 = arith.constant 0 : index
    %46 = vector.load %arg8[%c0_27, %c0_28, %c0_29] : memref<1x32x256xbf16, #tpu.memory_space<vmem>>, vector<1x32x256xbf16>
    %47 = vector.shape_cast %46 : vector<1x32x256xbf16> to vector<32x256xbf16>
    %48 = vector.shape_cast %45 : vector<32x256xbf16> to vector<1x32x256xbf16>
    tpu.vector_store %arg8[%c0_27, %c0_28, %c0_29], %48 {strides = array<i32>} : memref<1x32x256xbf16, #tpu.memory_space<vmem>>, vector<1x32x256xbf16>,
    return
  }
  func.func @transform_0(%arg0: i32, %arg1: i32) -> (i32, i32, i32, i32) {
    %c0_i32 = arith.constant 0 : i32
    %c0_i32_0 = arith.constant 0 : i32
    %c0_i32_1 = arith.constant 0 : i32
    return %arg0, %c0_i32, %arg1, %c0_i32_0 : i32, i32, i32, i32
  }
  func.func @transform_1(%arg0: i32, %arg1: i32) -> (i32, i32, i32) {
    %c0_i32 = arith.constant 0 : i32
    %c0_i32_0 = arith.constant 0 : i32
    return %arg0, %arg1, %c0_i32 : i32, i32, i32
  }
  func.func @transform_2(%arg0: i32, %arg1: i32) -> (i32, i32, i32) {
    %c0_i32 = arith.constant 0 : i32
    %c0_i32_0 = arith.constant 0 : i32
    %c0_i32_1 = arith.constant 0 : i32
    %c0_i32_2 = arith.constant 0 : i32
    return %c0_i32, %c0_i32_0, %c0_i32_1 : i32, i32, i32
  }
  func.func @transform_3(%arg0: i32, %arg1: i32) -> (i32, i32) {
    %c0_i32 = arith.constant 0 : i32
    %c0_i32_0 = arith.constant 0 : i32
    %c0_i32_1 = arith.constant 0 : i32
    return %c0_i32, %c0_i32_0 : i32, i32
  }
  func.func @transform_4(%arg0: i32, %arg1: i32) -> (i32, i32) {
    %c0_i32 = arith.constant 0 : i32
    %c0_i32_0 = arith.constant 0 : i32
    %c0_i32_1 = arith.constant 0 : i32
    return %c0_i32, %c0_i32_0 : i32, i32
  }
  func.func @transform_5(%arg0: i32, %arg1: i32) -> (i32, i32) {
    %c0_i32 = arith.constant 0 : i32
    %c0_i32_0 = arith.constant 0 : i32
    %c0_i32_1 = arith.constant 0 : i32
    return %c0_i32, %c0_i32_0 : i32, i32
  }
  func.func @transform_6(%arg0: i32, %arg1: i32) -> (i32, i32, i32) {
    %c0_i32 = arith.constant 0 : i32
    %c0_i32_0 = arith.constant 0 : i32
    return %arg0, %arg1, %c0_i32 : i32, i32, i32
  }
}

module attributes {stable_mosaic.version = 11 : i64} {
  func.func @_flash_attn_kernel(%arg0: i32, %arg1: i32, %arg2: i32, %arg3: memref<1x1x16x128xbf16, #tpu.memory_space<vmem>>, %arg4: memref<1x1x16x128xbf16, #tpu.memory_space<vmem>>, %arg5: memref<1x1x16x128xbf16, #tpu.memory_space<vmem>>, %arg6: memref<1x16x128xbf16, #tpu.memory_space<vmem>>, %arg7: memref<16x1xf32, #tpu.memory_space<vmem>>, %arg8: memref<16x1xf32, #tpu.memory_space<vmem>>, %arg9: memref<16x128xf32, #tpu.memory_space<vmem>>) attributes {dimension_semantics = [#tpu.dimension_semantics<parallel>, #tpu.dimension_semantics<parallel>, #tpu.dimension_semantics<arbitrary>], iteration_bounds = array<i64: 4, 2, 2>, scalar_prefetch = 0 : i64, scratch_operands = 3 : i64, tpu.core_type = #tpu.core_type<tc>, window_params = [{transform_indices = @transform_0, window_bounds = array<i64: 1, 1, 16, 128>}, {transform_indices = @transform_1, window_bounds = array<i64: 1, 1, 16, 128>}, {transform_indices = @transform_2, window_bounds = array<i64: 1, 1, 16, 128>}, {transform_indices = @transform_3, window_bounds = array<i64: 1, 16, 128>}]} {
    %c0_i32 = arith.constant 0 : i32
    %0 = arith.cmpi eq, %arg2, %c0_i32 : i32
    %1 = arith.extui %0 : i1 to i32
    %c0_i32_0 = arith.constant 0 : i32
    %2 = arith.cmpi ne, %1, %c0_i32_0 : i32
    scf.if %2 {
      %cst_29 = arith.constant 0xFF800000 : f32
      %38 = vector.broadcast %cst_29 : f32 to vector<16x1xf32>
      %c0_30 = arith.constant 0 : index
      %c0_31 = arith.constant 0 : index
      %39 = vector.load %arg7[%c0_30, %c0_31] : memref<16x1xf32, #tpu.memory_space<vmem>>, vector<16x1xf32>
      tpu.vector_store %arg7[%c0_30, %c0_31], %38 {strides = array<i32>} : memref<16x1xf32, #tpu.memory_space<vmem>>, vector<16x1xf32>,
      %cst_32 = arith.constant 0.000000e+00 : f32
      %40 = vector.broadcast %cst_32 : f32 to vector<16x1xf32>
      %c0_33 = arith.constant 0 : index
      %c0_34 = arith.constant 0 : index
      %41 = vector.load %arg8[%c0_33, %c0_34] : memref<16x1xf32, #tpu.memory_space<vmem>>, vector<16x1xf32>
      tpu.vector_store %arg8[%c0_33, %c0_34], %40 {strides = array<i32>} : memref<16x1xf32, #tpu.memory_space<vmem>>, vector<16x1xf32>,
      %cst_35 = arith.constant 0.000000e+00 : f32
      %42 = vector.broadcast %cst_35 : f32 to vector<16x128xf32>
      %c0_36 = arith.constant 0 : index
      %c0_37 = arith.constant 0 : index
      %43 = vector.load %arg9[%c0_36, %c0_37] : memref<16x128xf32, #tpu.memory_space<vmem>>, vector<16x128xf32>
      tpu.vector_store %arg9[%c0_36, %c0_37], %42 {strides = array<i32>} : memref<16x128xf32, #tpu.memory_space<vmem>>, vector<16x128xf32>,
    } else {
    }
    %c0 = arith.constant 0 : index
    %c0_1 = arith.constant 0 : index
    %c0_2 = arith.constant 0 : index
    %c0_3 = arith.constant 0 : index
    %3 = vector.load %arg3[%c0, %c0_1, %c0_2, %c0_3] : memref<1x1x16x128xbf16, #tpu.memory_space<vmem>>, vector<1x1x16x128xbf16>
    %4 = vector.shape_cast %3 : vector<1x1x16x128xbf16> to vector<16x128xbf16>
    %c0_4 = arith.constant 0 : index
    %c0_5 = arith.constant 0 : index
    %c0_6 = arith.constant 0 : index
    %c0_7 = arith.constant 0 : index
    %5 = vector.load %arg4[%c0_4, %c0_5, %c0_6, %c0_7] : memref<1x1x16x128xbf16, #tpu.memory_space<vmem>>, vector<1x1x16x128xbf16>
    %6 = vector.shape_cast %5 : vector<1x1x16x128xbf16> to vector<16x128xbf16>
    %cst = arith.constant dense<0.000000e+00> : vector<16x16xf32>
    %7 = tpu.matmul %4, %6, %cst {dimension_numbers = #tpu.dot_dimension_numbers<[1], [1], [0], [0], [0, 0, 1, 0], [], []>} : vector<16x128xbf16>, vector<16x128xbf16>, vector<16x16xf32> -> vector<16x16xf32>
    %cst_8 = arith.constant 0.0883883461 : f32
    %8 = vector.broadcast %cst_8 : f32 to vector<16x16xf32>
    %9 = arith.mulf %7, %8 : vector<16x16xf32>
    %c0_9 = arith.constant 0 : index
    %c0_10 = arith.constant 0 : index
    %10 = vector.load %arg7[%c0_9, %c0_10] : memref<16x1xf32, #tpu.memory_space<vmem>>, vector<16x1xf32>
    %cst_11 = arith.constant dense<0xFF800000> : vector<16xf32>
    %11 = vector.multi_reduction <maximumf>, %9, %cst_11 [1] : vector<16x16xf32> to vector<16xf32>
    %12 = vector.shape_cast %11 : vector<16xf32> to vector<16x1xf32>
    %13 = arith.maximumf %10, %12 : vector<16x1xf32>
    %14 = arith.subf %10, %13 : vector<16x1xf32>
    %15 = math.exp %14 : vector<16x1xf32>
    %16 = vector.broadcast %13 : vector<16x1xf32> to vector<16x16xf32>
    %17 = arith.subf %9, %16 : vector<16x16xf32>
    %18 = math.exp %17 : vector<16x16xf32>
    %c0_12 = arith.constant 0 : index
    %c0_13 = arith.constant 0 : index
    %19 = vector.load %arg8[%c0_12, %c0_13] : memref<16x1xf32, #tpu.memory_space<vmem>>, vector<16x1xf32>
    %20 = arith.mulf %15, %19 : vector<16x1xf32>
    %cst_14 = arith.constant dense<0.000000e+00> : vector<16xf32>
    %21 = vector.multi_reduction <add>, %18, %cst_14 [1] : vector<16x16xf32> to vector<16xf32>
    %22 = vector.shape_cast %21 : vector<16xf32> to vector<16x1xf32>
    %23 = arith.addf %20, %22 : vector<16x1xf32>
    %c0_15 = arith.constant 0 : index
    %c0_16 = arith.constant 0 : index
    %24 = vector.load %arg8[%c0_15, %c0_16] : memref<16x1xf32, #tpu.memory_space<vmem>>, vector<16x1xf32>
    tpu.vector_store %arg8[%c0_15, %c0_16], %23 {strides = array<i32>} : memref<16x1xf32, #tpu.memory_space<vmem>>, vector<16x1xf32>,
    %c0_17 = arith.constant 0 : index
    %c0_18 = arith.constant 0 : index
    %25 = vector.load %arg9[%c0_17, %c0_18] : memref<16x128xf32, #tpu.memory_space<vmem>>, vector<16x128xf32>
    %26 = vector.broadcast %15 : vector<16x1xf32> to vector<16x128xf32>
    %27 = arith.mulf %26, %25 : vector<16x128xf32>
    %28 = arith.truncf %18 : vector<16x16xf32> to vector<16x16xbf16>
    %c0_19 = arith.constant 0 : index
    %c0_20 = arith.constant 0 : index
    %c0_21 = arith.constant 0 : index
    %c0_22 = arith.constant 0 : index
    %29 = vector.load %arg5[%c0_19, %c0_20, %c0_21, %c0_22] : memref<1x1x16x128xbf16, #tpu.memory_space<vmem>>, vector<1x1x16x128xbf16>
    %30 = vector.shape_cast %29 : vector<1x1x16x128xbf16> to vector<16x128xbf16>
    %cst_23 = arith.constant dense<0.000000e+00> : vector<16x128xf32>
    %31 = tpu.matmul %28, %30, %cst_23 {dimension_numbers = #tpu.dot_dimension_numbers<[1], [0], [0], [1], [0, 0, 1, 1], [], []>} : vector<16x16xbf16>, vector<16x128xbf16>, vector<16x128xf32> -> vector<16x128xf32>
    %32 = arith.addf %27, %31 : vector<16x128xf32>
    %c0_24 = arith.constant 0 : index
    %c0_25 = arith.constant 0 : index
    %33 = vector.load %arg9[%c0_24, %c0_25] : memref<16x128xf32, #tpu.memory_space<vmem>>, vector<16x128xf32>
    tpu.vector_store %arg9[%c0_24, %c0_25], %32 {strides = array<i32>} : memref<16x128xf32, #tpu.memory_space<vmem>>, vector<16x128xf32>,
    %c0_26 = arith.constant 0 : index
    %c0_27 = arith.constant 0 : index
    %34 = vector.load %arg7[%c0_26, %c0_27] : memref<16x1xf32, #tpu.memory_space<vmem>>, vector<16x1xf32>
    tpu.vector_store %arg7[%c0_26, %c0_27], %13 {strides = array<i32>} : memref<16x1xf32, #tpu.memory_space<vmem>>, vector<16x1xf32>,
    %c1_i32 = arith.constant 1 : i32
    %35 = arith.cmpi eq, %arg2, %c1_i32 : i32
    %36 = arith.extui %35 : i1 to i32
    %c0_i32_28 = arith.constant 0 : i32
    %37 = arith.cmpi ne, %36, %c0_i32_28 : i32
    scf.if %37 {
      %c0_29 = arith.constant 0 : index
      %c0_30 = arith.constant 0 : index
      %38 = vector.load %arg9[%c0_29, %c0_30] : memref<16x128xf32, #tpu.memory_space<vmem>>, vector<16x128xf32>
      %c0_31 = arith.constant 0 : index
      %c0_32 = arith.constant 0 : index
      %39 = vector.load %arg8[%c0_31, %c0_32] : memref<16x1xf32, #tpu.memory_space<vmem>>, vector<16x1xf32>
      %40 = vector.broadcast %39 : vector<16x1xf32> to vector<16x128xf32>
      %41 = arith.divf %38, %40 : vector<16x128xf32>
      %42 = arith.truncf %41 : vector<16x128xf32> to vector<16x128xbf16>
      %c0_33 = arith.constant 0 : index
      %c0_34 = arith.constant 0 : index
      %c0_35 = arith.constant 0 : index
      %43 = vector.load %arg6[%c0_33, %c0_34, %c0_35] : memref<1x16x128xbf16, #tpu.memory_space<vmem>>, vector<1x16x128xbf16>
      %44 = vector.shape_cast %43 : vector<1x16x128xbf16> to vector<16x128xbf16>
      %45 = vector.shape_cast %42 : vector<16x128xbf16> to vector<1x16x128xbf16>
      tpu.vector_store %arg6[%c0_33, %c0_34, %c0_35], %45 {strides = array<i32>} : memref<1x16x128xbf16, #tpu.memory_space<vmem>>, vector<1x16x128xbf16>,
    } else {
    }
    return
  }
  func.func @transform_0(%arg0: i32, %arg1: i32, %arg2: i32) -> (i32, i32, i32, i32) {
    %c0_i32 = arith.constant 0 : i32
    %c0_i32_0 = arith.constant 0 : i32
    %c0_i32_1 = arith.constant 0 : i32
    return %c0_i32, %arg0, %arg1, %c0_i32_0 : i32, i32, i32, i32
  }
  func.func @transform_1(%arg0: i32, %arg1: i32, %arg2: i32) -> (i32, i32, i32, i32) {
    %c1_i32 = arith.constant 1 : i32
    %c0_i32 = arith.constant 0 : i32
    %c0_i32_0 = arith.constant 0 : i32
    return %c1_i32, %arg0, %arg2, %c0_i32 : i32, i32, i32, i32
  }
  func.func @transform_2(%arg0: i32, %arg1: i32, %arg2: i32) -> (i32, i32, i32, i32) {
    %c2_i32 = arith.constant 2 : i32
    %c0_i32 = arith.constant 0 : i32
    %c0_i32_0 = arith.constant 0 : i32
    return %c2_i32, %arg0, %arg2, %c0_i32 : i32, i32, i32, i32
  }
  func.func @transform_3(%arg0: i32, %arg1: i32, %arg2: i32) -> (i32, i32, i32) {
    %c0_i32 = arith.constant 0 : i32
    %c0_i32_0 = arith.constant 0 : i32
    return %arg0, %arg1, %c0_i32 : i32, i32, i32
  }
}

module attributes {stable_mosaic.version = 11 : i64} {
  func.func @_ffn_resident_ln_kernel(%arg0: i32, %arg1: memref<32x256xbf16, #tpu.memory_space<vmem>>, %arg2: memref<256x512xbf16, #tpu.memory_space<vmem>>, %arg3: memref<1x512xbf16, #tpu.memory_space<vmem>>, %arg4: memref<512x256xbf16, #tpu.memory_space<vmem>>, %arg5: memref<1x256xbf16, #tpu.memory_space<vmem>>, %arg6: memref<1x256xbf16, #tpu.memory_space<vmem>>, %arg7: memref<1x256xbf16, #tpu.memory_space<vmem>>, %arg8: memref<32x256xbf16, #tpu.memory_space<vmem>>) attributes {dimension_semantics = [#tpu.dimension_semantics<parallel>], iteration_bounds = array<i64: 2>, scalar_prefetch = 0 : i64, scratch_operands = 0 : i64, tpu.core_type = #tpu.core_type<tc>, window_params = [{transform_indices = @transform_0, window_bounds = array<i64: 32, 256>}, {pipeline_mode = #tpu.pipeline_mode<synchronous>, transform_indices = @transform_1, window_bounds = array<i64: 256, 512>}, {pipeline_mode = #tpu.pipeline_mode<synchronous>, transform_indices = @transform_2, window_bounds = array<i64: 1, 512>}, {pipeline_mode = #tpu.pipeline_mode<synchronous>, transform_indices = @transform_3, window_bounds = array<i64: 512, 256>}, {pipeline_mode = #tpu.pipeline_mode<synchronous>, transform_indices = @transform_4, window_bounds = array<i64: 1, 256>}, {pipeline_mode = #tpu.pipeline_mode<synchronous>, transform_indices = @transform_5, window_bounds = array<i64: 1, 256>}, {pipeline_mode = #tpu.pipeline_mode<synchronous>, transform_indices = @transform_6, window_bounds = array<i64: 1, 256>}, {transform_indices = @transform_7, window_bounds = array<i64: 32, 256>}]} {
    %c0 = arith.constant 0 : index
    %c0_0 = arith.constant 0 : index
    %0 = vector.load %arg1[%c0, %c0_0] : memref<32x256xbf16, #tpu.memory_space<vmem>>, vector<32x256xbf16>
    %c0_1 = arith.constant 0 : index
    %c0_2 = arith.constant 0 : index
    %1 = vector.load %arg2[%c0_1, %c0_2] : memref<256x512xbf16, #tpu.memory_space<vmem>>, vector<256x512xbf16>
    %cst = arith.constant dense<0.000000e+00> : vector<32x512xf32>
    %2 = tpu.matmul %0, %1, %cst {dimension_numbers = #tpu.dot_dimension_numbers<[1], [0], [0], [1], [0, 0, 1, 1], [], []>} : vector<32x256xbf16>, vector<256x512xbf16>, vector<32x512xf32> -> vector<32x512xf32>
    %c0_3 = arith.constant 0 : index
    %c0_4 = arith.constant 0 : index
    %3 = vector.load %arg3[%c0_3, %c0_4] : memref<1x512xbf16, #tpu.memory_space<vmem>>, vector<1x512xbf16>
    %4 = arith.extf %3 : vector<1x512xbf16> to vector<1x512xf32>
    %5 = vector.broadcast %4 : vector<1x512xf32> to vector<32x512xf32>
    %6 = arith.addf %2, %5 : vector<32x512xf32>
    %cst_5 = arith.constant 0.000000e+00 : f32
    %7 = vector.broadcast %cst_5 : f32 to vector<32x512xf32>
    %8 = arith.maximumf %6, %7 : vector<32x512xf32>
    %9 = arith.truncf %8 : vector<32x512xf32> to vector<32x512xbf16>
    %c0_6 = arith.constant 0 : index
    %c0_7 = arith.constant 0 : index
    %10 = vector.load %arg4[%c0_6, %c0_7] : memref<512x256xbf16, #tpu.memory_space<vmem>>, vector<512x256xbf16>
    %cst_8 = arith.constant dense<0.000000e+00> : vector<32x256xf32>
    %11 = tpu.matmul %9, %10, %cst_8 {dimension_numbers = #tpu.dot_dimension_numbers<[1], [0], [0], [1], [0, 0, 1, 1], [], []>} : vector<32x512xbf16>, vector<512x256xbf16>, vector<32x256xf32> -> vector<32x256xf32>
    %c0_9 = arith.constant 0 : index
    %c0_10 = arith.constant 0 : index
    %12 = vector.load %arg1[%c0_9, %c0_10] : memref<32x256xbf16, #tpu.memory_space<vmem>>, vector<32x256xbf16>
    %13 = arith.extf %12 : vector<32x256xbf16> to vector<32x256xf32>
    %14 = arith.addf %13, %11 : vector<32x256xf32>
    %c0_11 = arith.constant 0 : index
    %c0_12 = arith.constant 0 : index
    %15 = vector.load %arg5[%c0_11, %c0_12] : memref<1x256xbf16, #tpu.memory_space<vmem>>, vector<1x256xbf16>
    %16 = arith.extf %15 : vector<1x256xbf16> to vector<1x256xf32>
    %17 = vector.broadcast %16 : vector<1x256xf32> to vector<32x256xf32>
    %18 = arith.addf %14, %17 : vector<32x256xf32>
    %cst_13 = arith.constant dense<0.000000e+00> : vector<32xf32>
    %19 = vector.multi_reduction <add>, %18, %cst_13 [1] : vector<32x256xf32> to vector<32xf32>
    %20 = vector.shape_cast %19 : vector<32xf32> to vector<32x1xf32>
    %cst_14 = arith.constant 2.560000e+02 : f32
    %21 = vector.broadcast %cst_14 : f32 to vector<32x1xf32>
    %22 = arith.divf %20, %21 : vector<32x1xf32>
    %23 = vector.broadcast %22 : vector<32x1xf32> to vector<32x256xf32>
    %24 = arith.subf %18, %23 : vector<32x256xf32>
    %25 = arith.mulf %24, %24 : vector<32x256xf32>
    %cst_15 = arith.constant dense<0.000000e+00> : vector<32xf32>
    %26 = vector.multi_reduction <add>, %25, %cst_15 [1] : vector<32x256xf32> to vector<32xf32>
    %27 = vector.shape_cast %26 : vector<32xf32> to vector<32x1xf32>
    %cst_16 = arith.constant 2.560000e+02 : f32
    %28 = vector.broadcast %cst_16 : f32 to vector<32x1xf32>
    %29 = arith.divf %27, %28 : vector<32x1xf32>
    %30 = vector.broadcast %22 : vector<32x1xf32> to vector<32x256xf32>
    %31 = arith.subf %18, %30 : vector<32x256xf32>
    %cst_17 = arith.constant 9.99999974E-6 : f32
    %32 = vector.broadcast %cst_17 : f32 to vector<32x1xf32>
    %33 = arith.addf %29, %32 : vector<32x1xf32>
    %34 = math.rsqrt %33 : vector<32x1xf32>
    %35 = vector.broadcast %34 : vector<32x1xf32> to vector<32x256xf32>
    %36 = arith.mulf %31, %35 : vector<32x256xf32>
    %c0_18 = arith.constant 0 : index
    %c0_19 = arith.constant 0 : index
    %37 = vector.load %arg6[%c0_18, %c0_19] : memref<1x256xbf16, #tpu.memory_space<vmem>>, vector<1x256xbf16>
    %38 = arith.extf %37 : vector<1x256xbf16> to vector<1x256xf32>
    %39 = vector.broadcast %38 : vector<1x256xf32> to vector<32x256xf32>
    %40 = arith.mulf %36, %39 : vector<32x256xf32>
    %c0_20 = arith.constant 0 : index
    %c0_21 = arith.constant 0 : index
    %41 = vector.load %arg7[%c0_20, %c0_21] : memref<1x256xbf16, #tpu.memory_space<vmem>>, vector<1x256xbf16>
    %42 = arith.extf %41 : vector<1x256xbf16> to vector<1x256xf32>
    %43 = vector.broadcast %42 : vector<1x256xf32> to vector<32x256xf32>
    %44 = arith.addf %40, %43 : vector<32x256xf32>
    %45 = arith.truncf %44 : vector<32x256xf32> to vector<32x256xbf16>
    %c0_22 = arith.constant 0 : index
    %c0_23 = arith.constant 0 : index
    %46 = vector.load %arg8[%c0_22, %c0_23] : memref<32x256xbf16, #tpu.memory_space<vmem>>, vector<32x256xbf16>
    tpu.vector_store %arg8[%c0_22, %c0_23], %45 {strides = array<i32>} : memref<32x256xbf16, #tpu.memory_space<vmem>>, vector<32x256xbf16>,
    return
  }
  func.func @transform_0(%arg0: i32) -> (i32, i32) {
    %c0_i32 = arith.constant 0 : i32
    %c0_i32_0 = arith.constant 0 : i32
    return %arg0, %c0_i32 : i32, i32
  }
  func.func @transform_1(%arg0: i32) -> (i32, i32) {
    %c0_i32 = arith.constant 0 : i32
    %c0_i32_0 = arith.constant 0 : i32
    %c0_i32_1 = arith.constant 0 : i32
    return %c0_i32, %c0_i32_0 : i32, i32
  }
  func.func @transform_2(%arg0: i32) -> (i32, i32) {
    %c0_i32 = arith.constant 0 : i32
    %c0_i32_0 = arith.constant 0 : i32
    %c0_i32_1 = arith.constant 0 : i32
    return %c0_i32, %c0_i32_0 : i32, i32
  }
  func.func @transform_3(%arg0: i32) -> (i32, i32) {
    %c0_i32 = arith.constant 0 : i32
    %c0_i32_0 = arith.constant 0 : i32
    %c0_i32_1 = arith.constant 0 : i32
    return %c0_i32, %c0_i32_0 : i32, i32
  }
  func.func @transform_4(%arg0: i32) -> (i32, i32) {
    %c0_i32 = arith.constant 0 : i32
    %c0_i32_0 = arith.constant 0 : i32
    %c0_i32_1 = arith.constant 0 : i32
    return %c0_i32, %c0_i32_0 : i32, i32
  }
  func.func @transform_5(%arg0: i32) -> (i32, i32) {
    %c0_i32 = arith.constant 0 : i32
    %c0_i32_0 = arith.constant 0 : i32
    %c0_i32_1 = arith.constant 0 : i32
    return %c0_i32, %c0_i32_0 : i32, i32
  }
  func.func @transform_6(%arg0: i32) -> (i32, i32) {
    %c0_i32 = arith.constant 0 : i32
    %c0_i32_0 = arith.constant 0 : i32
    %c0_i32_1 = arith.constant 0 : i32
    return %c0_i32, %c0_i32_0 : i32, i32
  }
  func.func @transform_7(%arg0: i32) -> (i32, i32) {
    %c0_i32 = arith.constant 0 : i32
    %c0_i32_0 = arith.constant 0 : i32
    return %arg0, %c0_i32 : i32, i32
  }
}

</mosaic_0001>

<bundles_post_ra>
// kernel: transformer_encoder_layer.6
= control target key start
LH: loop header
LB: loop body
LE: loop exit
PB: predicated region body
PF: predicated region fallthrough
CT: control target
= control target key end

     0   :  { %s1245_s21 = smov 0   ;;  %s1247_s22 = smov 0   ;;  %s1565_s0 = inlined_call_operand.vmem [shape: bf16[2,2,32,128], index: 0, kind: input, shape index: {}]   ;;  %s1566_s1 = inlined_call_operand.vmem [shape: bf16[2,32,256], index: 1, kind: input, shape index: {}]   ;;  %s1567_s2 = inlined_call_operand.vmem [shape: bf16[2,128,256], index: 2, kind: input, shape index: {}]   ;;  %s1568_s3 = inlined_call_operand.vmem [shape: bf16[1,256], index: 3, kind: input, shape index: {}]   ;;  %s1569_s4 = inlined_call_operand.vmem [shape: bf16[1,256], index: 4, kind: input, shape index: {}]   ;;  %s1570_s5 = inlined_call_operand.vmem [shape: bf16[1,256], index: 5, kind: input, shape index: {}]   ;;  %s1571_s6 = inlined_call_operand.vmem [shape: bf16[2,32,256], index: 6, kind: output, shape index: {}]  }
   0x1   :  { %s1249_s23 = smov 0  }
   0x2 LB: > { %s28_s24 = sadd.s32 1, %s1203_s22  ;;  %p938_p0 = scmp.ge.s32.totalorder %s1207_s23, 1  ;;  %s1207_s23 = sphi %s1249_s23, %s16_s23   ;;  %s1203_s22 = sphi %s1247_s22, %s1573_s22   ;;  %s1199_s21 = sphi %s1245_s21, %s1572_s21  }
   0x3   : > { %p30_p1 = scmp.ge.s32.totalorder %s28_s24, 2  ;;  %p251_p2 = scmp.lt.s32.totalorder %s1207_s23, 3 }
   0x5   : > { %s1575_s24 = smov (%p30_p1, %s28_s24), 0  ;;  %p252_p3 = pnand %p938_p0, %p251_p2 }
   0x6   : > { %p301_p4 = scmp.lt.s32.totalorder (!%p252_p3), %s1199_s21, 1 }
   0x7   : > { %255 = sbr.rel (%p252_p3) target bundleno = 483 (0x1e3), region = 44 }
   0xc   : > { %v1031_v0 = vld [vmem:[%s1567_s2 + $0xf0] sm:$0xf]  ;;  %v1149_v1 = vld [vmem:[%s1567_s2 + $0xf4] sm:$0xf0]  ;;  %v1148_v2 = vld [vmem:[%s1567_s2 + $0xf4] sm:$0xf] }
   0xd   : > { %v1032_v3 = vor.u32 %v1149_v1, %v1031_v0  ;;  %v1033_v4 = vld [vmem:[%s1567_s2 + $0xf8] sm:$0xf0]  ;;  %v1103_v5 = vld [vmem:[%s1567_s2 + $0x70] sm:$0xf]  ;;  %v1131_v6 = vld [vmem:[%s1567_s2 + $0x74] sm:$0xf0] }
   0xe   : > { %v1036_v7 = vor.u32 %v1148_v2, %v1033_v4  ;;  %v1104_v8 = vor.u32 %v1131_v6, %v1103_v5  ;;  %v1130_v9 = vld [vmem:[%s1567_s2 + $0x74] sm:$0xf]  ;;  %v1105_v10 = vld [vmem:[%s1567_s2 + $0x78] sm:$0xf0]  ;;  %v1023_v11 = vld [vmem:[%s1567_s2 + $0xe0] sm:$0xf] }
   0xf   : > { %466 = vmatpush.bf16.msra.mxu0 %v1032_v3  ;;  %v1108_v12 = vor.u32 %v1130_v9, %v1105_v10  ;;  %v1147_v13 = vld [vmem:[%s1567_s2 + $0xe4] sm:$0xf0]  ;;  %v1146_v14 = vld [vmem:[%s1567_s2 + $0xe4] sm:$0xf]  ;;  %v1025_v15 = vld [vmem:[%s1567_s2 + $0xe8] sm:$0xf0] }
  0x10   : > { %485 = vmatpush.bf16.msra.mxu1 %v1036_v7  ;;  %596 = vmatpush.bf16.msra.mxu2 %v1104_v8  ;;  %v1024_v16 = vor.u32 %v1147_v13, %v1023_v11  ;;  %v1028_v17 = vor.u32 %v1146_v14, %v1025_v15  ;;  %v1095_v18 = vld [vmem:[%s1567_s2 + $0x60] sm:$0xf]  ;;  %v1129_v19 = vld [vmem:[%s1567_s2 + $0x64] sm:$0xf0]  ;;  %v1128_v20 = vld [vmem:[%s1567_s2 + $0x64] sm:$0xf] }
  0x11   : > { %615 = vmatpush.bf16.msra.mxu3 %v1108_v12  ;;  %v1096_v21 = vor.u32 %v1129_v19, %v1095_v18  ;;  %v1097_v22 = vld [vmem:[%s1567_s2 + $0x68] sm:$0xf0]  ;;  %v1015_v23 = vld [vmem:[%s1567_s2 + $0xd0] sm:$0xf]  ;;  %v1145_v24 = vld [vmem:[%s1567_s2 + $0xd4] sm:$0xf0] }
  0x12   : > { %v1100_v25 = vor.u32 %v1128_v20, %v1097_v22  ;;  %v1144_v26 = vld [vmem:[%s1567_s2 + $0xd4] sm:$0xf]  ;;  %v1017_v27 = vld [vmem:[%s1567_s2 + $0xd8] sm:$0xf0]  ;;  %v1087_v28 = vld [vmem:[%s1567_s2 + $0x50] sm:$0xf]  ;;  %v1016_v29 = vor.u32 %v1145_v24, %v1015_v23 }
  0x13   : > { %467 = vmatpush.bf16.msra.mxu0 %v1024_v16  ;;  %v1127_v30 = vld [vmem:[%s1567_s2 + $0x54] sm:$0xf0]  ;;  %v1126_v31 = vld [vmem:[%s1567_s2 + $0x54] sm:$0xf]  ;;  %v1089_v32 = vld [vmem:[%s1567_s2 + $0x58] sm:$0xf0]  ;;  %v1020_v33 = vor.u32 %v1144_v26, %v1017_v27 }
  0x14   : > { %486 = vmatpush.bf16.msra.mxu1 %v1028_v17  ;;  %597 = vmatpush.bf16.msra.mxu2 %v1096_v21  ;;  %v1088_v34 = vor.u32 %v1127_v30, %v1087_v28  ;;  %v1007_v35 = vld [vmem:[%s1567_s2 + $0xc0] sm:$0xf]  ;;  %v1143_v36 = vld [vmem:[%s1567_s2 + $0xc4] sm:$0xf0]  ;;  %v1142_v37 = vld [vmem:[%s1567_s2 + $0xc4] sm:$0xf]  ;;  %v1092_v38 = vor.u32 %v1126_v31, %v1089_v32 }
  0x15   : > { %616 = vmatpush.bf16.msra.mxu3 %v1100_v25  ;;  %v1009_v39 = vld [vmem:[%s1567_s2 + $0xc8] sm:$0xf0]  ;;  %v1079_v40 = vld [vmem:[%s1567_s2 + $0x40] sm:$0xf]  ;;  %v1125_v41 = vld [vmem:[%s1567_s2 + $0x44] sm:$0xf0]  ;;  %v1008_v44 = vor.u32 %v1143_v36, %v1007_v35 }
  0x16   : > { %v1124_v42 = vld [vmem:[%s1567_s2 + $0x44] sm:$0xf]  ;;  %v1081_v43 = vld [vmem:[%s1567_s2 + $0x48] sm:$0xf0]  ;;  %v1012_v45 = vor.u32 %v1142_v37, %v1009_v39  ;;  %v1080_v46 = vor.u32 %v1125_v41, %v1079_v40  ;;  %v999_v47 = vld [vmem:[%s1567_s2 + $0xb0] sm:$0xf] }
  0x17   : > { %468 = vmatpush.bf16.msra.mxu0 %v1016_v29  ;;  %v1141_v48 = vld [vmem:[%s1567_s2 + $0xb4] sm:$0xf0]  ;;  %v1140_v49 = vld [vmem:[%s1567_s2 + $0xb4] sm:$0xf]  ;;  %v1084_v50 = vor.u32 %v1124_v42, %v1081_v43  ;;  %v1001_v51 = vld [vmem:[%s1567_s2 + $0xb8] sm:$0xf0] }
  0x18   : > { %487 = vmatpush.bf16.msra.mxu1 %v1020_v33  ;;  %598 = vmatpush.bf16.msra.mxu2 %v1088_v34  ;;  %v1071_v52 = vld [vmem:[%s1567_s2 + $0x30] sm:$0xf]  ;;  %v1123_v53 = vld [vmem:[%s1567_s2 + $0x34] sm:$0xf0]  ;;  %v1122_v54 = vld [vmem:[%s1567_s2 + $0x34] sm:$0xf]  ;;  %v1000_v56 = vor.u32 %v1141_v48, %v999_v47  ;;  %v1004_v57 = vor.u32 %v1140_v49, %v1001_v51 }
  0x19   : > { %617 = vmatpush.bf16.msra.mxu3 %v1092_v38  ;;  %v1073_v55 = vld [vmem:[%s1567_s2 + $0x38] sm:$0xf0]  ;;  %v1072_v58 = vor.u32 %v1123_v53, %v1071_v52  ;;  %v991_v59 = vld [vmem:[%s1567_s2 + $0xa0] sm:$0xf]  ;;  %v1139_v60 = vld [vmem:[%s1567_s2 + $0xa4] sm:$0xf0] }
  0x1a   : > { %v1138_v61 = vld [vmem:[%s1567_s2 + $0xa4] sm:$0xf]  ;;  %v1076_v62 = vor.u32 %v1122_v54, %v1073_v55  ;;  %v993_v63 = vld [vmem:[%s1567_s2 + $0xa8] sm:$0xf0]  ;;  %v1063_v0 = vld [vmem:[%s1567_s2 + $0x20] sm:$0xf]  ;;  %v992_v4 = vor.u32 %v1139_v60, %v991_v59 }
  0x1b   : > { %469 = vmatpush.bf16.msra.mxu0 %v1008_v44  ;;  %v1121_v1 = vld [vmem:[%s1567_s2 + $0x24] sm:$0xf0]  ;;  %v1120_v2 = vld [vmem:[%s1567_s2 + $0x24] sm:$0xf]  ;;  %v1065_v3 = vld [vmem:[%s1567_s2 + $0x28] sm:$0xf0]  ;;  %v996_v6 = vor.u32 %v1138_v61, %v993_v63 }
  0x1c   : > { %488 = vmatpush.bf16.msra.mxu1 %v1012_v45  ;;  %599 = vmatpush.bf16.msra.mxu2 %v1080_v46  ;;  %v983_v5 = vld [vmem:[%s1567_s2 + $0x90] sm:$0xf]  ;;  %v1064_v7 = vor.u32 %v1121_v1, %v1063_v0  ;;  %v1137_v8 = vld [vmem:[%s1567_s2 + $0x94] sm:$0xf0]  ;;  %v1136_v9 = vld [vmem:[%s1567_s2 + $0x94] sm:$0xf]  ;;  %v1068_v11 = vor.u32 %v1120_v2, %v1065_v3 }
  0x1d   : > { %618 = vmatpush.bf16.msra.mxu3 %v1084_v50  ;;  %v985_v10 = vld [vmem:[%s1567_s2 + $0x98] sm:$0xf0]  ;;  %v1055_v12 = vld [vmem:[%s1567_s2 + $0x10] sm:$0xf]  ;;  %v1119_v13 = vld [vmem:[%s1567_s2 + $0x14] sm:$0xf0]  ;;  %v984_v16 = vor.u32 %v1137_v8, %v983_v5 }
  0x1e   : > { %v1118_v14 = vld [vmem:[%s1567_s2 + $0x14] sm:$0xf]  ;;  %v1057_v15 = vld [vmem:[%s1567_s2 + $0x18] sm:$0xf0]  ;;  %v975_v17 = vld [vmem:[%s1567_s2 + $0x80] sm:$0xf]  ;;  %v988_v18 = vor.u32 %v1136_v9, %v985_v10  ;;  %v1056_v19 = vor.u32 %v1119_v13, %v1055_v12 }
  0x1f   : > { %470 = vmatpush.bf16.msra.mxu0 %v1000_v56  ;;  %s1577_s21 = smov (!%p301_p4, %s1199_s21), 1  ;;  %v1135_v20 = vld [vmem:[%s1567_s2 + $0x84] sm:$0xf0]  ;;  %v1134_v21 = vld [vmem:[%s1567_s2 + $0x84] sm:$0xf]  ;;  %v1060_v23 = vor.u32 %v1118_v14, %v1057_v15 }
  0x20   : > { %489 = vmatpush.bf16.msra.mxu1 %v1004_v57  ;;  %600 = vmatpush.bf16.msra.mxu2 %v1072_v58  ;;  %v977_v22 = vld [vmem:[%s1567_s2 + $0x88] sm:$0xf0]  ;;  %v1047_v24 = vld [vmem:[%s1567_s2] sm:$0xf]  ;;  %v1117_v25 = vld [vmem:[%s1567_s2 + $0x4] sm:$0xf0]  ;;  %v976_v28 = vor.u32 %v1135_v20, %v975_v17 }
  0x21   : > { %619 = vmatpush.bf16.msra.mxu3 %v1076_v62  ;;  %s1453_s29 = sshll.u32 %s1577_s21, 5  ;;  %v1116_v26 = vld [vmem:[%s1567_s2 + $0x4] sm:$0xf]  ;;  %v1049_v27 = vld [vmem:[%s1567_s2 + $0x8] sm:$0xf0]  ;;  %v980_v29 = vor.u32 %v1134_v21, %v977_v22  ;;  %v1048_v30 = vor.u32 %v1117_v25, %v1047_v24 }
  0x22   : > { %s308_s12 = scalar_lea.vmem %s1565_s0, %s1453_s29  ;;  %v1052_v31 = vor.u32 %v1116_v26, %v1049_v27  ;;  %v654_v36 = vld [vmem:[%s1568_s3] sm:$0x3]  ;;  %s1472_s16 = scalar_lea.vmem %s1566_s1, %s1453_s29 }
  0x23   : > { %471 = vmatpush.bf16.msra.mxu0 %v992_v4  ;;  %v1132_v32 = vld [vmem:[%s308_s12 + $0x10] sm:$0xff]  ;;  %v1114_v33 = vld [vmem:[%s308_s12] sm:$0xff]  ;;  %v1133_v34 = vld [vmem:[%s308_s12 + $0x18] sm:$0xff]  ;;  %v655_v37 = vunpack.c.l.bf16 %v654_v36  ;;  %s1538_s27 = scalar_lea.vmem %s1571_s6, %s1453_s29 }
  0x24   : > { %490 = vmatpush.bf16.msra.mxu1 %v996_v6  ;;  %601 = vmatpush.bf16.msra.mxu2 %v1064_v7  ;;  %v1115_v35 = vld [vmem:[%s308_s12 + $0x8] sm:$0xff]  ;;  %v634_v40 = vld [vmem:[%s1472_s16] sm:$0xff]  ;;  %v636_v3 = vld [vmem:[%s1472_s16 + $0x10] sm:$0xff] }
  0x25   : > { %620 = vmatpush.bf16.msra.mxu3 %v1068_v11  ;;  %v657_v41 = vperm.slane %v655_v37, 0  ;;  %v658_v42 = vperm.slane %v655_v37, 2  ;;  %v638_v43 = vunpack.c.l.bf16 %v634_v40  ;;  %v639_v45 = vunpack.c.h.bf16 %v634_v40  ;;  %v635_v54 = vld [vmem:[%s1472_s16 + $0x8] sm:$0xff]  ;;  %v637_v17 = vld [vmem:[%s1472_s16 + $0x18] sm:$0xff] }
  0x26   : > { %v640_v58 = vunpack.c.l.bf16 %v635_v54  ;;  %v641_v60 = vunpack.c.h.bf16 %v635_v54  ;;  %v642_v8 = vunpack.c.l.bf16 %v636_v3  ;;  %v643_v10 = vunpack.c.h.bf16 %v636_v3 }
  0x27   : > { %472 = vmatpush.bf16.msra.mxu0 %v984_v16  ;;  %v661_v48 = vperm.slane %v657_v41, 0  ;;  %v662_v50 = vperm.slane %v658_v42, 0  ;;  %v644_v20 = vunpack.c.l.bf16 %v637_v17 }
  0x28   : > { %491 = vmatpush.bf16.msra.mxu1 %v988_v18  ;;  %602 = vmatpush.bf16.msra.mxu2 %v1056_v19 }
  0x29   : > { %621 = vmatpush.bf16.msra.mxu3 %v1060_v23  ;;  %v645_v23 = vunpack.c.h.bf16 %v637_v17 }
  0x2b   : > { %473 = vmatpush.bf16.msra.mxu0 %v976_v28 }
  0x2c   : > { %492 = vmatpush.bf16.msra.mxu1 %v980_v29  ;;  %603 = vmatpush.bf16.msra.mxu2 %v1048_v30 }
  0x2d   : > { %622 = vmatpush.bf16.msra.mxu3 %v1052_v31 }
  0x2e   : > { %474 = vmatmul.bf16.vlgmr.msra.gmra.mxu0 %v1132_v32 }
  0x2f   : > { %493 = vmatmul.bf16.vlgmr.msra.gmra.mxu1 %v1132_v32  ;;  %604 = vmatmul.bf16.vlgmr.msra.gmra.mxu2 %v1114_v33 }
  0x30   : > { %623 = vmatmul.bf16.vlgmr.msra.gmra.mxu3 %v1114_v33 }
  0x3e   : > { %479 = vmatmul.bf16.gmra.mxu0 %v1133_v34 }
  0x3f   : > { %498 = vmatmul.bf16.gmra.mxu1 %v1133_v34  ;;  %609 = vmatmul.bf16.gmra.mxu2 %v1115_v35  ;;  %v1209_v34 = vmov 256.0  }
  0x40   : > { %628 = vmatmul.bf16.gmra.mxu3 %v1115_v35  ;;  %1175 = vrcp.f32 %v1209_v34 }
  0x46   : > { %v1176_v35 = vpop.eup %1175 }
  0x47   : > { %v684_v36 = vmul.f32 256.0, %v1176_v35  ;;  %vm688_vm0 = vweird.f32 %v1176_v35 }
  0x49   : > { %v685_v37 = vsub.f32 1.0, %v684_v36 }
  0xab   : > { %v475_v38 = vpop.f32.mrf.mxu0 }
  0xac   : > { %v494_v39 = vpop.f32.mrf.mxu1 }
  0xb2   : > { %v605_v44 = vpop.f32.mrf.mxu2 }
  0xb3   : > { %v606_v46 = vadd.f32 %v605_v44, %v475_v38  ;;  %v624_v47 = vpop.f32.mrf.mxu3  ;;  %v477_v53 = vpop.f32.mrf.mxu0  ;;  %v686_v38 = vmul.f32 %v1176_v35, %v685_v37 }
  0xb4   : > { %v625_v49 = vadd.f32 %v624_v47, %v494_v39  ;;  %v496_v55 = vpop.f32.mrf.mxu1 }
  0xb5   : > { %v646_v51 = vadd.f32 %v638_v43, %v606_v46  ;;  %v687_v39 = vadd.f32 %v1176_v35, %v686_v38 }
  0xb6   : > { %v647_v52 = vadd.f32 %v639_v45, %v625_v49 }
  0xb7   : > { %v663_v56 = vadd.f32 %v661_v48, %v646_v51  ;;  %v1478_v40 = vsel %vm688_vm0, %v1176_v35, %v687_v39 }
  0xb8   : > { %v664_v57 = vadd.f32 %v662_v50, %v647_v52 }
  0xba   : > { %v607_v59 = vpop.f32.mrf.mxu2  ;;  %v671_v61 = vadd.f32 %v664_v57, %v663_v56 }
  0xbb   : > { %v608_v62 = vadd.f32 %v607_v59, %v477_v53  ;;  %v626_v63 = vpop.f32.mrf.mxu3  ;;  %v480_v5 = vpop.f32.mrf.mxu0 }
  0xbc   : > { %v627_v0 = vadd.f32 %v626_v63, %v496_v55  ;;  %672 = vadd.xlane.f32.xlu0 %v671_v61  ;;  %v499_v7 = vpop.f32.mrf.mxu1 }
  0xbd   : > { %v648_v1 = vadd.f32 %v640_v58, %v608_v62 }
  0xbe   : > { %v649_v2 = vadd.f32 %v641_v60, %v627_v0 }
  0xbf   : > { %v665_v4 = vadd.f32 %v661_v48, %v648_v1 }
  0xc0   : > { %v666_v6 = vadd.f32 %v662_v50, %v649_v2 }
  0xc2   : > { %v610_v9 = vpop.f32.mrf.mxu2  ;;  %v674_v11 = vadd.f32 %v666_v6, %v665_v4 }
  0xc3   : > { %v611_v12 = vadd.f32 %v610_v9, %v480_v5  ;;  %v629_v13 = vpop.f32.mrf.mxu3  ;;  %v482_v21 = vpop.f32.mrf.mxu0 }
  0xc4   : > { %v630_v14 = vadd.f32 %v629_v13, %v499_v7  ;;  %675 = vadd.xlane.f32.xlu0 %v674_v11  ;;  %v501_v25 = vpop.f32.mrf.mxu1  ;;  %v795_v13 = vld [vmem:[%s1570_s5] sm:$0x3] }
  0xc5   : > { %v650_v15 = vadd.f32 %v642_v8, %v611_v12  ;;  %v796_v17 = vunpack.c.l.bf16 %v795_v13 }
  0xc6   : > { %v651_v16 = vadd.f32 %v643_v10, %v630_v14  ;;  %v778_v10 = vld [vmem:[%s1569_s4] sm:$0x3] }
  0xc7   : > { %v667_v18 = vadd.f32 %v661_v48, %v650_v15  ;;  %v779_v15 = vunpack.c.l.bf16 %v778_v10 }
  0xc8   : > { %v668_v19 = vadd.f32 %v662_v50, %v651_v16 }
  0xca   : > { %v612_v22 = vpop.f32.mrf.mxu2  ;;  %v677_v24 = vadd.f32 %v668_v19, %v667_v18 }
  0xcb   : > { %v613_v26 = vadd.f32 %v612_v22, %v482_v21  ;;  %v631_v27 = vpop.f32.mrf.mxu3  ;;  %v782_v21 = vperm.slane %v779_v15, 2 }
  0xcc   : > { %v632_v28 = vadd.f32 %v631_v27, %v501_v25  ;;  %678 = vadd.xlane.f32.xlu1 %v677_v24  ;;  %v798_v25 = vperm.slane %v796_v17, 0 }
  0xcd   : > { %v652_v29 = vadd.f32 %v644_v20, %v613_v26  ;;  %v781_v20 = vperm.slane %v779_v15, 0  ;;  %v799_v26 = vperm.slane %v796_v17, 2 }
  0xce   : > { %v653_v30 = vadd.f32 %v645_v23, %v632_v28  ;;  %v802_v34 = vperm.slane %v798_v25, 0 }
  0xcf   : > { %v669_v31 = vadd.f32 %v661_v48, %v652_v29  ;;  %v803_v35 = vperm.slane %v799_v26, 0 }
  0xd0   : > { %v670_v32 = vadd.f32 %v662_v50, %v653_v30  ;;  %v1525_v30 = vperm.slane %v781_v20, 0 }
  0xd2   : > { %v680_v33 = vadd.f32 %v670_v32, %v669_v31 }
  0xd4   : > { %681 = vadd.xlane.f32.xlu1 %v680_v33 }
 0x12f   : > { %v673_v41 = vpop.xlane.xlu0 %672 }
 0x130   : > { %v690_v42 = vmul.f32 %v1478_v40, %v673_v41 }
 0x132   : > { %v1481_v43 = vsub.f32 %v663_v56, %v690_v42  ;;  %v1483_v44 = vsub.f32 %v664_v57, %v690_v42 }
 0x134   : > { %v702_v45 = vmul.f32 %v1481_v43, %v1481_v43  ;;  %v703_v46 = vmul.f32 %v1483_v44, %v1483_v44 }
 0x136   : > { %v710_v47 = vadd.f32 %v703_v46, %v702_v45 }
 0x137   : > { %v676_v48 = vpop.xlane.xlu0 %675 }
 0x138   : > { %v691_v49 = vmul.f32 %v1478_v40, %v676_v48  ;;  %711 = vadd.xlane.f32.xlu2 %v710_v47 }
 0x13a   : > { %v1490_v50 = vsub.f32 %v665_v4, %v691_v49  ;;  %v1492_v51 = vsub.f32 %v666_v6, %v691_v49 }
 0x13c   : > { %v704_v52 = vmul.f32 %v1490_v50, %v1490_v50  ;;  %v705_v53 = vmul.f32 %v1492_v51, %v1492_v51 }
 0x13e   : > { %v713_v54 = vadd.f32 %v705_v53, %v704_v52 }
 0x13f   : > { %v679_v55 = vpop.xlane.xlu1 %678 }
 0x140   : > { %v692_v56 = vmul.f32 %v1478_v40, %v679_v55  ;;  %714 = vadd.xlane.f32.xlu2 %v713_v54 }
 0x142   : > { %v1499_v57 = vsub.f32 %v667_v18, %v692_v56  ;;  %v1501_v58 = vsub.f32 %v668_v19, %v692_v56 }
 0x144   : > { %v706_v59 = vmul.f32 %v1499_v57, %v1499_v57  ;;  %v707_v60 = vmul.f32 %v1501_v58, %v1501_v58 }
 0x146   : > { %v716_v61 = vadd.f32 %v707_v60, %v706_v59 }
 0x147   : > { %v682_v62 = vpop.xlane.xlu1 %681 }
 0x148   : > { %v693_v63 = vmul.f32 %v1478_v40, %v682_v62  ;;  %717 = vadd.xlane.f32.xlu0 %v716_v61 }
 0x14a   : > { %v1508_v0 = vsub.f32 %v669_v31, %v693_v63  ;;  %v1510_v1 = vsub.f32 %v670_v32, %v693_v63  ;;  %v1527_v31 = vperm.slane %v782_v21, 0 }
 0x14c   : > { %v708_v2 = vmul.f32 %v1508_v0, %v1508_v0  ;;  %v709_v3 = vmul.f32 %v1510_v1, %v1510_v1 }
 0x14e   : > { %v719_v4 = vadd.f32 %v709_v3, %v708_v2 }
 0x150   : > { %720 = vadd.xlane.f32.xlu1 %v719_v4 }
 0x1ab   : > { %v712_v5 = vpop.xlane.xlu2 %711 }
 0x1ac   : > { %v722_v6 = vmul.f32 %v712_v5, %v1478_v40 }
 0x1ae   : > { %v726_v7 = vadd.f32 1e-05, %v722_v6 }
 0x1b0   : > { %1177 = vrsqrt.f32 %v726_v7  ;;  %vm736_vm2 = vweird.f32 %v726_v7 }
 0x1b3   : > { %v715_v8 = vpop.xlane.xlu2 %714 }
 0x1b4   : > { %v723_v9 = vmul.f32 %v715_v8, %v1478_v40 }
 0x1b6   : > { %v1178_v11 = vpop.eup %1177  ;;  %v727_v12 = vadd.f32 1e-05, %v723_v9 }
 0x1b7   : > { %v731_v14 = vmul.f32 %v1178_v11, %v726_v7  ;;  %vm737_vm1 = vweird.f32 %v1178_v11 }
 0x1b8   : > { %1179 = vrsqrt.f32 %v727_v12  ;;  %vm738_vm3 = vmor %vm736_vm2, %vm737_vm1  ;;  %vm746_vm5 = vweird.f32 %v727_v12 }
 0x1b9   : > { %v732_v16 = vmul.f32 %v1178_v11, %v731_v14 }
 0x1bb   : > { %v733_v18 = vmul.f32 0.5, %v732_v16  ;;  %v718_v19 = vpop.xlane.xlu0 %717 }
 0x1bc   : > { %v724_v22 = vmul.f32 %v718_v19, %v1478_v40 }
 0x1bd   : > { %v734_v23 = vsub.f32 1.5, %v733_v18 }
 0x1be   : > { %v1180_v24 = vpop.eup %1179  ;;  %v728_v27 = vadd.f32 1e-05, %v724_v22 }
 0x1bf   : > { %v735_v28 = vmul.f32 %v1178_v11, %v734_v23  ;;  %v741_v29 = vmul.f32 %v1180_v24, %v727_v12  ;;  %vm747_vm4 = vweird.f32 %v1180_v24 }
 0x1c0   : > { %1181 = vrsqrt.f32 %v728_v27  ;;  %vm748_vm6 = vmor %vm746_vm5, %vm747_vm4  ;;  %vm756_vm8 = vweird.f32 %v728_v27 }
 0x1c1   : > { %v739_v32 = vsel %vm738_vm3, %v1178_v11, %v735_v28  ;;  %v742_v33 = vmul.f32 %v1180_v24, %v741_v29 }
 0x1c2   : > { %v770_v36 = vmul.f32 %v739_v32, %v1481_v43  ;;  %v771_v37 = vmul.f32 %v739_v32, %v1483_v44 }
 0x1c3   : > { %v743_v38 = vmul.f32 0.5, %v742_v33  ;;  %v721_v39 = vpop.xlane.xlu1 %720 }
 0x1c4   : > { %v787_v41 = vmul.f32 %v1525_v30, %v770_v36  ;;  %v788_v42 = vmul.f32 %v1527_v31, %v771_v37  ;;  %v725_v45 = vmul.f32 %v721_v39, %v1478_v40 }
 0x1c5   : > { %v744_v46 = vsub.f32 1.5, %v743_v38 }
 0x1c6   : > { %v1182_v47 = vpop.eup %1181  ;;  %v804_v48 = vadd.f32 %v802_v34, %v787_v41  ;;  %v805_v49 = vadd.f32 %v803_v35, %v788_v42  ;;  %v729_v52 = vadd.f32 1e-05, %v725_v45 }
 0x1c7   : > { %v745_v43 = vmul.f32 %v1180_v24, %v744_v46  ;;  %v751_v44 = vmul.f32 %v1182_v47, %v728_v27  ;;  %vm757_vm7 = vweird.f32 %v1182_v47 }
 0x1c8   : > { %v812_v53 = vpack.c.bf16 %v805_v49, %v804_v48  ;;  %1183 = vrsqrt.f32 %v729_v52  ;;  %vm758_vm9 = vmor %vm756_vm8, %vm757_vm7  ;;  %vm766_vm11 = vweird.f32 %v729_v52 }
 0x1c9   : > { %v749_v54 = vsel %vm748_vm6, %v1180_v24, %v745_v43  ;;  %v752_v40 = vmul.f32 %v1182_v47, %v751_v44 }
 0x1ca   : > { %816 = vst [vmem:[%s1538_s27] sm:$0xff] %v812_v53  ;;  %v772_v55 = vmul.f32 %v749_v54, %v1490_v50  ;;  %v773_v56 = vmul.f32 %v749_v54, %v1492_v51 }
 0x1cb   : > { %v753_v59 = vmul.f32 0.5, %v752_v40 }
 0x1cc   : > { %v789_v60 = vmul.f32 %v1525_v30, %v772_v55  ;;  %v790_v61 = vmul.f32 %v1527_v31, %v773_v56 }
 0x1cd   : > { %v754_v62 = vsub.f32 1.5, %v753_v59 }
 0x1ce   : > { %v1184_v63 = vpop.eup %1183  ;;  %v806_v2 = vadd.f32 %v802_v34, %v789_v60  ;;  %v807_v3 = vadd.f32 %v803_v35, %v790_v61 }
 0x1cf   : > { %v755_v4 = vmul.f32 %v1182_v47, %v754_v62  ;;  %v761_v5 = vmul.f32 %v1184_v63, %v729_v52  ;;  %vm767_vm10 = vweird.f32 %v1184_v63 }
 0x1d0   : > { %v813_v6 = vpack.c.bf16 %v807_v3, %v806_v2  ;;  %vm768_vm12 = vmor %vm766_vm11, %vm767_vm10 }
 0x1d1   : > { %v759_v7 = vsel %vm758_vm9, %v1182_v47, %v755_v4  ;;  %v762_v50 = vmul.f32 %v1184_v63, %v761_v5 }
 0x1d2   : > { %817 = vst [vmem:[%s1538_s27 + $0x8] sm:$0xff] %v813_v6  ;;  %v774_v51 = vmul.f32 %v759_v7, %v1499_v57  ;;  %v775_v8 = vmul.f32 %v759_v7, %v1501_v58 }
 0x1d3   : > { %v763_v9 = vmul.f32 0.5, %v762_v50 }
 0x1d4   : > { %v791_v10 = vmul.f32 %v1525_v30, %v774_v51  ;;  %v792_v11 = vmul.f32 %v1527_v31, %v775_v8 }
 0x1d5   : > { %v764_v12 = vsub.f32 1.5, %v763_v9 }
 0x1d6   : > { %v808_v13 = vadd.f32 %v802_v34, %v791_v10  ;;  %v809_v14 = vadd.f32 %v803_v35, %v792_v11 }
 0x1d7   : > { %v765_v15 = vmul.f32 %v1184_v63, %v764_v12 }
 0x1d8   : > { %v814_v16 = vpack.c.bf16 %v809_v14, %v808_v13 }
 0x1d9   : > { %v769_v17 = vsel %vm768_vm12, %v1184_v63, %v765_v15 }
 0x1da   : > { %818 = vst [vmem:[%s1538_s27 + $0x10] sm:$0xff] %v814_v16  ;;  %v776_v57 = vmul.f32 %v769_v17, %v1508_v0  ;;  %v777_v58 = vmul.f32 %v769_v17, %v1510_v1 }
 0x1dc   : > { %v793_v18 = vmul.f32 %v1525_v30, %v776_v57  ;;  %v794_v19 = vmul.f32 %v1527_v31, %v777_v58 }
 0x1de   : > { %v810_v20 = vadd.f32 %v802_v34, %v793_v18  ;;  %v811_v21 = vadd.f32 %v803_v35, %v794_v19 }
 0x1e0   : > { %v815_v22 = vpack.c.bf16 %v811_v21, %v810_v20 }
 0x1e2   : > { %819 = vst [vmem:[%s1538_s27 + $0x18] sm:$0xff] %v815_v22 }
 0x1e3 PF: > { %s16_s23 = sadd.s32 1, %s1207_s23   ;;  %s1572_s21 = smov %s1203_s22 }
 0x1e4   : > { %p13_p5 = scmp.ge.s32.totalorder %s16_s23, 4   ;;  %s1573_s22 = smov %s1575_s24 }
 0x1e6   :  { %15 = sbr.rel (!%p13_p5) target bundleno = 2 (0x2), region = 79 }

// kernel: transformer_encoder_layer.5
= control target key start
LH: loop header
LB: loop body
LE: loop exit
PB: predicated region body
PF: predicated region fallthrough
CT: control target
= control target key end

     0   :  { %s825_s12 = smov 0   ;;  %s827_s13 = smov 0   ;;  %s920_s0 = inlined_call_operand.vmem [shape: bf16[3,4,32,128], index: 0, kind: input, shape index: {}, may-alias: {0,1,2}]   ;;  %s921_s1 = inlined_call_operand.vmem [shape: bf16[3,4,32,128], index: 1, kind: input, shape index: {}, may-alias: {0,1,2}]   ;;  %s922_s2 = inlined_call_operand.vmem [shape: bf16[3,4,32,128], index: 2, kind: input, shape index: {}, may-alias: {0,1,2}]   ;;  %s923_s3 = inlined_call_operand.vmem [shape: bf16[4,32,128], index: 3, kind: output, shape index: {}]  }
   0x1   :  { %s829_s14 = smov 0   ;;  %s831_s15 = smov 0  }
   0x2   :  { %s833_s16 = smov 0   ;;  %s835_s17 = smov 0  }
   0x3   :  { %s837_s18 = smov 0  }
   0x4 LB: > { %s25_s19 = sadd.s32 1, %s787_s15  ;;  %s28_s20 = sadd.s32 1, %s791_s16  ;;  %s799_s18 = sphi %s837_s18, %s13_s18   ;;  %s795_s17 = sphi %s835_s17, %s929_s17   ;;  %s791_s16 = sphi %s833_s16, %s928_s16   ;;  %s787_s15 = sphi %s831_s15, %s927_s15   ;;  %s783_s14 = sphi %s829_s14, %s926_s14   ;;  %s779_s13 = sphi %s827_s13, %s925_s13   ;;  %s775_s12 = sphi %s825_s12, %s924_s12  }
   0x5   : > { %p26_p0 = scmp.ge.s32.totalorder %s25_s19, 2  ;;  %p627_p1 = scmp.ge.s32.totalorder %s799_s18, 1 }
   0x6   : > { %p201_p2 = scmp.lt.s32.totalorder %s799_s18, 17  ;;  %s32_s21 = sadd.s32 1, %s795_s17 }
   0x7   : > { %s931_s19 = smov (%p26_p0, %s25_s19), 0  ;;  %s933_s20 = smov (!%p26_p0, %s28_s20), %s791_s16 }
   0x8   : > { %p202_p3 = pnand %p627_p1, %p201_p2  ;;  %p30_p4 = scmp.ge.s32.totalorder %s933_s20, 2 }
   0x9   : > { %s628_s22 = sshll.u32 (!%p202_p3), %s779_s13, 1  ;;  %p254_p6 = scmp.lt.s32.totalorder (!%p202_p3), %s783_s14, 3 }
   0xa   : > { %s935_s20 = smov (%p30_p4, %s933_s20), 0  ;;  %s937_s21 = smov (!%p30_p4, %s32_s21), %s795_s17 }
   0xb   : > { %p34_p5 = scmp.ge.s32.totalorder %s937_s21, 4  ;;  %205 = sbr.rel (%p202_p3) target bundleno = 709 (0x2c5), region = 32 }
   0xc   : > { %p256_p7 = scmp.lt.s32.totalorder (!%p202_p3), %s628_s22, 3  ;;  %s631_s23 = sshll.u32 (!%p202_p3), %s775_s12, 1 }
   0xd   : > { %s939_s21 = smov (%p34_p5, %s937_s21), 0  ;;  %p266_p8 = scmp.lt.s32.totalorder (!%p202_p3), %s631_s23, 3 }
   0xe   : > { %p640_p9 = scmp.ne.s32.totalorder (!%p202_p3), %s775_s12, 0 }
  0x10   : > { %s941_s14 = smov (!%p254_p6, %s783_s14), 3  ;;  %s943_s22 = smov (!%p256_p7, %s628_s22), 3 }
  0x11   : > { %s629_s24 = sshll.u32 %s941_s14, 2  ;;  %s945_s23 = smov (!%p266_p8, %s631_s23), 3 }
  0x12   : > { %s259_s25 = sadd.s32 %s629_s24, %s943_s22  ;;  %s552_s6 = sadd.s32 %s629_s24, %s945_s23 }
  0x13   : > { %s630_s26 = sshll.u32 %s259_s25, 2  ;;  %s633_s7 = sshll.u32 %s552_s6, 2 }
  0x14   : > { %s261_s29 = scalar_lea.vmem %s920_s0, %s630_s26  ;;  %s876_s5 = scalar_lea.vmem %s923_s3, %s630_s26 }
  0x15   : > { %s554_s10 = scalar_lea.vmem %s921_s1, %s633_s7  ;;  %s884_s14 = scalar_lea.vmem %s922_s2, %s633_s7 }
  0x16   : > { %299 = sbr.rel (%p640_p9) target bundleno = 34 (0x22), region = 36 }
  0x1b   : > { %vm300_vm0 = vcmask 7168   ;;  %v801_v0 = vmov -inf   ;;  %v802_v1 = vmov 0.0  }
  0x1c   : > { %301 = vst.msk [vmem:[#allocation2] sm:$0xff] %vm300_vm0, %v801_v0 }
  0x1d   : > { %302 = vst.msk [vmem:[#allocation2 + $0x8] sm:$0xff] %vm300_vm0, %v801_v0 }
  0x1e   : > { %303 = vst.msk [vmem:[#allocation3] sm:$0xff] %vm300_vm0, %v802_v1 }
  0x1f   : > { %304 = vst.msk [vmem:[#allocation3 + $0x8] sm:$0xff] %vm300_vm0, %v802_v1 }
  0x20   : > { %305 = vst [vmem:[#allocation4] sm:$0xff] %v802_v1 }
  0x21   : > { %306 = vst [vmem:[#allocation4 + $0x8] sm:$0xff] %v802_v1 }
  0x22 PF: > { %v662_v2 = vld [vmem:[%s554_s10 + $0x40] sm:$0xff]  ;;  %vm341_vm1 = vcmask 130048   ;;  %v803_v10 = vmov 0   ;;  %vm384_vm2 = vcmask 7168   ;;  %p658_p10 = scmp.ne.s32.totalorder %s775_s12, 1 }
  0x23   : > { %330 = vmatpush.bf16.xpose.msra.mxu0 %v662_v2  ;;  %v661_v3 = vld [vmem:[%s261_s29] sm:$0xff]  ;;  %729 = vset.pattern.permute.xlu1 %v803_v10 }
  0x24   : > { %730 = vset.pattern.permute.xlu2 %v803_v10  ;;  %731 = vset.pattern.permute.xlu0 %v803_v10  ;;  %v339_v11 = vld [vmem:[#allocation2] sm:$0xff]  ;;  %v340_v16 = vld [vmem:[#allocation2 + $0x8] sm:$0xff] }
  0x25   : > { %v663_v23 = vld [vmem:[%s884_s14 + $0x80] sm:$0xff]  ;;  %v372_v35 = vld [vmem:[#allocation3] sm:$0xff] }
  0x26   : > { %420 = vmatpush.bf16.msra.mxu1 %v663_v23  ;;  %v373_v39 = vld [vmem:[#allocation3 + $0x8] sm:$0xff] }
  0x27   : > { %v387_v44 = vld [vmem:[#allocation4] sm:$0xff] }
  0x28   : > { %v388_v48 = vld [vmem:[#allocation4 + $0x8] sm:$0xff] }
  0x2a   : > { %331 = vmatmul.bf16.vlgmr.msra.gmra.mxu0 %v661_v3 }
  0xa7   : > { %v332_v4 = vpop.f32.mrf.mxu0 }
  0xa8   : > { %v337_v5 = vmul.f32 0.088388346, %v332_v4 }
  0xaa   : > { %v342_v6 = vsel %vm341_vm1, %v337_v5, -inf }
  0xab   : > { %343 = vmax.xlane.f32.xlu0 %v342_v6 }
  0xaf   : > { %v334_v7 = vpop.f32.mrf.mxu0 }
  0xb0   : > { %v338_v8 = vmul.f32 0.088388346, %v334_v7 }
  0xb2   : > { %v345_v9 = vsel %vm341_vm1, %v338_v8, -inf }
  0xb3   : > { %346 = vmax.xlane.f32.xlu0 %v345_v9 }
 0x11e   : > { %v344_v12 = vpop.xlane.xlu0 %343 }
 0x11f   : > { %v348_v13 = vmax.f32 %v339_v11, %v344_v12 }
 0x121   : > { %v350_v14 = vsub.f32 %v339_v11, %v348_v13  ;;  %431 = vst.msk [vmem:[#allocation2] sm:$0xff] %vm384_vm2, %v348_v13  ;;  %358 = vperm.xlu1 %729, %v348_v13  }
 0x123   : > { %v352_v15 = vmul.f32 1.442695, %v350_v14 }
 0x125   : > { %732 = vpow2.f32 %v352_v15 }
 0x126   : > { %v347_v17 = vpop.xlane.xlu0 %346 }
 0x127   : > { %v349_v18 = vmax.f32 %v340_v16, %v347_v17 }
 0x129   : > { %v351_v19 = vsub.f32 %v340_v16, %v349_v18  ;;  %432 = vst.msk [vmem:[#allocation2 + $0x8] sm:$0xff] %vm384_vm2, %v349_v18  ;;  %363 = vperm.xlu1 %729, %v349_v18  }
 0x12b   : > { %v733_v20 = vpop.eup %732  ;;  %v354_v21 = vmul.f32 1.442695, %v351_v19 }
 0x12c   : > { %391 = vperm.xlu2 %730, %v733_v20   ;;  %v374_v36 = vmul.f32 %v733_v20, %v372_v35 }
 0x12d   : > { %734 = vpow2.f32 %v354_v21 }
 0x133   : > { %v735_v22 = vpop.eup %734 }
 0x134   : > { %396 = vperm.xlu2 %730, %v735_v22   ;;  %v375_v40 = vmul.f32 %v735_v22, %v373_v39 }
 0x186   : > { %v392_v43 = vpop.permute.xlu2 %391 }
 0x187   : > { %v399_v45 = vmul.f32 %v392_v43, %v387_v44 }
 0x18e   : > { %v397_v49 = vpop.permute.xlu2 %396 }
 0x18f   : > { %v400_v50 = vmul.f32 %v397_v49, %v388_v48 }
 0x193   : > { %v359_v24 = vpop.permute.xlu1 %358 }
 0x194   : > { %v366_v25 = vsub.f32 %v337_v5, %v359_v24 }
 0x196   : > { %v368_v26 = vmul.f32 1.442695, %v366_v25 }
 0x198   : > { %736 = vpow2.f32 %v368_v26 }
 0x19b   : > { %v364_v27 = vpop.permute.xlu1 %363 }
 0x19c   : > { %v367_v28 = vsub.f32 %v338_v8, %v364_v27 }
 0x19e   : > { %v737_v29 = vpop.eup %736  ;;  %v370_v30 = vmul.f32 1.442695, %v367_v28 }
 0x19f   : > { %v376_v31 = vsel %vm341_vm1, %v737_v29, 0.0 }
 0x1a0   : > { %738 = vpow2.f32 %v370_v30  ;;  %377 = vadd.xlane.f32.xlu0 %v376_v31 }
 0x1a6   : > { %v739_v32 = vpop.eup %738 }
 0x1a7   : > { %v379_v33 = vsel %vm341_vm1, %v739_v32, 0.0  ;;  %v401_v34 = vpack.c.bf16 %v739_v32, %v737_v29 }
 0x1a8   : > { %380 = vadd.xlane.f32.xlu1 %v379_v33 }
 0x1a9   : > { %657 = vmatmul.msk.bf16.vlgmr.msra.gmra.mxu1 %vm341_vm1, %v401_v34 }
 0x213   : > { %v378_v37 = vpop.xlane.xlu0 %377 }
 0x214   : > { %v382_v38 = vadd.f32 %v378_v37, %v374_v36 }
 0x216   : > { %385 = vst.msk [vmem:[#allocation3] sm:$0xff] %vm384_vm2, %v382_v38 }
 0x21b   : > { %v381_v41 = vpop.xlane.xlu1 %380 }
 0x21c   : > { %v383_v42 = vadd.f32 %v381_v41, %v375_v40 }
 0x21e   : > { %386 = vst.msk [vmem:[#allocation3 + $0x8] sm:$0xff] %vm384_vm2, %v383_v42 }
 0x226   : > { %v422_v46 = vpop.f32.mrf.mxu1 }
 0x227   : > { %v427_v47 = vadd.f32 %v422_v46, %v399_v45 }
 0x229   : > { %429 = vst [vmem:[#allocation4] sm:$0xff] %v427_v47 }
 0x22d   : > { %436 = sbr.rel (%p658_p10) target bundleno = 709 (0x2c5), region = 40 }
 0x22e   : > { %v424_v51 = vpop.f32.mrf.mxu1 }
 0x22f   : > { %v428_v52 = vadd.f32 %v424_v51, %v400_v50 }
 0x231   : > { %430 = vst [vmem:[#allocation4 + $0x8] sm:$0xff] %v428_v52 }
 0x232   : > { %v439_v53 = vld [vmem:[#allocation3] sm:$0xff]  ;;  %v804_v54 = vmov 0   ;;  %v440_v55 = vld [vmem:[#allocation3 + $0x8] sm:$0xff]  ;;  %v437_v10 = vld [vmem:[#allocation4] sm:$0xff] }
 0x233   : > { %740 = vset.pattern.permute.xlu0 %v804_v54 }
 0x234   : > { %443 = vperm.xlu0 %740, %v439_v53  }
 0x238   : > { %v438_v12 = vld [vmem:[#allocation4 + $0x8] sm:$0xff] }
 0x23c   : > { %448 = vperm.xlu0 %740, %v440_v55  }
 0x2a6   : > { %v444_v56 = vpop.permute.xlu0 %443 }
 0x2a7   : > { %741 = vrcp.f32 %v444_v56  ;;  %v462_v1 = vand.u32 2147483648, %v444_v56  ;;  %vm456_vm4 = vweird.f32 %v444_v56  ;;  %v460_v2 = vand.u32 2147483647, %v444_v56 }
 0x2a9   : > { %v463_v8 = vor.u32 1.1754944e-38, %v462_v1  ;;  %vm461_vm7 = vcmp.eq.f32.partialorder %v460_v2, 8.507059e+37 }
 0x2ad   : > { %v742_v57 = vpop.eup %741 }
 0x2ae   : > { %v452_v58 = vmul.f32 %v742_v57, %v444_v56  ;;  %v449_v59 = vpop.permute.xlu0 %448  ;;  %vm457_vm3 = vweird.f32 %v742_v57 }
 0x2af   : > { %743 = vrcp.f32 %v449_v59  ;;  %vm458_vm5 = vmor %vm456_vm4, %vm457_vm3  ;;  %v477_v4 = vand.u32 2147483648, %v449_v59  ;;  %v475_v7 = vand.u32 2147483647, %v449_v59  ;;  %vm471_vm8 = vweird.f32 %v449_v59 }
 0x2b0   : > { %v453_v60 = vsub.f32 1.0, %v452_v58 }
 0x2b1   : > { %v478_v13 = vor.u32 1.1754944e-38, %v477_v4  ;;  %vm476_vm10 = vcmp.eq.f32.partialorder %v475_v7, 8.507059e+37 }
 0x2b2   : > { %v454_v61 = vmul.f32 %v742_v57, %v453_v60 }
 0x2b4   : > { %v455_v63 = vadd.f32 %v742_v57, %v454_v61 }
 0x2b5   : > { %v744_v62 = vpop.eup %743 }
 0x2b6   : > { %v467_v0 = vmul.f32 %v744_v62, %v449_v59  ;;  %v459_v5 = vsel %vm458_vm5, %v742_v57, %v455_v63  ;;  %vm472_vm6 = vweird.f32 %v744_v62 }
 0x2b7   : > { %v464_v11 = vsel %vm461_vm7, %v463_v8, %v459_v5  ;;  %vm473_vm9 = vmor %vm471_vm8, %vm472_vm6 }
 0x2b8   : > { %v468_v3 = vsub.f32 1.0, %v467_v0  ;;  %v465_v16 = vmul.f32 %v464_v11, %v437_v10 }
 0x2ba   : > { %v469_v6 = vmul.f32 %v744_v62, %v468_v3 }
 0x2bc   : > { %v470_v9 = vadd.f32 %v744_v62, %v469_v6 }
 0x2be   : > { %v474_v14 = vsel %vm473_vm9, %v744_v62, %v470_v9 }
 0x2bf   : > { %v479_v15 = vsel %vm476_vm10, %v478_v13, %v474_v14 }
 0x2c0   : > { %v480_v17 = vmul.f32 %v479_v15, %v438_v12 }
 0x2c2   : > { %v667_v18 = vpack.c.bf16 %v480_v17, %v465_v16 }
 0x2c4   : > { %668 = vst [vmem:[%s876_s5] sm:$0xff] %v667_v18  }
 0x2c5 PF: > { %s13_s18 = sadd.s32 1, %s799_s18   ;;  %s924_s12 = smov %s787_s15 }
 0x2c6   : > { %p10_p11 = scmp.ge.s32.totalorder %s13_s18, 18   ;;  %s925_s13 = smov %s791_s16 }
 0x2c7   : > { %s926_s14 = smov %s795_s17  ;;  %s927_s15 = smov %s931_s19 }
 0x2c8   : > { %s928_s16 = smov %s935_s20  ;;  %s929_s17 = smov %s939_s21 }
 0x2c9   :  { %12 = sbr.rel (!%p10_p11) target bundleno = 4 (0x4), region = 76 }

// kernel: transformer_encoder_layer.4
= control target key start
LH: loop header
LB: loop body
LE: loop exit
PB: predicated region body
PF: predicated region fallthrough
CT: control target
= control target key end

     0   :  { %10 = vsyncpa [#allocation3], 0  ;;  %s2267_s0 = inlined_call_operand.vmem [shape: bf16[64,256], index: 0, kind: input, shape index: {}]   ;;  %s2268_s1 = inlined_call_operand.vmem [shape: bf16[64,128], index: 1, kind: input, shape index: {}]   ;;  %s2269_s2 = inlined_call_operand.vmem [shape: bf16[64,128], index: 2, kind: input, shape index: {}]   ;;  %s2270_s3 = inlined_call_operand.hbm [shape: bf16[256,768], index: 3, kind: input, shape index: {}]   ;;  %s2271_s4 = inlined_call_operand.hbm [shape: bf16[1,768], index: 4, kind: input, shape index: {}]   ;;  %s2272_s5 = inlined_call_operand.vmem [shape: bf16[64,768], index: 5, kind: output, shape index: {}]  }
   0x1   :  { %11 = vsyncpa [#allocation5], 0  ;;  %s2009_s18 = smov 0  }
   0x2 LB: > { %s179_s21 = sshll.u32 %s2270_s3, 4  ;;  %s1348_s22 = sadd.s32 4294967295, %s1973_s18   ;;  %s1973_s18 = sphi %s2009_s18, %s17_s18   ;;  %s180_s21 = int_to_ptr.hbm [resolvable:$true] %s179_s21 }
   0x3   : > { %p1350_p0 = scmp.ge.s32.totalorder %s1973_s18, 1  ;;  %p168_p1 = scmp.lt.s32.totalorder %s1973_s18, 3 }
   0x4   : > { %p2020_p2 = scmp.eq.s32.totalorder %s1348_s22, 0  ;;  %s1975_s25 = smov [#allocation2]  }
   0x5   : > { %p2024_p3 = pnand %p1350_p0, %p168_p1  ;;  %s181_s26 = sshll.u32 %s1975_s25, 4  ;;  %s182_s26 = int_to_ptr.vmem [resolvable:$true] %s181_s26 }
   0x6   : > { %s194_s29 = sshll.u32 %s2271_s4, 4  ;;  %s1976_s30 = smov [#allocation4]   ;;  %s195_s29 = int_to_ptr.hbm [resolvable:$true] %s194_s29 }
   0x7   : > { %p1876_p4 = pneg %p2024_p3  ;;  %s196_s6 = sshll.u32 %s1976_s30, 4  ;;  %s197_s6 = int_to_ptr.vmem [resolvable:$true] %s196_s6 }
   0x8   : > { %s1977_s7 = smov 384   ;;  %s1978_s8 = smov 24  }
   0x9   : > { %p1877_p5 = pnand %p2020_p2, %p1876_p4  ;;  %237 = sbr.rel (%p2024_p3) target bundleno = 283 (0x11b), region = 40 }
   0xb   : > { %1879 = dma.hbm_to_vmem [thread:$0]  (!%p1877_p5), %s180_s21, 12288, %s182_s26, [#allocation3], %s1977_s7, %s1977_s7, %s1978_s8  }
   0xc   : > { %1882 = dma.hbm_to_vmem [thread:$0]  (!%p1877_p5), %s195_s29, 96, %s197_s6, [#allocation5]  }
   0xe   : > { %1964 = dma.done.wait (%p2020_p2), [#allocation3], 12288  }
   0xf   : > { %1966 = vsyncadd (%p2020_p2), [#allocation3], 4294955008 }
  0x10   : > { %1968 = dma.done.wait (%p2020_p2), [#allocation5], 96  }
  0x11   : > { %1970 = vsyncadd (%p2020_p2), [#allocation5], 4294967200  ;;  %s2045_s9 = sshll.u32 %s1348_s22, 2  ;;  %v1536_v0 = vld [vmem:[#allocation2 + $0x2d0] sm:$0xf] }
  0x12   : > { %p284_p6 = scmp.lt.s32.totalorder %s2045_s9, 7  ;;  %v1846_v1 = vld [vmem:[#allocation2 + $0x2e4] sm:$0xf0]  ;;  %v1843_v2 = vld [vmem:[#allocation2 + $0x2d4] sm:$0xf] }
  0x13   : > { %v1537_v3 = vor.u32 %v1846_v1, %v1536_v0  ;;  %v1538_v4 = vld [vmem:[#allocation2 + $0x2e8] sm:$0xf0]  ;;  %v1544_v5 = vld [vmem:[#allocation2 + $0x2d8] sm:$0xf]  ;;  %v1847_v6 = vld [vmem:[#allocation2 + $0x2ec] sm:$0xf0] }
  0x14   : > { %v1541_v7 = vor.u32 %v1843_v2, %v1538_v4  ;;  %v1545_v8 = vor.u32 %v1847_v6, %v1544_v5  ;;  %v1844_v9 = vld [vmem:[#allocation2 + $0x2dc] sm:$0xf]  ;;  %v1546_v10 = vld [vmem:[#allocation2 + $0x2f0] sm:$0xf0]  ;;  %v1512_v11 = vld [vmem:[#allocation2 + $0x2a0] sm:$0xf] }
  0x15   : > { %705 = vmatpush.bf16.msra.mxu0 %v1537_v3  ;;  %v1549_v12 = vor.u32 %v1844_v9, %v1546_v10  ;;  %v1840_v13 = vld [vmem:[#allocation2 + $0x2b4] sm:$0xf0]  ;;  %v1837_v14 = vld [vmem:[#allocation2 + $0x2a4] sm:$0xf]  ;;  %v1514_v15 = vld [vmem:[#allocation2 + $0x2b8] sm:$0xf0] }
  0x16   : > { %724 = vmatpush.bf16.msra.mxu1 %v1541_v7  ;;  %743 = vmatpush.bf16.msra.mxu2 %v1545_v8  ;;  %v1513_v16 = vor.u32 %v1840_v13, %v1512_v11  ;;  %v1517_v17 = vor.u32 %v1837_v14, %v1514_v15  ;;  %v1520_v18 = vld [vmem:[#allocation2 + $0x2a8] sm:$0xf]  ;;  %v1841_v19 = vld [vmem:[#allocation2 + $0x2bc] sm:$0xf0]  ;;  %v1838_v20 = vld [vmem:[#allocation2 + $0x2ac] sm:$0xf] }
  0x17   : > { %762 = vmatpush.bf16.msra.mxu3 %v1549_v12  ;;  %v1521_v21 = vor.u32 %v1841_v19, %v1520_v18  ;;  %v1522_v22 = vld [vmem:[#allocation2 + $0x2c0] sm:$0xf0]  ;;  %v1488_v23 = vld [vmem:[#allocation2 + $0x270] sm:$0xf]  ;;  %v1834_v24 = vld [vmem:[#allocation2 + $0x284] sm:$0xf0] }
  0x18   : > { %v1525_v25 = vor.u32 %v1838_v20, %v1522_v22  ;;  %v1831_v26 = vld [vmem:[#allocation2 + $0x274] sm:$0xf]  ;;  %v1490_v27 = vld [vmem:[#allocation2 + $0x288] sm:$0xf0]  ;;  %v1496_v28 = vld [vmem:[#allocation2 + $0x278] sm:$0xf]  ;;  %v1489_v29 = vor.u32 %v1834_v24, %v1488_v23 }
  0x19   : > { %706 = vmatpush.bf16.msra.mxu0 %v1513_v16  ;;  %v1835_v30 = vld [vmem:[#allocation2 + $0x28c] sm:$0xf0]  ;;  %v1832_v31 = vld [vmem:[#allocation2 + $0x27c] sm:$0xf]  ;;  %v1498_v32 = vld [vmem:[#allocation2 + $0x290] sm:$0xf0]  ;;  %v1493_v33 = vor.u32 %v1831_v26, %v1490_v27 }
  0x1a   : > { %725 = vmatpush.bf16.msra.mxu1 %v1517_v17  ;;  %744 = vmatpush.bf16.msra.mxu2 %v1521_v21  ;;  %v1497_v34 = vor.u32 %v1835_v30, %v1496_v28  ;;  %v1464_v35 = vld [vmem:[#allocation2 + $0x240] sm:$0xf]  ;;  %v1828_v36 = vld [vmem:[#allocation2 + $0x254] sm:$0xf0]  ;;  %v1825_v37 = vld [vmem:[#allocation2 + $0x244] sm:$0xf]  ;;  %v1501_v38 = vor.u32 %v1832_v31, %v1498_v32 }
  0x1b   : > { %763 = vmatpush.bf16.msra.mxu3 %v1525_v25  ;;  %v1466_v39 = vld [vmem:[#allocation2 + $0x258] sm:$0xf0]  ;;  %v1472_v40 = vld [vmem:[#allocation2 + $0x248] sm:$0xf]  ;;  %v1829_v41 = vld [vmem:[#allocation2 + $0x25c] sm:$0xf0]  ;;  %v1465_v44 = vor.u32 %v1828_v36, %v1464_v35 }
  0x1c   : > { %v1826_v42 = vld [vmem:[#allocation2 + $0x24c] sm:$0xf]  ;;  %v1474_v43 = vld [vmem:[#allocation2 + $0x260] sm:$0xf0]  ;;  %s2276_s9 = smov (!%p284_p6, %s2045_s9), 7  ;;  %v1469_v45 = vor.u32 %v1825_v37, %v1466_v39  ;;  %v1473_v46 = vor.u32 %v1829_v41, %v1472_v40 }
  0x1d   : > { %707 = vmatpush.bf16.msra.mxu0 %v1489_v29  ;;  %v1440_v47 = vld [vmem:[#allocation2 + $0x210] sm:$0xf]  ;;  %v1822_v48 = vld [vmem:[#allocation2 + $0x224] sm:$0xf0]  ;;  %v1819_v49 = vld [vmem:[#allocation2 + $0x214] sm:$0xf]  ;;  %v1477_v50 = vor.u32 %v1826_v42, %v1474_v43 }
  0x1e   : > { %726 = vmatpush.bf16.msra.mxu1 %v1493_v33  ;;  %745 = vmatpush.bf16.msra.mxu2 %v1497_v34  ;;  %v1442_v51 = vld [vmem:[#allocation2 + $0x228] sm:$0xf0]  ;;  %v1448_v52 = vld [vmem:[#allocation2 + $0x218] sm:$0xf]  ;;  %v1823_v53 = vld [vmem:[#allocation2 + $0x22c] sm:$0xf0]  ;;  %v1441_v56 = vor.u32 %v1822_v48, %v1440_v47 }
  0x1f   : > { %764 = vmatpush.bf16.msra.mxu3 %v1501_v38  ;;  %v1820_v54 = vld [vmem:[#allocation2 + $0x21c] sm:$0xf]  ;;  %v1450_v55 = vld [vmem:[#allocation2 + $0x230] sm:$0xf0]  ;;  %s1752_s10 = sshll.u32 %s2276_s9, 3  ;;  %s1361_s11 = sshll.u32 %s2276_s9, 2  ;;  %v1445_v57 = vor.u32 %v1819_v49, %v1442_v51  ;;  %v1449_v58 = vor.u32 %v1823_v53, %v1448_v52 }
  0x20   : > { %v1416_v59 = vld [vmem:[#allocation2 + $0x1e0] sm:$0xf]  ;;  %v1816_v60 = vld [vmem:[#allocation2 + $0x1f4] sm:$0xf0]  ;;  %v1813_v61 = vld [vmem:[#allocation2 + $0x1e4] sm:$0xf]  ;;  %v1453_v62 = vor.u32 %v1820_v54, %v1450_v55  ;;  %s2058_s14 = scalar_lea.vmem %s2267_s0, %s1752_s10  ;;  %s2063_s17 = scalar_lea.vmem %s2268_s1, %s1361_s11 }
  0x21   : > { %708 = vmatpush.bf16.msra.mxu0 %v1465_v44  ;;  %v1418_v63 = vld [vmem:[#allocation2 + $0x1f8] sm:$0xf0]  ;;  %v1424_v0 = vld [vmem:[#allocation2 + $0x1e8] sm:$0xf]  ;;  %v1817_v1 = vld [vmem:[#allocation2 + $0x1fc] sm:$0xf0]  ;;  %v1417_v4 = vor.u32 %v1816_v60, %v1416_v59  ;;  %s2068_s21 = scalar_lea.vmem %s2269_s2, %s1361_s11 }
  0x22   : > { %727 = vmatpush.bf16.msra.mxu1 %v1469_v45  ;;  %746 = vmatpush.bf16.msra.mxu2 %v1473_v46  ;;  %v1814_v2 = vld [vmem:[#allocation2 + $0x1ec] sm:$0xf]  ;;  %v1426_v3 = vld [vmem:[#allocation2 + $0x200] sm:$0xf0]  ;;  %v1392_v5 = vld [vmem:[#allocation2 + $0x1b0] sm:$0xf]  ;;  %v1421_v8 = vor.u32 %v1813_v61, %v1418_v63  ;;  %v1425_v9 = vor.u32 %v1817_v1, %v1424_v0 }
  0x23   : > { %765 = vmatpush.bf16.msra.mxu3 %v1477_v50  ;;  %v1810_v6 = vld [vmem:[#allocation2 + $0x1c4] sm:$0xf0]  ;;  %v1807_v7 = vld [vmem:[#allocation2 + $0x1b4] sm:$0xf]  ;;  %v1394_v10 = vld [vmem:[#allocation2 + $0x1c8] sm:$0xf0]  ;;  %v1429_v13 = vor.u32 %v1814_v2, %v1426_v3 }
  0x24   : > { %v1400_v11 = vld [vmem:[#allocation2 + $0x1b8] sm:$0xf]  ;;  %v1811_v12 = vld [vmem:[#allocation2 + $0x1cc] sm:$0xf0]  ;;  %v1808_v14 = vld [vmem:[#allocation2 + $0x1bc] sm:$0xf]  ;;  %v1393_v17 = vor.u32 %v1810_v6, %v1392_v5  ;;  %v1397_v29 = vor.u32 %v1807_v7, %v1394_v10 }
  0x25   : > { %709 = vmatpush.bf16.msra.mxu0 %v1441_v56  ;;  %v2071_v15 = vld [vmem:[%s2058_s14] sm:$0xff]   ;;  %v2074_v16 = vld [vmem:[%s2058_s14 + $0x8] sm:$0xff]   ;;  %v1402_v18 = vld [vmem:[#allocation2 + $0x1d0] sm:$0xf0]  ;;  %v1401_v30 = vor.u32 %v1811_v12, %v1400_v11  ;;  %s1867_s22 = smul.u32 24, %s2276_s9 }
  0x26   : > { %728 = vmatpush.bf16.msra.mxu1 %v1445_v57  ;;  %747 = vmatpush.bf16.msra.mxu2 %v1449_v58  ;;  %v313_v19 = vunpack.c.l.bf16 %v2071_v15  ;;  %v314_v20 = vunpack.c.l.bf16 %v2074_v16  ;;  %v321_v21 = vunpack.c.h.bf16 %v2071_v15  ;;  %v2080_v22 = vld [vmem:[%s2063_s17] sm:$0xff]   ;;  %v322_v25 = vunpack.c.h.bf16 %v2074_v16  ;;  %v1804_v31 = vld [vmem:[#allocation2 + $0x194] sm:$0xf0]  ;;  %v1370_v33 = vld [vmem:[#allocation2 + $0x198] sm:$0xf0] }
  0x27   : > { %766 = vmatpush.bf16.msra.mxu3 %v1453_v62  ;;  %v2083_v23 = vld [vmem:[%s2068_s21] sm:$0xff]   ;;  %v1851_v26 = vunpack.c.l.bf16 %v2080_v22  ;;  %v1852_v27 = vunpack.c.h.bf16 %v2080_v22  ;;  %v1405_v35 = vor.u32 %v1808_v14, %v1402_v18  ;;  %v1376_v36 = vld [vmem:[#allocation2 + $0x188] sm:$0xf]  ;;  %v1802_v38 = vld [vmem:[#allocation2 + $0x18c] sm:$0xf]  ;;  %s2226_s25 = scalar_lea.vmem %s2272_s5, %s1867_s22 }
  0x28   : > { %v1368_v24 = vld [vmem:[#allocation2 + $0x180] sm:$0xf]  ;;  %v1859_v28 = vunpack.c.l.bf16 %v2083_v23  ;;  %v1801_v32 = vld [vmem:[#allocation2 + $0x184] sm:$0xf]  ;;  %v1860_v34 = vunpack.c.h.bf16 %v2083_v23  ;;  %v1728_v44 = vld [vmem:[#allocation2 + $0x150] sm:$0xf] }
  0x29   : > { %710 = vmatpush.bf16.msra.mxu0 %v1417_v4  ;;  %v1805_v37 = vld [vmem:[#allocation2 + $0x19c] sm:$0xf0]  ;;  %v355_v39 = vmul.f32 %v1851_v26, %v321_v21  ;;  %v356_v40 = vmul.f32 %v1852_v27, %v322_v25  ;;  %v1378_v42 = vld [vmem:[#allocation2 + $0x1a0] sm:$0xf0]  ;;  %v1798_v45 = vld [vmem:[#allocation2 + $0x164] sm:$0xf0]  ;;  %v1369_v46 = vor.u32 %v1804_v31, %v1368_v24  ;;  %v1373_v50 = vor.u32 %v1801_v32, %v1370_v33 }
  0x2a   : > { %729 = vmatpush.bf16.msra.mxu1 %v1421_v8  ;;  %748 = vmatpush.bf16.msra.mxu2 %v1425_v9  ;;  %v359_v41 = vmul.f32 %v1859_v28, %v313_v19  ;;  %v360_v43 = vmul.f32 %v1860_v34, %v314_v20  ;;  %v1795_v48 = vld [vmem:[#allocation2 + $0x154] sm:$0xf]  ;;  %v1730_v49 = vld [vmem:[#allocation2 + $0x168] sm:$0xf0]  ;;  %v1377_v51 = vor.u32 %v1805_v37, %v1376_v36  ;;  %v1552_v53 = vld [vmem:[#allocation2 + $0x2e0] sm:$0xf] }
  0x2b   : > { %767 = vmatpush.bf16.msra.mxu3 %v1429_v13  ;;  %v1381_v54 = vor.u32 %v1802_v38, %v1378_v42  ;;  %v1729_v55 = vor.u32 %v1798_v45, %v1728_v44  ;;  %v1848_v56 = vld [vmem:[#allocation2 + $0x2f4] sm:$0xf0]  ;;  %v1845_v57 = vld [vmem:[#allocation2 + $0x2e4] sm:$0xf]  ;;  %v1554_v58 = vld [vmem:[#allocation2 + $0x2f8] sm:$0xf0]  ;;  %v1733_v60 = vor.u32 %v1795_v48, %v1730_v49 }
  0x2c   : > { %v363_v47 = vadd.f32 %v359_v41, %v355_v39  ;;  %v364_v52 = vadd.f32 %v360_v43, %v356_v40  ;;  %v1704_v61 = vld [vmem:[#allocation2 + $0x120] sm:$0xf]  ;;  %v1792_v62 = vld [vmem:[#allocation2 + $0x134] sm:$0xf0]  ;;  %v1789_v63 = vld [vmem:[#allocation2 + $0x124] sm:$0xf]  ;;  %v1553_v3 = vor.u32 %v1848_v56, %v1552_v53  ;;  %v1557_v8 = vor.u32 %v1845_v57, %v1554_v58 }
  0x2d   : > { %711 = vmatpush.bf16.msra.mxu0 %v1393_v17  ;;  %v1706_v0 = vld [vmem:[#allocation2 + $0x138] sm:$0xf0]  ;;  %v1528_v1 = vld [vmem:[#allocation2 + $0x2b0] sm:$0xf]  ;;  %v1842_v2 = vld [vmem:[#allocation2 + $0x2c4] sm:$0xf0]  ;;  %v1705_v9 = vor.u32 %v1792_v62, %v1704_v61 }
  0x2e   : > { %730 = vmatpush.bf16.msra.mxu1 %v1397_v29  ;;  %749 = vmatpush.bf16.msra.mxu2 %v1401_v30  ;;  %v2106_v59 = vpack.c.bf16 %v364_v52, %v363_v47  ;;  %v1839_v4 = vld [vmem:[#allocation2 + $0x2b4] sm:$0xf]  ;;  %v1530_v5 = vld [vmem:[#allocation2 + $0x2c8] sm:$0xf0]  ;;  %v1680_v6 = vld [vmem:[#allocation2 + $0xf0] sm:$0xf]  ;;  %v1709_v13 = vor.u32 %v1789_v63, %v1706_v0  ;;  %v1529_v36 = vor.u32 %v1842_v2, %v1528_v1 }
  0x2f   : > { %768 = vmatpush.bf16.msra.mxu3 %v1405_v35  ;;  %v1786_v7 = vld [vmem:[#allocation2 + $0x104] sm:$0xf0]  ;;  %v1783_v10 = vld [vmem:[#allocation2 + $0xf4] sm:$0xf]  ;;  %v2112_v12 = vld [vmem:[%s2058_s14 + $0x18] sm:$0xff]   ;;  %v1533_v38 = vor.u32 %v1839_v4, %v1530_v5 }
  0x30   : > { %v2109_v11 = vld [vmem:[%s2058_s14 + $0x10] sm:$0xff]   ;;  %v1682_v14 = vld [vmem:[#allocation2 + $0x108] sm:$0xf0]  ;;  %v316_v18 = vunpack.c.l.bf16 %v2112_v12  ;;  %v324_v31 = vunpack.c.h.bf16 %v2112_v12  ;;  %v1681_v39 = vor.u32 %v1786_v7, %v1680_v6  ;;  %v1504_v41 = vld [vmem:[#allocation2 + $0x280] sm:$0xf] }
  0x31   : > { %712 = vmatpush.bf16.msra.mxu0 %v1369_v46  ;;  %v315_v17 = vunpack.c.l.bf16 %v2109_v11  ;;  %v323_v24 = vunpack.c.h.bf16 %v2109_v11  ;;  %v2119_v29 = vld [vmem:[%s2063_s17 + $0x8] sm:$0xff]   ;;  %v1685_v40 = vor.u32 %v1783_v10, %v1682_v14  ;;  %v1836_v42 = vld [vmem:[#allocation2 + $0x294] sm:$0xf0]  ;;  %v1833_v43 = vld [vmem:[#allocation2 + $0x284] sm:$0xf] }
  0x32   : > { %731 = vmatpush.bf16.msra.mxu1 %v1373_v50  ;;  %750 = vmatpush.bf16.msra.mxu2 %v1377_v51  ;;  %v2122_v30 = vld [vmem:[%s2068_s21 + $0x8] sm:$0xff]   ;;  %v1855_v32 = vunpack.c.l.bf16 %v2119_v29  ;;  %v1856_v33 = vunpack.c.h.bf16 %v2119_v29  ;;  %v1506_v44 = vld [vmem:[#allocation2 + $0x298] sm:$0xf0]  ;;  %v1656_v45 = vld [vmem:[#allocation2 + $0xc0] sm:$0xf]  ;;  %v1505_v53 = vor.u32 %v1836_v42, %v1504_v41 }
  0x33   : > { %769 = vmatpush.bf16.msra.mxu3 %v1381_v54  ;;  %v1863_v35 = vunpack.c.l.bf16 %v2122_v30  ;;  %v1864_v37 = vunpack.c.h.bf16 %v2122_v30  ;;  %v1780_v46 = vld [vmem:[#allocation2 + $0xd4] sm:$0xf0]  ;;  %v1777_v51 = vld [vmem:[#allocation2 + $0xc4] sm:$0xf]  ;;  %v1658_v52 = vld [vmem:[#allocation2 + $0xd8] sm:$0xf0]  ;;  %v1509_v54 = vor.u32 %v1833_v43, %v1506_v44 }
  0x34   : > { %713 = vmatmul.bf16.vlgmr.msra.gmra.mxu0 %v2106_v59  ;;  %v357_v47 = vmul.f32 %v1855_v32, %v323_v24  ;;  %v358_v48 = vmul.f32 %v1856_v33, %v324_v31  ;;  %v1480_v56 = vld [vmem:[#allocation2 + $0x250] sm:$0xf]  ;;  %v1830_v57 = vld [vmem:[#allocation2 + $0x264] sm:$0xf0]  ;;  %v1827_v58 = vld [vmem:[#allocation2 + $0x254] sm:$0xf] }
  0x35   : > { %732 = vmatmul.bf16.vlgmr.msra.gmra.mxu1 %v2106_v59  ;;  %751 = vmatmul.bf16.vlgmr.msra.gmra.mxu2 %v2106_v59  ;;  %v361_v49 = vmul.f32 %v1863_v35, %v315_v17  ;;  %v362_v50 = vmul.f32 %v1864_v37, %v316_v18  ;;  %v1482_v61 = vld [vmem:[#allocation2 + $0x268] sm:$0xf0]  ;;  %v1632_v0 = vld [vmem:[#allocation2 + $0x90] sm:$0xf]  ;;  %v1774_v1 = vld [vmem:[#allocation2 + $0xa4] sm:$0xf0]  ;;  %v1481_v4 = vor.u32 %v1830_v57, %v1480_v56 }
  0x36   : > { %1059 = vmatpush.bf16.msrb.mxu2 %v1729_v55  ;;  %770 = vmatmul.bf16.vlgmr.msra.gmra.mxu3 %v2106_v59  ;;  %v1657_v55 = vor.u32 %v1780_v46, %v1656_v45  ;;  %v1771_v2 = vld [vmem:[#allocation2 + $0x94] sm:$0xf]  ;;  %v1485_v5 = vor.u32 %v1827_v58, %v1482_v61  ;;  %v1633_v6 = vor.u32 %v1774_v1, %v1632_v0  ;;  %v1456_v7 = vld [vmem:[#allocation2 + $0x220] sm:$0xf]  ;;  %v1458_v14 = vld [vmem:[#allocation2 + $0x238] sm:$0xf0] }
  0x37   : > { %1078 = vmatpush.bf16.msrb.mxu3 %v1733_v60  ;;  %781 = vmatpush.bf16.msrb.mxu0 %v1553_v3  ;;  %v1661_v60 = vor.u32 %v1777_v51, %v1658_v52  ;;  %v365_v62 = vadd.f32 %v361_v49, %v357_v47  ;;  %v366_v63 = vadd.f32 %v362_v50, %v358_v48  ;;  %v1634_v3 = vld [vmem:[#allocation2 + $0xa8] sm:$0xf0]  ;;  %v1432_v44 = vld [vmem:[#allocation2 + $0x1f0] sm:$0xf]  ;;  %v1818_v45 = vld [vmem:[#allocation2 + $0x204] sm:$0xf0] }
  0x38   : > { %800 = vmatpush.bf16.msrb.mxu1 %v1557_v8  ;;  %v1824_v8 = vld [vmem:[#allocation2 + $0x234] sm:$0xf0]  ;;  %v1815_v46 = vld [vmem:[#allocation2 + $0x1f4] sm:$0xf]  ;;  %v1434_v48 = vld [vmem:[#allocation2 + $0x208] sm:$0xf0] }
  0x39   : > { %v2148_v10 = vpack.c.bf16 %v366_v63, %v365_v62  ;;  %v1457_v41 = vor.u32 %v1824_v8, %v1456_v7  ;;  %v1584_v49 = vld [vmem:[#allocation2 + $0x30] sm:$0xf]  ;;  %v1762_v50 = vld [vmem:[#allocation2 + $0x44] sm:$0xf0]  ;;  %v1759_v51 = vld [vmem:[#allocation2 + $0x34] sm:$0xf] }
  0x3a   : > { %1060 = vmatpush.bf16.msrb.mxu2 %v1705_v9  ;;  %v1821_v9 = vld [vmem:[#allocation2 + $0x224] sm:$0xf]  ;;  %v1586_v52 = vld [vmem:[#allocation2 + $0x48] sm:$0xf0]  ;;  %v1585_v56 = vor.u32 %v1762_v50, %v1584_v49  ;;  %v1812_v57 = vld [vmem:[#allocation2 + $0x1d4] sm:$0xf0] }
  0x3b   : > { %1079 = vmatpush.bf16.msrb.mxu3 %v1709_v13  ;;  %782 = vmatpush.bf16.msrb.mxu0 %v1529_v36  ;;  %v1637_v13 = vor.u32 %v1771_v2, %v1634_v3  ;;  %v1608_v36 = vld [vmem:[#allocation2 + $0x60] sm:$0xf]  ;;  %v1461_v42 = vor.u32 %v1821_v9, %v1458_v14  ;;  %v1809_v58 = vld [vmem:[#allocation2 + $0x1c4] sm:$0xf]  ;;  %v1589_v61 = vor.u32 %v1759_v51, %v1586_v52  ;;  %v1756_v63 = vld [vmem:[#allocation2 + $0x14] sm:$0xf0] }
  0x3c   : > { %801 = vmatpush.bf16.msrb.mxu1 %v1533_v38  ;;  %v1768_v38 = vld [vmem:[#allocation2 + $0x74] sm:$0xf0]  ;;  %v1560_v62 = vld [vmem:[#allocation2] sm:$0xf]  ;;  %v1753_v0 = vld [vmem:[#allocation2 + $0x4] sm:$0xf]  ;;  %v341_v2 = vmul.f32 %v1851_v26, %v313_v19  ;;  %v342_v3 = vmul.f32 %v1852_v27, %v314_v20 }
  0x3d   : > { %v1609_v43 = vor.u32 %v1768_v38, %v1608_v36  ;;  %v1562_v1 = vld [vmem:[#allocation2 + $0x18] sm:$0xf0]  ;;  %v1800_v7 = vld [vmem:[#allocation2 + $0x174] sm:$0xf0]  ;;  %v1384_v19 = vld [vmem:[#allocation2 + $0x190] sm:$0xf]  ;;  %v1561_v22 = vor.u32 %v1756_v63, %v1560_v62 }
  0x3e   : > { %1061 = vmatpush.bf16.msrb.mxu2 %v1681_v39  ;;  %v1765_v39 = vld [vmem:[#allocation2 + $0x64] sm:$0xf]  ;;  %v1746_v9 = vld [vmem:[#allocation2 + $0x178] sm:$0xf0]  ;;  %v1806_v15 = vld [vmem:[#allocation2 + $0x1a4] sm:$0xf0] }
  0x3f   : > { %1080 = vmatpush.bf16.msrb.mxu3 %v1685_v40  ;;  %783 = vmatpush.bf16.msrb.mxu0 %v1505_v53  ;;  %v1610_v40 = vld [vmem:[#allocation2 + $0x78] sm:$0xf0]  ;;  %v1433_v53 = vor.u32 %v1818_v45, %v1432_v44  ;;  %v1797_v26 = vld [vmem:[#allocation2 + $0x164] sm:$0xf]  ;;  %v1803_v27 = vld [vmem:[#allocation2 + $0x194] sm:$0xf] }
  0x40   : > { %802 = vmatpush.bf16.msrb.mxu1 %v1509_v54  ;;  %v1613_v47 = vor.u32 %v1765_v39, %v1610_v40  ;;  %v1408_v54 = vld [vmem:[#allocation2 + $0x1c0] sm:$0xf]  ;;  %v1799_v23 = vld [vmem:[#allocation2 + $0x16c] sm:$0xf0]  ;;  %v1749_v36 = vor.u32 %v1797_v26, %v1746_v9  ;;  %v1738_v38 = vld [vmem:[#allocation2 + $0x170] sm:$0xf0] }
  0x41   : > { %v1409_v8 = vor.u32 %v1812_v57, %v1408_v54  ;;  %v1720_v39 = vld [vmem:[#allocation2 + $0x130] sm:$0xf]  ;;  %v1794_v40 = vld [vmem:[#allocation2 + $0x144] sm:$0xf0]  ;;  %v1791_v44 = vld [vmem:[#allocation2 + $0x134] sm:$0xf] }
  0x42   : > { %1062 = vmatpush.bf16.msrb.mxu2 %v1657_v55  ;;  %v1437_v55 = vor.u32 %v1815_v46, %v1434_v48  ;;  %v1722_v45 = vld [vmem:[#allocation2 + $0x148] sm:$0xf0]  ;;  %v1712_v48 = vld [vmem:[#allocation2 + $0x128] sm:$0xf]  ;;  %v1793_v49 = vld [vmem:[#allocation2 + $0x13c] sm:$0xf0] }
  0x43   : > { %1081 = vmatpush.bf16.msrb.mxu3 %v1661_v60  ;;  %784 = vmatpush.bf16.msrb.mxu0 %v1481_v4  ;;  %v1410_v60 = vld [vmem:[#allocation2 + $0x1d8] sm:$0xf0]  ;;  %v345_v4 = vmul.f32 %v1859_v28, %v321_v21  ;;  %v1565_v21 = vor.u32 %v1753_v0, %v1562_v1  ;;  %v1736_v28 = vld [vmem:[#allocation2 + $0x158] sm:$0xf]  ;;  %v1790_v50 = vld [vmem:[#allocation2 + $0x12c] sm:$0xf] }
  0x44   : > { %803 = vmatpush.bf16.msrb.mxu1 %v1485_v5  ;;  %718 = vmatmul.bf16.gmra.mxu0 %v2148_v10  ;;  %v346_v5 = vmul.f32 %v1860_v34, %v322_v25  ;;  %v1413_v20 = vor.u32 %v1809_v58, %v1410_v60  ;;  %v1796_v25 = vld [vmem:[#allocation2 + $0x15c] sm:$0xf]  ;;  %v1714_v52 = vld [vmem:[#allocation2 + $0x140] sm:$0xf0]  ;;  %v1788_v54 = vld [vmem:[#allocation2 + $0x114] sm:$0xf0] }
  0x45   : > { %737 = vmatmul.bf16.gmra.mxu1 %v2148_v10  ;;  %756 = vmatmul.bf16.gmra.mxu2 %v2148_v10  ;;  %v349_v34 = vsub.f32 %v341_v2, %v345_v4  ;;  %v1741_v46 = vor.u32 %v1796_v25, %v1738_v38  ;;  %v1785_v57 = vld [vmem:[#allocation2 + $0x104] sm:$0xf]  ;;  %v1698_v58 = vld [vmem:[#allocation2 + $0x118] sm:$0xf0]  ;;  %v1717_v60 = vor.u32 %v1790_v50, %v1714_v52  ;;  %v1688_v62 = vld [vmem:[#allocation2 + $0xf8] sm:$0xf] }
  0x46   : > { %1063 = vmatpush.bf16.msrb.mxu2 %v1633_v6  ;;  %775 = vmatmul.bf16.gmra.mxu3 %v2148_v10  ;;  %v1744_v6 = vld [vmem:[#allocation2 + $0x160] sm:$0xf]  ;;  %v350_v14 = vsub.f32 %v342_v3, %v346_v5  ;;  %v1787_v63 = vld [vmem:[#allocation2 + $0x10c] sm:$0xf0]  ;;  %v1784_v0 = vld [vmem:[#allocation2 + $0xfc] sm:$0xf]  ;;  %v1701_v4 = vor.u32 %v1785_v57, %v1698_v58 }
  0x47   : > { %1082 = vmatpush.bf16.msrb.mxu3 %v1637_v13  ;;  %785 = vmatpush.bf16.msrb.mxu0 %v1457_v41  ;;  %v1386_v13 = vld [vmem:[#allocation2 + $0x1a8] sm:$0xf0]  ;;  %v1745_v16 = vor.u32 %v1800_v7, %v1744_v6  ;;  %v1385_v41 = vor.u32 %v1806_v15, %v1384_v19  ;;  %v1690_v1 = vld [vmem:[#allocation2 + $0x110] sm:$0xf0]  ;;  %v1672_v2 = vld [vmem:[#allocation2 + $0xd0] sm:$0xf]  ;;  %v1689_v5 = vor.u32 %v1787_v63, %v1688_v62 }
  0x48   : > { %804 = vmatpush.bf16.msrb.mxu1 %v1461_v42  ;;  %v1389_v42 = vor.u32 %v1803_v27, %v1386_v13  ;;  %v2170_v51 = vpack.c.bf16 %v350_v14, %v349_v34  ;;  %v1782_v3 = vld [vmem:[#allocation2 + $0xe4] sm:$0xf0]  ;;  %v1779_v6 = vld [vmem:[#allocation2 + $0xd4] sm:$0xf]  ;;  %v1674_v7 = vld [vmem:[#allocation2 + $0xe8] sm:$0xf0]  ;;  %v344_v15 = vmul.f32 %v1856_v33, %v316_v18  ;;  %v347_v27 = vmul.f32 %v1863_v35, %v323_v24 }
  0x49   : > { %v1673_v19 = vor.u32 %v1782_v3, %v1672_v2  ;;  %v1664_v26 = vld [vmem:[#allocation2 + $0xc8] sm:$0xf]  ;;  %v1781_v9 = vld [vmem:[#allocation2 + $0xdc] sm:$0xf0]  ;;  %v348_v13 = vmul.f32 %v1864_v37, %v324_v31  ;;  %v1640_v29 = vld [vmem:[#allocation2 + $0x98] sm:$0xf] }
  0x4a   : > { %1064 = vmatpush.bf16.msrb.mxu2 %v1609_v43  ;;  %v1737_v43 = vor.u32 %v1799_v23, %v1736_v28  ;;  %v1773_v28 = vld [vmem:[#allocation2 + $0xa4] sm:$0xf]  ;;  %v1650_v23 = vld [vmem:[#allocation2 + $0xb8] sm:$0xf0]  ;;  %v1775_v33 = vld [vmem:[#allocation2 + $0xac] sm:$0xf0] }
  0x4b   : > { %1083 = vmatpush.bf16.msrb.mxu3 %v1613_v47  ;;  %786 = vmatpush.bf16.msrb.mxu0 %v1433_v53  ;;  %v1721_v47 = vor.u32 %v1794_v40, %v1720_v39  ;;  %v1696_v53 = vld [vmem:[#allocation2 + $0x100] sm:$0xf]  ;;  %v1772_v24 = vld [vmem:[#allocation2 + $0x9c] sm:$0xf]  ;;  %v352_v12 = vsub.f32 %v344_v15, %v348_v13  ;;  %v1642_v25 = vld [vmem:[#allocation2 + $0xb0] sm:$0xf0]  ;;  %v1653_v37 = vor.u32 %v1773_v28, %v1650_v23 }
  0x4c   : > { %805 = vmatpush.bf16.msrb.mxu1 %v1437_v55  ;;  %v1725_v55 = vor.u32 %v1791_v44, %v1722_v45  ;;  %v1624_v30 = vld [vmem:[#allocation2 + $0x70] sm:$0xf]  ;;  %v1770_v31 = vld [vmem:[#allocation2 + $0x84] sm:$0xf0]  ;;  %v1641_v34 = vor.u32 %v1775_v33, %v1640_v29  ;;  %v1767_v14 = vld [vmem:[#allocation2 + $0x74] sm:$0xf]  ;;  %v1645_v38 = vor.u32 %v1772_v24, %v1642_v25 }
  0x4d   : > { %v1625_v39 = vor.u32 %v1770_v31, %v1624_v30  ;;  %v1616_v40 = vld [vmem:[#allocation2 + $0x68] sm:$0xf]  ;;  %v1618_v44 = vld [vmem:[#allocation2 + $0x80] sm:$0xf0]  ;;  %v1600_v45 = vld [vmem:[#allocation2 + $0x40] sm:$0xf] }
  0x4e   : > { %1065 = vmatpush.bf16.msrb.mxu2 %v1585_v56  ;;  %v1713_v56 = vor.u32 %v1793_v49, %v1712_v48  ;;  %v1761_v49 = vld [vmem:[#allocation2 + $0x44] sm:$0xf]  ;;  %v1602_v50 = vld [vmem:[#allocation2 + $0x58] sm:$0xf0]  ;;  %v1594_v57 = vld [vmem:[#allocation2 + $0x50] sm:$0xf0] }
  0x4f   : > { %1084 = vmatpush.bf16.msrb.mxu3 %v1589_v61  ;;  %787 = vmatpush.bf16.msrb.mxu0 %v1409_v8  ;;  %v1697_v61 = vor.u32 %v1788_v54, %v1696_v53  ;;  %v1693_v8 = vor.u32 %v1784_v0, %v1690_v1  ;;  %v1592_v54 = vld [vmem:[#allocation2 + $0x38] sm:$0xf]  ;;  %v1576_v58 = vld [vmem:[#allocation2 + $0x10] sm:$0xf]  ;;  %v1755_v63 = vld [vmem:[#allocation2 + $0x14] sm:$0xf] }
  0x50   : > { %806 = vmatpush.bf16.msrb.mxu1 %v1413_v20  ;;  %v1778_v20 = vld [vmem:[#allocation2 + $0xcc] sm:$0xf]  ;;  %v1568_v3 = vld [vmem:[#allocation2 + $0x8] sm:$0xf]  ;;  %v1173_v28 = vld [vmem:[#allocation4] sm:$0x3f] }
  0x51   : > { %v1578_v2 = vld [vmem:[#allocation2 + $0x28] sm:$0xf0]  ;;  %v1174_v23 = vunpack.c.l.bf16 %v1173_v28 }
  0x52   : > { %1066 = vmatpush.bf16.msrb.mxu2 %v1561_v22  ;;  %v1666_v22 = vld [vmem:[#allocation2 + $0xe0] sm:$0xf0] }
  0x53   : > { %1085 = vmatpush.bf16.msrb.mxu3 %v1565_v21  ;;  %788 = vmatpush.bf16.msrb.mxu0 %v1385_v41  ;;  %v1648_v21 = vld [vmem:[#allocation2 + $0xa0] sm:$0xf]  ;;  %v1669_v18 = vor.u32 %v1778_v20, %v1666_v22  ;;  %v1178_v24 = vperm.slane %v1174_v23, 0 }
  0x54   : > { %807 = vmatpush.bf16.msrb.mxu1 %v1389_v42  ;;  %v1769_v41 = vld [vmem:[#allocation2 + $0x7c] sm:$0xf0]  ;;  %v1766_v42 = vld [vmem:[#allocation2 + $0x6c] sm:$0xf] }
  0x55   : > { %1067 = vmatmul.bf16.vlgmr.msrb.gmra.mxu2 %v2170_v51  ;;  %v1617_v48 = vor.u32 %v1769_v41, %v1616_v40  ;;  %v1621_v52 = vor.u32 %v1766_v42, %v1618_v44 }
  0x56   : > { %1135 = vmatpush.bf16.msra.mxu2 %v1745_v16  ;;  %789 = vmatmul.bf16.vlgmr.msrb.gmra.mxu0 %v2106_v59  ;;  %v1776_v16 = vld [vmem:[#allocation2 + $0xb4] sm:$0xf0] }
  0x57   : > { %1154 = vmatpush.bf16.msra.mxu3 %v1749_v36  ;;  %1097 = vmatpush.bf16.msra.mxu0 %v1737_v43  ;;  %v1649_v11 = vor.u32 %v1776_v16, %v1648_v21  ;;  %v1626_v36 = vld [vmem:[#allocation2 + $0x88] sm:$0xf0] }
  0x58   : > { %1116 = vmatpush.bf16.msra.mxu1 %v1741_v46  ;;  %1086 = vmatmul.bf16.vlgmr.msrb.gmra.mxu3 %v2170_v51  ;;  %v1764_v46 = vld [vmem:[#allocation2 + $0x54] sm:$0xf0] }
  0x59   : > { %808 = vmatmul.bf16.vlgmr.msrb.gmra.mxu1 %v2106_v59  ;;  %v343_v59 = vmul.f32 %v1855_v32, %v315_v17  ;;  %v1677_v17 = vor.u32 %v1779_v6, %v1674_v7  ;;  %v1665_v32 = vor.u32 %v1781_v9, %v1664_v26  ;;  %v1601_v53 = vor.u32 %v1764_v46, %v1600_v45  ;;  %v1570_v6 = vld [vmem:[#allocation2 + $0x20] sm:$0xf0] }
  0x5a   : > { %1136 = vmatpush.bf16.msra.mxu2 %v1721_v47  ;;  %v1629_v47 = vor.u32 %v1767_v14, %v1626_v36  ;;  %v1581_v7 = vor.u32 %v1755_v63, %v1578_v2  ;;  %v1175_v63 = vunpack.c.h.bf16 %v1173_v28 }
  0x5b   : > { %1155 = vmatpush.bf16.msra.mxu3 %v1725_v55  ;;  %1098 = vmatpush.bf16.msra.mxu0 %v1713_v56  ;;  %v351_v35 = vsub.f32 %v343_v59, %v347_v27  ;;  %v1763_v55 = vld [vmem:[#allocation2 + $0x4c] sm:$0xf0]  ;;  %v1760_v56 = vld [vmem:[#allocation2 + $0x3c] sm:$0xf] }
  0x5c   : > { %1117 = vmatpush.bf16.msra.mxu1 %v1717_v60  ;;  %v1758_v60 = vld [vmem:[#allocation2 + $0x24] sm:$0xf0]  ;;  %v1593_v62 = vor.u32 %v1763_v55, %v1592_v54  ;;  %v1597_v0 = vor.u32 %v1760_v56, %v1594_v57 }
  0x5d   : > { %v354_v43 = vpack.c.bf16 %v352_v12, %v351_v35  ;;  %v1577_v1 = vor.u32 %v1758_v60, %v1576_v58  ;;  %v1179_v35 = vperm.slane %v1174_v23, 2  ;;  %v1190_v12 = vperm.slane %v1178_v24, 0 }
  0x5e   : > { %1137 = vmatpush.bf16.msra.mxu2 %v1697_v61  ;;  %v1605_v61 = vor.u32 %v1761_v49, %v1602_v50  ;;  %v1180_v60 = vperm.slane %v1174_v23, 4 }
  0x5f   : > { %1156 = vmatpush.bf16.msra.mxu3 %v1701_v4  ;;  %1099 = vmatpush.bf16.msra.mxu0 %v1689_v5  ;;  %v1757_v4 = vld [vmem:[#allocation2 + $0x1c] sm:$0xf0]  ;;  %v1754_v5 = vld [vmem:[#allocation2 + $0xc] sm:$0xf]  ;;  %v1191_v30 = vperm.slane %v1179_v35, 0 }
  0x60   : > { %1118 = vmatpush.bf16.msra.mxu1 %v1693_v8  ;;  %v1569_v8 = vor.u32 %v1757_v4, %v1568_v3  ;;  %v1192_v3 = vperm.slane %v1180_v60, 0 }
  0x62   : > { %1138 = vmatpush.bf16.msra.mxu2 %v1673_v19 }
  0x63   : > { %1157 = vmatpush.bf16.msra.mxu3 %v1677_v17  ;;  %1100 = vmatpush.bf16.msra.mxu0 %v1665_v32 }
  0x64   : > { %1119 = vmatpush.bf16.msra.mxu1 %v1669_v18 }
  0x65   : > { %1072 = vmatmul.bf16.gmra.mxu2 %v354_v43 }
  0x66   : > { %1139 = vmatpush.bf16.msra.mxu2 %v1649_v11  ;;  %794 = vmatmul.bf16.gmra.mxu0 %v2148_v10 }
  0x67   : > { %1158 = vmatpush.bf16.msra.mxu3 %v1653_v37  ;;  %1101 = vmatpush.bf16.msra.mxu0 %v1641_v34 }
  0x68   : > { %1120 = vmatpush.bf16.msra.mxu1 %v1645_v38  ;;  %1091 = vmatmul.bf16.gmra.mxu3 %v354_v43 }
  0x69   : > { %813 = vmatmul.bf16.gmra.mxu1 %v2148_v10  ;;  %v1573_v10 = vor.u32 %v1754_v5, %v1570_v6 }
  0x6a   : > { %1140 = vmatpush.bf16.msra.mxu2 %v1625_v39 }
  0x6b   : > { %1159 = vmatpush.bf16.msra.mxu3 %v1629_v47  ;;  %1102 = vmatpush.bf16.msra.mxu0 %v1617_v48 }
  0x6c   : > { %1121 = vmatpush.bf16.msra.mxu1 %v1621_v52 }
  0x6e   : > { %1141 = vmatpush.bf16.msra.mxu2 %v1601_v53 }
  0x6f   : > { %1160 = vmatpush.bf16.msra.mxu3 %v1605_v61  ;;  %1103 = vmatpush.bf16.msra.mxu0 %v1593_v62  ;;  %v1181_v62 = vperm.slane %v1174_v23, 6 }
  0x70   : > { %1122 = vmatpush.bf16.msra.mxu1 %v1597_v0 }
  0x71   : > { %v1193_v6 = vperm.slane %v1181_v62, 0 }
  0x72   : > { %1142 = vmatpush.bf16.msra.mxu2 %v1577_v1 }
  0x73   : > { %1161 = vmatpush.bf16.msra.mxu3 %v1581_v7  ;;  %1104 = vmatpush.bf16.msra.mxu0 %v1569_v8 }
  0x74   : > { %1123 = vmatpush.bf16.msra.mxu1 %v1573_v10 }
  0x75   : > { %1143 = vmatmul.bf16.vlgmr.msra.gmra.mxu2 %v2170_v51 }
  0x76   : > { %1105 = vmatmul.bf16.vlgmr.msra.gmra.mxu0 %v2170_v51 }
  0x78   : > { %1162 = vmatmul.bf16.vlgmr.msra.gmra.mxu3 %v2170_v51 }
  0x79   : > { %1124 = vmatmul.bf16.vlgmr.msra.gmra.mxu1 %v2170_v51 }
  0x85   : > { %1148 = vmatmul.bf16.gmra.mxu2 %v354_v43 }
  0x86   : > { %1110 = vmatmul.bf16.gmra.mxu0 %v354_v43 }
  0x88   : > { %1167 = vmatmul.bf16.gmra.mxu3 %v354_v43 }
  0x89   : > { %1129 = vmatmul.bf16.gmra.mxu1 %v354_v43 }
  0xb1   : > { %v714_v19 = vpop.f32.mrf.mxu0 }
  0xb2   : > { %v733_v26 = vpop.f32.mrf.mxu1 }
  0xb8   : > { %v2198_v9 = vpop.f32.mrf.mxu2 }
  0xb9   : > { %v2200_v20 = vpop.f32.mrf.mxu3  ;;  %v716_v22 = vpop.f32.mrf.mxu0 }
  0xba   : > { %v735_v59 = vpop.f32.mrf.mxu1 }
  0xc0   : > { %v2202_v15 = vpop.f32.mrf.mxu2 }
  0xc1   : > { %v2204_v27 = vpop.f32.mrf.mxu3  ;;  %v719_v13 = vpop.f32.mrf.mxu0 }
  0xc2   : > { %v738_v21 = vpop.f32.mrf.mxu1 }
  0xc8   : > { %v2206_v51 = vpop.f32.mrf.mxu2 }
  0xc9   : > { %v2208_v16 = vpop.f32.mrf.mxu3  ;;  %v721_v17 = vpop.f32.mrf.mxu0 }
  0xca   : > { %v740_v32 = vpop.f32.mrf.mxu1 }
  0xd0   : > { %v2210_v18 = vpop.f32.mrf.mxu2 }
  0xd1   : > { %v2212_v11 = vpop.f32.mrf.mxu3 }
  0xd3   : > { %v2214_v29 = vpop.f32.mrf.mxu0 }
  0xd6   : > { %v2216_v33 = vpop.f32.mrf.mxu1 }
  0xd8   : > { %v1068_v25 = vpop.f32.mrf.mxu2 }
  0xd9   : > { %v1069_v31 = vadd.f32 %v1068_v25, %v714_v19  ;;  %v1182_v19 = vperm.slane %v1175_v63, 0 }
  0xdb   : > { %v1087_v37 = vpop.f32.mrf.mxu3  ;;  %v2219_v14 = vpop.f32.mrf.mxu0  ;;  %v1196_v36 = vadd.f32 %v1190_v12, %v1069_v31 }
  0xdc   : > { %v1088_v34 = vadd.f32 %v1087_v37, %v733_v26 }
  0xde   : > { %v2221_v38 = vpop.f32.mrf.mxu1  ;;  %v1197_v39 = vadd.f32 %v1191_v30, %v1088_v34 }
  0xe0   : > { %v1220_v40 = vpack.c.bf16 %v1197_v39, %v1196_v36  ;;  %v1070_v41 = vpop.f32.mrf.mxu2 }
  0xe1   : > { %v1071_v42 = vadd.f32 %v1070_v41, %v716_v22 }
  0xe2   : > { %1232 = vst [vmem:[%s2226_s25] sm:$0xff] %v1220_v40 }
  0xe3   : > { %v1089_v43 = vpop.f32.mrf.mxu3  ;;  %v2229_v45 = vpop.f32.mrf.mxu0  ;;  %v1202_v46 = vadd.f32 %v1190_v12, %v1071_v42 }
  0xe4   : > { %v1090_v44 = vadd.f32 %v1089_v43, %v735_v59  ;;  %v1183_v59 = vperm.slane %v1175_v63, 2 }
  0xe6   : > { %v2231_v47 = vpop.f32.mrf.mxu1  ;;  %v1203_v48 = vadd.f32 %v1191_v30, %v1090_v44  ;;  %v1195_v24 = vperm.slane %v1183_v59, 0 }
  0xe8   : > { %v1223_v49 = vpack.c.bf16 %v1203_v48, %v1202_v46  ;;  %v1073_v50 = vpop.f32.mrf.mxu2 }
  0xe9   : > { %v1074_v52 = vadd.f32 %v1073_v50, %v719_v13 }
  0xea   : > { %1235 = vst [vmem:[%s2226_s25 + $0x18] sm:$0xff] %v1223_v49 }
  0xeb   : > { %v1092_v53 = vpop.f32.mrf.mxu3  ;;  %v2234_v55 = vpop.f32.mrf.mxu0  ;;  %v1208_v56 = vadd.f32 %v1190_v12, %v1074_v52 }
  0xec   : > { %v1093_v54 = vadd.f32 %v1092_v53, %v738_v21 }
  0xee   : > { %v2236_v57 = vpop.f32.mrf.mxu1  ;;  %v1209_v58 = vadd.f32 %v1191_v30, %v1093_v54 }
  0xf0   : > { %v1226_v61 = vpack.c.bf16 %v1209_v58, %v1208_v56  ;;  %v1075_v0 = vpop.f32.mrf.mxu2 }
  0xf1   : > { %v1076_v1 = vadd.f32 %v1075_v0, %v721_v17  ;;  %v1194_v17 = vperm.slane %v1182_v19, 0 }
  0xf2   : > { %1238 = vst [vmem:[%s2226_s25 + $0x30] sm:$0xff] %v1226_v61 }
  0xf3   : > { %v1094_v2 = vpop.f32.mrf.mxu3  ;;  %v1106_v5 = vpop.f32.mrf.mxu0  ;;  %v1214_v7 = vadd.f32 %v1190_v12, %v1076_v1 }
  0xf4   : > { %v1095_v4 = vadd.f32 %v1094_v2, %v740_v32  ;;  %v1107_v8 = vadd.f32 %v1106_v5, %v2198_v9 }
  0xf6   : > { %v1125_v10 = vpop.f32.mrf.mxu1  ;;  %v1215_v26 = vadd.f32 %v1191_v30, %v1095_v4  ;;  %v1198_v13 = vadd.f32 %v1192_v3, %v1107_v8 }
  0xf7   : > { %v1126_v22 = vadd.f32 %v1125_v10, %v2200_v20 }
  0xf8   : > { %v1229_v21 = vpack.c.bf16 %v1215_v26, %v1214_v7  ;;  %v1144_v32 = vpop.f32.mrf.mxu2 }
  0xf9   : > { %v1199_v28 = vadd.f32 %v1193_v6, %v1126_v22  ;;  %v1145_v35 = vadd.f32 %v1144_v32, %v2214_v29 }
  0xfa   : > { %1241 = vst [vmem:[%s2226_s25 + $0x48] sm:$0xff] %v1229_v21 }
  0xfb   : > { %v1221_v23 = vpack.c.bf16 %v1199_v28, %v1198_v13  ;;  %v1163_v12 = vpop.f32.mrf.mxu3  ;;  %v1108_v25 = vpop.f32.mrf.mxu0  ;;  %v1200_v30 = vadd.f32 %v1194_v17, %v1145_v35 }
  0xfc   : > { %v1164_v9 = vadd.f32 %v1163_v12, %v2216_v33  ;;  %v1109_v20 = vadd.f32 %v1108_v25, %v2202_v15 }
  0xfd   : > { %1233 = vst [vmem:[%s2226_s25 + $0x8] sm:$0xff] %v1221_v23 }
  0xfe   : > { %v1127_v31 = vpop.f32.mrf.mxu1  ;;  %v1201_v37 = vadd.f32 %v1195_v24, %v1164_v9  ;;  %v1204_v36 = vadd.f32 %v1192_v3, %v1109_v20 }
  0xff   : > { %v1128_v34 = vadd.f32 %v1127_v31, %v2204_v27 }
 0x100   : > { %v1222_v39 = vpack.c.bf16 %v1201_v37, %v1200_v30  ;;  %v1146_v29 = vpop.f32.mrf.mxu2 }
 0x101   : > { %v1205_v40 = vadd.f32 %v1193_v6, %v1128_v34  ;;  %v1147_v42 = vadd.f32 %v1146_v29, %v2219_v14 }
 0x102   : > { %1234 = vst [vmem:[%s2226_s25 + $0x10] sm:$0xff] %v1222_v39 }
 0x103   : > { %v1224_v41 = vpack.c.bf16 %v1205_v40, %v1204_v36  ;;  %v1165_v43 = vpop.f32.mrf.mxu3  ;;  %v1111_v44 = vpop.f32.mrf.mxu0  ;;  %v1206_v15 = vadd.f32 %v1194_v17, %v1147_v42 }
 0x104   : > { %v1166_v33 = vadd.f32 %v1165_v43, %v2221_v38  ;;  %v1112_v46 = vadd.f32 %v1111_v44, %v2206_v51 }
 0x105   : > { %1236 = vst [vmem:[%s2226_s25 + $0x20] sm:$0xff] %v1224_v41 }
 0x106   : > { %v1130_v48 = vpop.f32.mrf.mxu1  ;;  %v1207_v27 = vadd.f32 %v1195_v24, %v1166_v33  ;;  %v1210_v50 = vadd.f32 %v1192_v3, %v1112_v46 }
 0x107   : > { %v1131_v49 = vadd.f32 %v1130_v48, %v2208_v16 }
 0x108   : > { %v1225_v52 = vpack.c.bf16 %v1207_v27, %v1206_v15  ;;  %v1149_v14 = vpop.f32.mrf.mxu2 }
 0x109   : > { %v1211_v53 = vadd.f32 %v1193_v6, %v1131_v49  ;;  %v1150_v56 = vadd.f32 %v1149_v14, %v2229_v45 }
 0x10a   : > { %1237 = vst [vmem:[%s2226_s25 + $0x28] sm:$0xff] %v1225_v52 }
 0x10b   : > { %v1227_v54 = vpack.c.bf16 %v1211_v53, %v1210_v50  ;;  %v1168_v58 = vpop.f32.mrf.mxu3  ;;  %v1113_v60 = vpop.f32.mrf.mxu0  ;;  %v1212_v51 = vadd.f32 %v1194_v17, %v1150_v56 }
 0x10c   : > { %v1169_v38 = vadd.f32 %v1168_v58, %v2231_v47  ;;  %v1114_v61 = vadd.f32 %v1113_v60, %v2210_v18 }
 0x10d   : > { %1239 = vst [vmem:[%s2226_s25 + $0x38] sm:$0xff] %v1227_v54 }
 0x10e   : > { %v1132_v62 = vpop.f32.mrf.mxu1  ;;  %v1213_v16 = vadd.f32 %v1195_v24, %v1169_v38  ;;  %v1216_v0 = vadd.f32 %v1192_v3, %v1114_v61 }
 0x10f   : > { %v1133_v63 = vadd.f32 %v1132_v62, %v2212_v11 }
 0x110   : > { %v1228_v1 = vpack.c.bf16 %v1213_v16, %v1212_v51  ;;  %v1151_v45 = vpop.f32.mrf.mxu2 }
 0x111   : > { %v1217_v2 = vadd.f32 %v1193_v6, %v1133_v63  ;;  %v1152_v5 = vadd.f32 %v1151_v45, %v2234_v55 }
 0x112   : > { %1240 = vst [vmem:[%s2226_s25 + $0x40] sm:$0xff] %v1228_v1 }
 0x113   : > { %v1230_v4 = vpack.c.bf16 %v1217_v2, %v1216_v0  ;;  %v1170_v7 = vpop.f32.mrf.mxu3  ;;  %v1218_v8 = vadd.f32 %v1194_v17, %v1152_v5 }
 0x114   : > { %v1171_v47 = vadd.f32 %v1170_v7, %v2236_v57 }
 0x115   : > { %1242 = vst [vmem:[%s2226_s25 + $0x50] sm:$0xff] %v1230_v4 }
 0x116   : > { %v1219_v10 = vadd.f32 %v1195_v24, %v1171_v47 }
 0x118   : > { %v1231_v18 = vpack.c.bf16 %v1219_v10, %v1218_v8 }
 0x11a   : > { %1243 = vst [vmem:[%s2226_s25 + $0x58] sm:$0xff] %v1231_v18 }
 0x11b PF: > { %s17_s18 = sadd.s32 1, %s1973_s18  }
 0x11c   : > { %p14_p7 = scmp.ge.s32.totalorder %s17_s18, 4  }
 0x11e   :  { %16 = sbr.rel (!%p14_p7) target bundleno = 2 (0x2), region = 85 }
 0x123   :  { %1268 = vsyncpa [#allocation3], 1 }
 0x124   :  { %1270 = vsyncpa [#allocation3 + $0x1], 1 }
 0x125   :  { %1271 = vsyncpa [#allocation5], 1 }

// kernel: transformer_encoder_layer.7
= control target key start
LH: loop header
LB: loop body
LE: loop exit
PB: predicated region body
PF: predicated region fallthrough
CT: control target
= control target key end

     0   :  { %12 = vsyncpa [#allocation3], 0  ;;  %s3282_s0 = inlined_call_operand.vmem [shape: bf16[64,256], index: 0, kind: input, shape index: {}]   ;;  %s3283_s1 = inlined_call_operand.vmem [shape: bf16[256,512], index: 1, kind: input, shape index: {}]   ;;  %s3284_s2 = inlined_call_operand.vmem [shape: bf16[1,512], index: 2, kind: input, shape index: {}]   ;;  %s3285_s3 = inlined_call_operand.hbm [shape: bf16[512,256], index: 3, kind: input, shape index: {}]   ;;  %s3286_s4 = inlined_call_operand.vmem [shape: bf16[1,256], index: 4, kind: input, shape index: {}]   ;;  %s3287_s5 = inlined_call_operand.vmem [shape: bf16[1,256], index: 5, kind: input, shape index: {}]   ;;  %s3288_s6 = inlined_call_operand.vmem [shape: bf16[1,256], index: 6, kind: input, shape index: {}]   ;;  %s3289_s7 = inlined_call_operand.hbm [shape: bf16[64,256], index: 7, kind: output, shape index: {}]  }
   0x1   :  { %13 = vsyncpa [#allocation4], 0 }
   0x2   :  { %15 = vsyncpa [#allocation4 + $0x1], 0  ;;  %s2596_s24 = smov 0   ;;  %s2598_s25 = smov 0  }
   0x3   :  { %s2600_s26 = smov 0   ;;  %s2602_s27 = smov 0  }
   0x4 LB: > { %s2617_s28 = sadd.s32 4294967295, %s2548_s27   ;;  %s1708_s29 = sadd.s32 4294967294, %s2548_s27   ;;  %s2548_s27 = sphi %s2602_s27, %s3296_s27   ;;  %s2544_s26 = sphi %s2600_s26, %s3295_s26   ;;  %s2540_s25 = sphi %s2598_s25, %s3294_s25   ;;  %s2536_s24 = sphi %s2596_s24, %s3293_s24  }
   0x5   : > { %s2621_s30 = sadd.s32 1, %s2548_s27   ;;  %s180_s8 = sadd.s32 1, %s2544_s26 }
   0x6   : > { %s177_s9 = ssub.s32 %s2548_s27, %s2621_s30  ;;  %p190_p0 = scmp.ne.s32.totalorder %s2544_s26, %s2540_s25 }
   0x7   : > { %p178_p1 = scmp.eq.s32.totalorder %s177_s9, 0  ;;  %p191_p2 = scmp.eq.s32.totalorder %s2617_s28, 1 }
   0x8   : > { %p196_p3 = scmp.ne.s32.totalorder %s2540_s25, %s2536_s24  ;;  %p197_p4 = scmp.eq.s32.totalorder %s1708_s29, 1 }
   0x9   : > { %s2632_s10 = scalar_select %p178_p1, %s2544_s26, %s180_s8  }
   0xa   : > { %p2634_p5 = por %p191_p2, %p190_p0  ;;  %p2638_p6 = por %p197_p4, %p196_p3 }
   0xb   : > { %p1709_p7 = scmp.ge.s32.totalorder %s2548_s27, 1  ;;  %p204_p8 = scmp.lt.s32.totalorder %s2548_s27, 3 }
   0xc   : > { %p2401_p9 = scmp.eq.s32.totalorder %s2617_s28, 0  ;;  %s221_s15 = sshll.u32 %s3285_s3, 4  ;;  %s222_s15 = int_to_ptr.hbm [resolvable:$true] %s221_s15 }
   0xd   : > { %p205_p10 = pnand %p1709_p7, %p204_p8  ;;  %s2550_s16 = smov [#allocation2]  }
   0xe   : > { %s223_s17 = sshll.u32 %s2550_s16, 4  ;;  %s2551_s18 = smov 128   ;;  %s224_s17 = int_to_ptr.vmem [resolvable:$true] %s223_s17 }
   0xf   : > { %p2393_p11 = pneg %p205_p10  ;;  %s2552_s19 = smov 8  }
  0x10   : > { %258 = sbr.rel (%p205_p10) target bundleno = 708 (0x2c4), region = 48 }
  0x11   : > { %p2394_p12 = pnand %p2401_p9, %p2393_p11 }
  0x13   : > { %2396 = dma.hbm_to_vmem [thread:$0]  (!%p2394_p12), %s222_s15, 8192, %s224_s17, [#allocation3], %s2551_s18, %s2551_s18, %s2552_s19  }
  0x15   : > { %2527 = dma.done.wait (%p2401_p9), [#allocation3], 8192  }
  0x16   : > { %2529 = vsyncadd (%p2401_p9), [#allocation3], 4294959104  ;;  %s1715_s20 = sshll.u32 %s2617_s28, 2  ;;  %v1848_v0 = vld [vmem:[%s3283_s1 + $0xe0] sm:$0xf]  ;;  %s289_s16 = sand.u32 1, %s2540_s25  }
  0x17   : > { %v2287_v1 = vld [vmem:[%s3283_s1 + $0xec] sm:$0xf0]  ;;  %v1976_v2 = vld [vmem:[%s3283_s1 + $0x1e0] sm:$0xf]  ;;  %v2285_v5 = vld [vmem:[%s3283_s1 + $0xe4] sm:$0xf] }
  0x18   : > { %v1849_v3 = vor.u32 %v2287_v1, %v1848_v0  ;;  %v2319_v4 = vld [vmem:[%s3283_s1 + $0x1ec] sm:$0xf0]  ;;  %v1850_v6 = vld [vmem:[%s3283_s1 + $0xf0] sm:$0xf0]  ;;  %v2317_v9 = vld [vmem:[%s3283_s1 + $0x1e4] sm:$0xf] }
  0x19   : > { %v1977_v7 = vor.u32 %v2319_v4, %v1976_v2  ;;  %v1853_v8 = vor.u32 %v2285_v5, %v1850_v6  ;;  %v1978_v10 = vld [vmem:[%s3283_s1 + $0x1f0] sm:$0xf0]  ;;  %v1832_v11 = vld [vmem:[%s3283_s1 + $0xc0] sm:$0xf]  ;;  %v2283_v13 = vld [vmem:[%s3283_s1 + $0xcc] sm:$0xf0] }
  0x1a   : > { %723 = vmatpush.bf16.msra.mxu0 %v1849_v3  ;;  %v1981_v12 = vor.u32 %v2317_v9, %v1978_v10  ;;  %v1960_v14 = vld [vmem:[%s3283_s1 + $0x1c0] sm:$0xf]  ;;  %v2315_v15 = vld [vmem:[%s3283_s1 + $0x1cc] sm:$0xf0]  ;;  %v1833_v16 = vor.u32 %v2283_v13, %v1832_v11  ;;  %v2281_v18 = vld [vmem:[%s3283_s1 + $0xc4] sm:$0xf] }
  0x1b   : > { %742 = vmatpush.bf16.msra.mxu1 %v1977_v7  ;;  %761 = vmatpush.bf16.msra.mxu2 %v1853_v8  ;;  %v1961_v17 = vor.u32 %v2315_v15, %v1960_v14  ;;  %v1834_v19 = vld [vmem:[%s3283_s1 + $0xd0] sm:$0xf0]  ;;  %v2313_v20 = vld [vmem:[%s3283_s1 + $0x1c4] sm:$0xf]  ;;  %v1816_v23 = vld [vmem:[%s3283_s1 + $0xa0] sm:$0xf] }
  0x1c   : > { %780 = vmatpush.bf16.msra.mxu3 %v1981_v12  ;;  %v1837_v21 = vor.u32 %v2281_v18, %v1834_v19  ;;  %v1962_v22 = vld [vmem:[%s3283_s1 + $0x1d0] sm:$0xf0]  ;;  %v2279_v24 = vld [vmem:[%s3283_s1 + $0xac] sm:$0xf0]  ;;  %v1944_v26 = vld [vmem:[%s3283_s1 + $0x1a0] sm:$0xf] }
  0x1d   : > { %v1965_v25 = vor.u32 %v2313_v20, %v1962_v22  ;;  %v2311_v27 = vld [vmem:[%s3283_s1 + $0x1ac] sm:$0xf0]  ;;  %v2277_v28 = vld [vmem:[%s3283_s1 + $0xa4] sm:$0xf]  ;;  %v1817_v29 = vor.u32 %v2279_v24, %v1816_v23  ;;  %v1818_v30 = vld [vmem:[%s3283_s1 + $0xb0] sm:$0xf0] }
  0x1e   : > { %724 = vmatpush.bf16.msra.mxu0 %v1833_v16  ;;  %v2309_v31 = vld [vmem:[%s3283_s1 + $0x1a4] sm:$0xf]  ;;  %v1946_v32 = vld [vmem:[%s3283_s1 + $0x1b0] sm:$0xf0]  ;;  %v1945_v33 = vor.u32 %v2311_v27, %v1944_v26  ;;  %v1821_v34 = vor.u32 %v2277_v28, %v1818_v30  ;;  %v1800_v35 = vld [vmem:[%s3283_s1 + $0x80] sm:$0xf] }
  0x1f   : > { %743 = vmatpush.bf16.msra.mxu1 %v1961_v17  ;;  %762 = vmatpush.bf16.msra.mxu2 %v1837_v21  ;;  %v2275_v36 = vld [vmem:[%s3283_s1 + $0x8c] sm:$0xf0]  ;;  %v1928_v37 = vld [vmem:[%s3283_s1 + $0x180] sm:$0xf]  ;;  %v1949_v38 = vor.u32 %v2309_v31, %v1946_v32  ;;  %v2273_v40 = vld [vmem:[%s3283_s1 + $0x84] sm:$0xf] }
  0x20   : > { %781 = vmatpush.bf16.msra.mxu3 %v1965_v25  ;;  %v2307_v39 = vld [vmem:[%s3283_s1 + $0x18c] sm:$0xf0]  ;;  %v1802_v41 = vld [vmem:[%s3283_s1 + $0x90] sm:$0xf0]  ;;  %v2305_v42 = vld [vmem:[%s3283_s1 + $0x184] sm:$0xf]  ;;  %v1801_v44 = vor.u32 %v2275_v36, %v1800_v35 }
  0x21   : > { %v1930_v43 = vld [vmem:[%s3283_s1 + $0x190] sm:$0xf0]  ;;  %p2753_p13 = scmp.lt.s32.totalorder %s1715_s20, 7  ;;  %v1929_v45 = vor.u32 %v2307_v39, %v1928_v37  ;;  %v1805_v46 = vor.u32 %v2273_v40, %v1802_v41  ;;  %v1784_v47 = vld [vmem:[%s3283_s1 + $0x60] sm:$0xf]  ;;  %s1714_s19 = sshll.u32 %s289_s16, 5 }
  0x22   : > { %725 = vmatpush.bf16.msra.mxu0 %v1817_v29  ;;  %v2271_v48 = vld [vmem:[%s3283_s1 + $0x6c] sm:$0xf0]  ;;  %v1912_v49 = vld [vmem:[%s3283_s1 + $0x160] sm:$0xf]  ;;  %v1933_v50 = vor.u32 %v2305_v42, %v1930_v43  ;;  %v2269_v52 = vld [vmem:[%s3283_s1 + $0x64] sm:$0xf] }
  0x23   : > { %744 = vmatpush.bf16.msra.mxu1 %v1945_v33  ;;  %763 = vmatpush.bf16.msra.mxu2 %v1821_v34  ;;  %v2303_v51 = vld [vmem:[%s3283_s1 + $0x16c] sm:$0xf0]  ;;  %v1786_v53 = vld [vmem:[%s3283_s1 + $0x70] sm:$0xf0]  ;;  %v2301_v54 = vld [vmem:[%s3283_s1 + $0x164] sm:$0xf]  ;;  %v1785_v56 = vor.u32 %v2271_v48, %v1784_v47 }
  0x24   : > { %782 = vmatpush.bf16.msra.mxu3 %v1949_v38  ;;  %v1914_v55 = vld [vmem:[%s3283_s1 + $0x170] sm:$0xf0]  ;;  %s3298_s20 = smov (!%p2753_p13, %s1715_s20), 7  ;;  %v1913_v57 = vor.u32 %v2303_v51, %v1912_v49  ;;  %v1789_v58 = vor.u32 %v2269_v52, %v1786_v53  ;;  %v1768_v59 = vld [vmem:[%s3283_s1 + $0x40] sm:$0xf]  ;;  %s2386_s17 = sshll.u32 %s2617_s28, 5 }
  0x25   : > { %v2267_v60 = vld [vmem:[%s3283_s1 + $0x4c] sm:$0xf0]  ;;  %v1896_v61 = vld [vmem:[%s3283_s1 + $0x140] sm:$0xf]  ;;  %v1917_v62 = vor.u32 %v2301_v54, %v1914_v55  ;;  %v2265_v0 = vld [vmem:[%s3283_s1 + $0x44] sm:$0xf]  ;;  %s1630_s22 = scalar_lea.hbm %s3289_s7, %s2386_s17 }
  0x26   : > { %726 = vmatpush.bf16.msra.mxu0 %v1801_v44  ;;  %v2299_v63 = vld [vmem:[%s3283_s1 + $0x14c] sm:$0xf0]  ;;  %v1770_v1 = vld [vmem:[%s3283_s1 + $0x50] sm:$0xf0]  ;;  %v2297_v2 = vld [vmem:[%s3283_s1 + $0x144] sm:$0xf]  ;;  %v1769_v4 = vor.u32 %v2267_v60, %v1768_v59 }
  0x27   : > { %745 = vmatpush.bf16.msra.mxu1 %v1929_v45  ;;  %764 = vmatpush.bf16.msra.mxu2 %v1805_v46  ;;  %v1898_v3 = vld [vmem:[%s3283_s1 + $0x150] sm:$0xf0]  ;;  %s2252_s14 = sshll.u32 %s3298_s20, 3  ;;  %v1897_v5 = vor.u32 %v2299_v63, %v1896_v61  ;;  %v1773_v6 = vor.u32 %v2265_v0, %v1770_v1  ;;  %v1752_v7 = vld [vmem:[%s3283_s1 + $0x20] sm:$0xf]  ;;  %s1633_s20 = sshll.u32 %s1630_s22, 4  ;;  %s1634_s20 = int_to_ptr.hbm [resolvable:$true] %s1633_s20 }
  0x28   : > { %783 = vmatpush.bf16.msra.mxu3 %v1933_v50  ;;  %v2263_v8 = vld [vmem:[%s3283_s1 + $0x2c] sm:$0xf0]  ;;  %v1880_v9 = vld [vmem:[%s3283_s1 + $0x120] sm:$0xf]  ;;  %v1901_v10 = vor.u32 %v2297_v2, %v1898_v3  ;;  %v2261_v12 = vld [vmem:[%s3283_s1 + $0x24] sm:$0xf]  ;;  %s2845_s29 = scalar_lea.vmem %s3282_s0, %s2252_s14 }
  0x29   : > { %v2295_v11 = vld [vmem:[%s3283_s1 + $0x12c] sm:$0xf0]  ;;  %v1754_v13 = vld [vmem:[%s3283_s1 + $0x30] sm:$0xf0]  ;;  %v2293_v14 = vld [vmem:[%s3283_s1 + $0x124] sm:$0xf]  ;;  %v1753_v16 = vor.u32 %v2263_v8, %v1752_v7 }
  0x2a   : > { %727 = vmatpush.bf16.msra.mxu0 %v1785_v56  ;;  %v1882_v15 = vld [vmem:[%s3283_s1 + $0x130] sm:$0xf0]  ;;  %v1736_v17 = vld [vmem:[%s3283_s1] sm:$0xf]  ;;  %v2259_v18 = vld [vmem:[%s3283_s1 + $0xc] sm:$0xf0]  ;;  %v1881_v19 = vor.u32 %v2295_v11, %v1880_v9  ;;  %v1757_v20 = vor.u32 %v2261_v12, %v1754_v13 }
  0x2b   : > { %746 = vmatpush.bf16.msra.mxu1 %v1913_v57  ;;  %765 = vmatpush.bf16.msra.mxu2 %v1789_v58  ;;  %v1864_v21 = vld [vmem:[%s3283_s1 + $0x100] sm:$0xf]  ;;  %v2291_v22 = vld [vmem:[%s3283_s1 + $0x10c] sm:$0xf0]  ;;  %v2257_v23 = vld [vmem:[%s3283_s1 + $0x4] sm:$0xf]  ;;  %v1885_v24 = vor.u32 %v2293_v14, %v1882_v15  ;;  %v1737_v31 = vor.u32 %v2259_v18, %v1736_v17 }
  0x2c   : > { %784 = vmatpush.bf16.msra.mxu3 %v1917_v62  ;;  %v1738_v25 = vld [vmem:[%s3283_s1 + $0x10] sm:$0xf0]  ;;  %v2289_v26 = vld [vmem:[%s3283_s1 + $0x104] sm:$0xf]  ;;  %v1720_v28 = vld [vmem:[%s2845_s29] sm:$0xf]  ;;  %v1865_v35 = vor.u32 %v2291_v22, %v1864_v21 }
  0x2d   : > { %v1866_v27 = vld [vmem:[%s3283_s1 + $0x110] sm:$0xf0]  ;;  %v2286_v29 = vld [vmem:[%s3283_s1 + $0xec] sm:$0xf]  ;;  %v1858_v30 = vld [vmem:[%s3283_s1 + $0xf8] sm:$0xf0]  ;;  %v1741_v36 = vor.u32 %v2257_v23, %v1738_v25 }
  0x2e   : > { %728 = vmatpush.bf16.msra.mxu0 %v1769_v4  ;;  %v2254_v32 = vld [vmem:[%s2845_s29 + $0x4] sm:$0xf0]  ;;  %v2320_v34 = vld [vmem:[%s3283_s1 + $0x1f4] sm:$0xf0]  ;;  %v2253_v37 = vld [vmem:[%s2845_s29 + $0x4] sm:$0xf]  ;;  %v1869_v39 = vor.u32 %v2289_v26, %v1866_v27  ;;  %v1861_v40 = vor.u32 %v2286_v29, %v1858_v30 }
  0x2f   : > { %747 = vmatpush.bf16.msra.mxu1 %v1897_v5  ;;  %766 = vmatpush.bf16.msra.mxu2 %v1773_v6  ;;  %v1984_v33 = vld [vmem:[%s3283_s1 + $0x1e8] sm:$0xf]  ;;  %v1722_v38 = vld [vmem:[%s2845_s29 + $0x8] sm:$0xf0]  ;;  %v2288_v42 = vld [vmem:[%s3283_s1 + $0xf4] sm:$0xf0]  ;;  %v2890_v44 = vor.u32 %v2254_v32, %v1720_v28 }
  0x30   : > { %785 = vmatpush.bf16.msra.mxu3 %v1901_v10  ;;  %v1856_v41 = vld [vmem:[%s3283_s1 + $0xe8] sm:$0xf]  ;;  %v2318_v43 = vld [vmem:[%s3283_s1 + $0x1ec] sm:$0xf]  ;;  %v1985_v45 = vor.u32 %v2320_v34, %v1984_v33  ;;  %v1986_v46 = vld [vmem:[%s3283_s1 + $0x1f8] sm:$0xf0]  ;;  %v2901_v49 = vor.u32 %v2253_v37, %v1722_v38 }
  0x31   : > { %v2282_v47 = vld [vmem:[%s3283_s1 + $0xcc] sm:$0xf]  ;;  %v1842_v48 = vld [vmem:[%s3283_s1 + $0xd8] sm:$0xf0]  ;;  %v1968_v50 = vld [vmem:[%s3283_s1 + $0x1c8] sm:$0xf]  ;;  %v1857_v52 = vor.u32 %v2288_v42, %v1856_v41  ;;  %v1989_v53 = vor.u32 %v2318_v43, %v1986_v46 }
  0x32   : > { %729 = vmatpush.bf16.msra.mxu0 %v1753_v16  ;;  %v2316_v51 = vld [vmem:[%s3283_s1 + $0x1d4] sm:$0xf0]  ;;  %v1845_v54 = vor.u32 %v2282_v47, %v1842_v48  ;;  %v1840_v55 = vld [vmem:[%s3283_s1 + $0xc8] sm:$0xf]  ;;  %v2314_v57 = vld [vmem:[%s3283_s1 + $0x1cc] sm:$0xf] }
  0x33   : > { %748 = vmatpush.bf16.msra.mxu1 %v1881_v19  ;;  %767 = vmatpush.bf16.msra.mxu2 %v1757_v20  ;;  %v2284_v56 = vld [vmem:[%s3283_s1 + $0xd4] sm:$0xf0]  ;;  %v1969_v58 = vor.u32 %v2316_v51, %v1968_v50  ;;  %v1970_v59 = vld [vmem:[%s3283_s1 + $0x1d8] sm:$0xf0]  ;;  %v2278_v60 = vld [vmem:[%s3283_s1 + $0xac] sm:$0xf] }
  0x34   : > { %786 = vmatpush.bf16.msra.mxu3 %v1885_v24  ;;  %v1826_v61 = vld [vmem:[%s3283_s1 + $0xb8] sm:$0xf0]  ;;  %v1952_v62 = vld [vmem:[%s3283_s1 + $0x1a8] sm:$0xf]  ;;  %v2312_v63 = vld [vmem:[%s3283_s1 + $0x1b4] sm:$0xf0]  ;;  %v1841_v0 = vor.u32 %v2284_v56, %v1840_v55  ;;  %v1973_v1 = vor.u32 %v2314_v57, %v1970_v59 }
  0x35   : > { %v1829_v2 = vor.u32 %v2278_v60, %v1826_v61  ;;  %v1824_v3 = vld [vmem:[%s3283_s1 + $0xa8] sm:$0xf]  ;;  %v2280_v4 = vld [vmem:[%s3283_s1 + $0xb4] sm:$0xf0]  ;;  %v2310_v5 = vld [vmem:[%s3283_s1 + $0x1ac] sm:$0xf]  ;;  %v1953_v6 = vor.u32 %v2312_v63, %v1952_v62 }
  0x36   : > { %730 = vmatpush.bf16.msra.mxu0 %v1737_v31  ;;  %v1954_v7 = vld [vmem:[%s3283_s1 + $0x1b8] sm:$0xf0]  ;;  %v2274_v8 = vld [vmem:[%s3283_s1 + $0x8c] sm:$0xf]  ;;  %v1936_v10 = vld [vmem:[%s3283_s1 + $0x188] sm:$0xf]  ;;  %v1825_v12 = vor.u32 %v2280_v4, %v1824_v3 }
  0x37   : > { %749 = vmatpush.bf16.msra.mxu1 %v1865_v35  ;;  %768 = vmatpush.bf16.msra.mxu2 %v1741_v36  ;;  %v1810_v9 = vld [vmem:[%s3283_s1 + $0x98] sm:$0xf0]  ;;  %v2308_v11 = vld [vmem:[%s3283_s1 + $0x194] sm:$0xf0]  ;;  %v1808_v13 = vld [vmem:[%s3283_s1 + $0x88] sm:$0xf]  ;;  %v1957_v14 = vor.u32 %v2310_v5, %v1954_v7 }
  0x38   : > { %787 = vmatpush.bf16.msra.mxu3 %v1869_v39  ;;  %v1813_v15 = vor.u32 %v2274_v8, %v1810_v9  ;;  %v2276_v16 = vld [vmem:[%s3283_s1 + $0x94] sm:$0xf0]  ;;  %v2306_v17 = vld [vmem:[%s3283_s1 + $0x18c] sm:$0xf]  ;;  %v1938_v18 = vld [vmem:[%s3283_s1 + $0x198] sm:$0xf0]  ;;  %v1937_v19 = vor.u32 %v2308_v11, %v1936_v10 }
  0x39   : > { %731 = vmatmul.bf16.vlgmr.msra.gmra.mxu0 %v2890_v44  ;;  %v1728_v20 = vld [vmem:[%s2845_s29 + $0x10] sm:$0xf]  ;;  %v2270_v21 = vld [vmem:[%s3283_s1 + $0x6c] sm:$0xf]  ;;  %v1794_v22 = vld [vmem:[%s3283_s1 + $0x78] sm:$0xf0]  ;;  %v1809_v26 = vor.u32 %v2276_v16, %v1808_v13  ;;  %v1941_v29 = vor.u32 %v2306_v17, %v1938_v18 }
  0x3a   : > { %750 = vmatmul.bf16.vlgmr.msra.gmra.mxu1 %v2901_v49  ;;  %769 = vmatmul.bf16.vlgmr.msra.gmra.mxu2 %v2890_v44  ;;  %v2256_v23 = vld [vmem:[%s2845_s29 + $0x14] sm:$0xf0]  ;;  %v1920_v24 = vld [vmem:[%s3283_s1 + $0x168] sm:$0xf]  ;;  %v2255_v27 = vld [vmem:[%s2845_s29 + $0x14] sm:$0xf]  ;;  %v1797_v30 = vor.u32 %v2270_v21, %v1794_v22 }
  0x3b   : > { %837 = vmatpush.bf16.msrb.mxu2 %v1861_v40  ;;  %818 = vmatpush.bf16.msrb.mxu1 %v1985_v45  ;;  %v2304_v25 = vld [vmem:[%s3283_s1 + $0x174] sm:$0xf0]  ;;  %v1730_v28 = vld [vmem:[%s2845_s29 + $0x18] sm:$0xf0]  ;;  %v1792_v31 = vld [vmem:[%s3283_s1 + $0x68] sm:$0xf]  ;;  %v2998_v34 = vor.u32 %v2256_v23, %v1728_v20 }
  0x3c   : > { %788 = vmatmul.bf16.vlgmr.msra.gmra.mxu3 %v2901_v49  ;;  %799 = vmatpush.bf16.msrb.mxu0 %v1857_v52  ;;  %v2272_v32 = vld [vmem:[%s3283_s1 + $0x74] sm:$0xf0]  ;;  %v2302_v33 = vld [vmem:[%s3283_s1 + $0x16c] sm:$0xf]  ;;  %v1921_v35 = vor.u32 %v2304_v25, %v1920_v24  ;;  %v1922_v36 = vld [vmem:[%s3283_s1 + $0x178] sm:$0xf0]  ;;  %v3009_v39 = vor.u32 %v2255_v27, %v1730_v28 }
  0x3d   : > { %856 = vmatpush.bf16.msrb.mxu3 %v1989_v53  ;;  %v2266_v37 = vld [vmem:[%s3283_s1 + $0x4c] sm:$0xf]  ;;  %v1778_v38 = vld [vmem:[%s3283_s1 + $0x58] sm:$0xf0]  ;;  %v1904_v40 = vld [vmem:[%s3283_s1 + $0x148] sm:$0xf]  ;;  %v1793_v42 = vor.u32 %v2272_v32, %v1792_v31  ;;  %v1925_v43 = vor.u32 %v2302_v33, %v1922_v36 }
  0x3e   : > { %v2300_v41 = vld [vmem:[%s3283_s1 + $0x154] sm:$0xf0]  ;;  %v1781_v45 = vor.u32 %v2266_v37, %v1778_v38  ;;  %v1776_v46 = vld [vmem:[%s3283_s1 + $0x48] sm:$0xf]  ;;  %v2298_v48 = vld [vmem:[%s3283_s1 + $0x14c] sm:$0xf] }
  0x3f   : > { %838 = vmatpush.bf16.msrb.mxu2 %v1845_v54  ;;  %819 = vmatpush.bf16.msrb.mxu1 %v1969_v58  ;;  %v2268_v47 = vld [vmem:[%s3283_s1 + $0x54] sm:$0xf0]  ;;  %v1905_v50 = vor.u32 %v2300_v41, %v1904_v40  ;;  %v1906_v51 = vld [vmem:[%s3283_s1 + $0x158] sm:$0xf0]  ;;  %v2262_v52 = vld [vmem:[%s3283_s1 + $0x2c] sm:$0xf] }
  0x40   : > { %800 = vmatpush.bf16.msrb.mxu0 %v1841_v0  ;;  %v1762_v53 = vld [vmem:[%s3283_s1 + $0x38] sm:$0xf0]  ;;  %v1888_v54 = vld [vmem:[%s3283_s1 + $0x128] sm:$0xf]  ;;  %v2296_v55 = vld [vmem:[%s3283_s1 + $0x134] sm:$0xf0]  ;;  %v1777_v56 = vor.u32 %v2268_v47, %v1776_v46  ;;  %v1909_v57 = vor.u32 %v2298_v48, %v1906_v51 }
  0x41   : > { %857 = vmatpush.bf16.msrb.mxu3 %v1973_v1  ;;  %v1765_v58 = vor.u32 %v2262_v52, %v1762_v53  ;;  %v1760_v59 = vld [vmem:[%s3283_s1 + $0x28] sm:$0xf]  ;;  %v2264_v60 = vld [vmem:[%s3283_s1 + $0x34] sm:$0xf0]  ;;  %v2294_v61 = vld [vmem:[%s3283_s1 + $0x12c] sm:$0xf]  ;;  %v1889_v62 = vor.u32 %v2296_v55, %v1888_v54 }
  0x42   : > { %v1890_v63 = vld [vmem:[%s3283_s1 + $0x138] sm:$0xf0]  ;;  %v2258_v0 = vld [vmem:[%s3283_s1 + $0xc] sm:$0xf]  ;;  %v2292_v3 = vld [vmem:[%s3283_s1 + $0x114] sm:$0xf0]  ;;  %v1761_v4 = vor.u32 %v2264_v60, %v1760_v59 }
  0x43   : > { %839 = vmatpush.bf16.msrb.mxu2 %v1829_v2  ;;  %820 = vmatpush.bf16.msrb.mxu1 %v1953_v6  ;;  %v1746_v1 = vld [vmem:[%s3283_s1 + $0x18] sm:$0xf0]  ;;  %v1872_v2 = vld [vmem:[%s3283_s1 + $0x108] sm:$0xf]  ;;  %v2112_v5 = vld [vmem:[#allocation2 + $0xf0] sm:$0xf]  ;;  %v1893_v7 = vor.u32 %v2294_v61, %v1890_v63 }
  0x44   : > { %801 = vmatpush.bf16.msrb.mxu0 %v1825_v12  ;;  %v2352_v6 = vld [vmem:[#allocation2 + $0xf4] sm:$0xf0]  ;;  %v1749_v8 = vor.u32 %v2258_v0, %v1746_v1  ;;  %v1744_v9 = vld [vmem:[%s3283_s1 + $0x8] sm:$0xf]  ;;  %v2290_v11 = vld [vmem:[%s3283_s1 + $0x10c] sm:$0xf]  ;;  %v1873_v12 = vor.u32 %v2292_v3, %v1872_v2 }
  0x45   : > { %858 = vmatpush.bf16.msrb.mxu3 %v1957_v14  ;;  %v2260_v10 = vld [vmem:[%s3283_s1 + $0x14] sm:$0xf0]  ;;  %v1874_v13 = vld [vmem:[%s3283_s1 + $0x118] sm:$0xf0]  ;;  %v2048_v14 = vld [vmem:[#allocation2 + $0x70] sm:$0xf]  ;;  %v2113_v16 = vor.u32 %v2352_v6, %v2112_v5 }
  0x46   : > { %v1745_v17 = vor.u32 %v2260_v10, %v1744_v9  ;;  %v1877_v18 = vor.u32 %v2290_v11, %v1874_v13  ;;  %v2040_v20 = vld [vmem:[#allocation2 + $0x60] sm:$0xf]  ;;  %v2334_v21 = vld [vmem:[#allocation2 + $0x64] sm:$0xf0]  ;;  %v2332_v27 = vld [vmem:[#allocation2 + $0x54] sm:$0xf0] }
  0x47   : > { %840 = vmatpush.bf16.msrb.mxu2 %v1813_v15  ;;  %821 = vmatpush.bf16.msrb.mxu1 %v1937_v19  ;;  %v2336_v15 = vld [vmem:[#allocation2 + $0x74] sm:$0xf0]  ;;  %v2104_v22 = vld [vmem:[#allocation2 + $0xe0] sm:$0xf]  ;;  %v2350_v23 = vld [vmem:[#allocation2 + $0xe4] sm:$0xf0]  ;;  %v2041_v24 = vor.u32 %v2334_v21, %v2040_v20 }
  0x48   : > { %802 = vmatpush.bf16.msrb.mxu0 %v1809_v26  ;;  %v2049_v19 = vor.u32 %v2336_v15, %v2048_v14  ;;  %v2105_v25 = vor.u32 %v2350_v23, %v2104_v22  ;;  %v2032_v26 = vld [vmem:[#allocation2 + $0x50] sm:$0xf]  ;;  %v2088_v37 = vld [vmem:[#allocation2 + $0xc0] sm:$0xf]  ;;  %v2346_v38 = vld [vmem:[#allocation2 + $0xc4] sm:$0xf0] }
  0x49   : > { %859 = vmatpush.bf16.msrb.mxu3 %v1941_v29  ;;  %736 = vmatmul.bf16.gmra.mxu0 %v2998_v34  ;;  %v2033_v28 = vor.u32 %v2332_v27, %v2032_v26  ;;  %v2024_v29 = vld [vmem:[#allocation2 + $0x40] sm:$0xf]  ;;  %v2096_v32 = vld [vmem:[#allocation2 + $0xd0] sm:$0xf]  ;;  %v2089_v40 = vor.u32 %v2346_v38, %v2088_v37  ;;  %v2344_v46 = vld [vmem:[#allocation2 + $0xb4] sm:$0xf0] }
  0x4a   : > { %755 = vmatmul.bf16.gmra.mxu1 %v3009_v39  ;;  %774 = vmatmul.bf16.gmra.mxu2 %v2998_v34  ;;  %v2008_v41 = vld [vmem:[#allocation2 + $0x20] sm:$0xf]  ;;  %v2324_v47 = vld [vmem:[#allocation2 + $0x14] sm:$0xf0]  ;;  %v2342_v51 = vld [vmem:[#allocation2 + $0xa4] sm:$0xf0] }
  0x4b   : > { %841 = vmatpush.bf16.msrb.mxu2 %v1797_v30  ;;  %822 = vmatpush.bf16.msrb.mxu1 %v1921_v35  ;;  %v2330_v30 = vld [vmem:[#allocation2 + $0x44] sm:$0xf0]  ;;  %v2328_v35 = vld [vmem:[#allocation2 + $0x34] sm:$0xf0]  ;;  %v1992_v53 = vld [vmem:[#allocation2] sm:$0xf] }
  0x4c   : > { %793 = vmatmul.bf16.gmra.mxu3 %v3009_v39  ;;  %803 = vmatpush.bf16.msrb.mxu0 %v1793_v42  ;;  %v2025_v31 = vor.u32 %v2330_v30, %v2024_v29  ;;  %v2326_v42 = vld [vmem:[#allocation2 + $0x24] sm:$0xf0]  ;;  %v2176_v59 = vld [vmem:[#allocation2 + $0x170] sm:$0xf]  ;;  %v2368_v60 = vld [vmem:[#allocation2 + $0x174] sm:$0xf0] }
  0x4d   : > { %860 = vmatpush.bf16.msrb.mxu3 %v1925_v43  ;;  %v2009_v43 = vor.u32 %v2326_v42, %v2008_v41  ;;  %v2322_v54 = vld [vmem:[#allocation2 + $0x4] sm:$0xf0]  ;;  %v2335_v61 = vld [vmem:[#allocation2 + $0x74] sm:$0xf]  ;;  %v2050_v63 = vld [vmem:[#allocation2 + $0x78] sm:$0xf0] }
  0x4e   : > { %v1993_v55 = vor.u32 %v2322_v54, %v1992_v53  ;;  %v2053_v0 = vor.u32 %v2335_v61, %v2050_v63  ;;  %v2056_v1 = vld [vmem:[#allocation2 + $0x80] sm:$0xf]  ;;  %v2338_v2 = vld [vmem:[#allocation2 + $0x84] sm:$0xf0]  ;;  %v2042_v9 = vld [vmem:[#allocation2 + $0x68] sm:$0xf0] }
  0x4f   : > { %842 = vmatpush.bf16.msrb.mxu2 %v1781_v45  ;;  %823 = vmatpush.bf16.msrb.mxu1 %v1905_v50  ;;  %v2080_v45 = vld [vmem:[#allocation2 + $0xb0] sm:$0xf]  ;;  %v2072_v50 = vld [vmem:[#allocation2 + $0xa0] sm:$0xf]  ;;  %v2366_v6 = vld [vmem:[#allocation2 + $0x164] sm:$0xf0] }
  0x50   : > { %804 = vmatpush.bf16.msrb.mxu0 %v1777_v56  ;;  %v2073_v52 = vor.u32 %v2342_v51, %v2072_v50  ;;  %v2064_v56 = vld [vmem:[#allocation2 + $0x90] sm:$0xf]  ;;  %v368_v3 = vld [vmem:[%s3284_s2] sm:$0xf]  ;;  %v2351_v13 = vld [vmem:[#allocation2 + $0xf4] sm:$0xf] }
  0x51   : > { %861 = vmatpush.bf16.msrb.mxu3 %v1909_v57  ;;  %v2340_v57 = vld [vmem:[#allocation2 + $0x94] sm:$0xf0]  ;;  %v2168_v5 = vld [vmem:[#allocation2 + $0x160] sm:$0xf]  ;;  %v2240_v11 = vld [vmem:[#allocation2 + $0x1f0] sm:$0xf]  ;;  %v3092_v14 = vunpack.c.l.bf16 %v368_v3 }
  0x52   : > { %v2331_v20 = vld [vmem:[#allocation2 + $0x54] sm:$0xf]  ;;  %v2034_v22 = vld [vmem:[#allocation2 + $0x58] sm:$0xf0]  ;;  %v2349_v26 = vld [vmem:[#allocation2 + $0xe4] sm:$0xf] }
  0x53   : > { %843 = vmatpush.bf16.msrb.mxu2 %v1765_v58  ;;  %824 = vmatpush.bf16.msrb.mxu1 %v1889_v62  ;;  %v2065_v58 = vor.u32 %v2340_v57, %v2064_v56  ;;  %v2177_v62 = vor.u32 %v2368_v60, %v2176_v59  ;;  %v2037_v23 = vor.u32 %v2331_v20, %v2034_v22  ;;  %v371_v27 = vperm.slane %v3092_v14, 0  ;;  %v2106_v29 = vld [vmem:[#allocation2 + $0xe8] sm:$0xf0]  ;;  %v2380_v37 = vld [vmem:[#allocation2 + $0x1d4] sm:$0xf0]  ;;  %s3224_s14 = scalar_lea.vmem [#allocation5], %s1714_s19 }
  0x54   : > { %805 = vmatpush.bf16.msrb.mxu0 %v1761_v4  ;;  %v2057_v4 = vor.u32 %v2338_v2, %v2056_v1  ;;  %v2109_v30 = vor.u32 %v2349_v26, %v2106_v29  ;;  %v2347_v38 = vld [vmem:[#allocation2 + $0xd4] sm:$0xf]  ;;  %v2018_v50 = vld [vmem:[#allocation2 + $0x38] sm:$0xf0]  ;;  %v2378_v53 = vld [vmem:[#allocation2 + $0x1c4] sm:$0xf0] }
  0x55   : > { %862 = vmatpush.bf16.msrb.mxu3 %v1893_v7  ;;  %v2333_v7 = vld [vmem:[#allocation2 + $0x64] sm:$0xf]  ;;  %v372_v54 = vperm.slane %v3092_v14, 2  ;;  %v2090_v57 = vld [vmem:[#allocation2 + $0xc8] sm:$0xf0]  ;;  %s1631_s28 = sshll.u32 %s3224_s14, 4  ;;  %s1632_s28 = int_to_ptr.vmem [resolvable:$true] %s1631_s28 }
  0x56   : > { %v2045_v10 = vor.u32 %v2333_v7, %v2042_v9  ;;  %v2345_v56 = vld [vmem:[#allocation2 + $0xc4] sm:$0xf]  ;;  %v2136_v60 = vld [vmem:[#allocation2 + $0x120] sm:$0xf]  ;;  %v2358_v61 = vld [vmem:[#allocation2 + $0x124] sm:$0xf0] }
  0x57   : > { %844 = vmatpush.bf16.msrb.mxu2 %v1749_v8  ;;  %825 = vmatpush.bf16.msrb.mxu1 %v1873_v12  ;;  %v2169_v8 = vor.u32 %v2366_v6, %v2168_v5  ;;  %v2384_v12 = vld [vmem:[#allocation2 + $0x1f4] sm:$0xf0]  ;;  %v2093_v59 = vor.u32 %v2345_v56, %v2090_v57  ;;  %v2010_v63 = vld [vmem:[#allocation2 + $0x28] sm:$0xf0]  ;;  %v2137_v1 = vor.u32 %v2358_v61, %v2136_v60  ;;  %v2208_v3 = vld [vmem:[#allocation2 + $0x1b0] sm:$0xf] }
  0x58   : > { %806 = vmatpush.bf16.msrb.mxu0 %v1745_v17  ;;  %v2241_v15 = vor.u32 %v2384_v12, %v2240_v11  ;;  %v3099_v5 = vperm.slane %v372_v54, 0  ;;  %v2343_v9 = vld [vmem:[#allocation2 + $0xb4] sm:$0xf]  ;;  %v2002_v20 = vld [vmem:[#allocation2 + $0x18] sm:$0xf0]  ;;  %s1618_s23 = scalar_lea.sflag [#allocation4], %s289_s16 }
  0x59   : > { %863 = vmatpush.bf16.msrb.mxu3 %v1877_v18  ;;  %v2160_v18 = vld [vmem:[#allocation2 + $0x150] sm:$0xf]  ;;  %v2184_v56 = vld [vmem:[#allocation2 + $0x180] sm:$0xf]  ;;  %v2370_v57 = vld [vmem:[#allocation2 + $0x184] sm:$0xf0] }
  0x5a   : > { %826 = vmatmul.bf16.vlgmr.msrb.gmra.mxu1 %v2901_v49  ;;  %845 = vmatmul.bf16.vlgmr.msrb.gmra.mxu2 %v2890_v44  ;;  %v2185_v61 = vor.u32 %v2370_v57, %v2184_v56  ;;  %v2375_v56 = vld [vmem:[#allocation2 + $0x1b4] sm:$0xf]  ;;  %v2210_v57 = vld [vmem:[#allocation2 + $0x1b8] sm:$0xf0]  ;;  %s2496_s8 = sshra.s32 %s1634_s20, 4  ;;  %s2502_s15 = scalar_lea.hbm %s3289_s7, 64  ;;  %s2497_s8 = int_to_ptr.hbm [resolvable:$true] %s2496_s8 }
  0x5b   : > { %1302 = vmatpush.bf16.msra.mxu1 %v2113_v16  ;;  %807 = vmatmul.bf16.vlgmr.msrb.gmra.mxu0 %v2890_v44  ;;  %v2348_v44 = vld [vmem:[#allocation2 + $0xd4] sm:$0xf0]  ;;  %v2114_v16 = vld [vmem:[#allocation2 + $0xf8] sm:$0xf0]  ;;  %p2503_p3 = scmp.lt.s32.totalorder %s2497_s8, %s3289_s7 }
  0x5c   : > { %1283 = vmatpush.bf16.msra.mxu0 %v2049_v19  ;;  %864 = vmatmul.bf16.vlgmr.msrb.gmra.mxu3 %v2901_v49  ;;  %v2097_v33 = vor.u32 %v2348_v44, %v2096_v32  ;;  %v2016_v49 = vld [vmem:[#allocation2 + $0x30] sm:$0xf]  ;;  %v2117_v17 = vor.u32 %v2351_v13, %v2114_v16  ;;  %v2364_v19 = vld [vmem:[#allocation2 + $0x154] sm:$0xf0]  ;;  %v2362_v32 = vld [vmem:[#allocation2 + $0x144] sm:$0xf0] }
  0x5d   : > { %v2017_v36 = vor.u32 %v2328_v35, %v2016_v49  ;;  %1321 = vmatpush.bf16.msra.mxu2 %v2177_v62  ;;  %1340 = vmatpush.bf16.msra.mxu3 %v2241_v15  ;;  %v2161_v21 = vor.u32 %v2364_v19, %v2160_v18  ;;  %v2329_v44 = vld [vmem:[#allocation2 + $0x44] sm:$0xf]  ;;  %v2026_v49 = vld [vmem:[#allocation2 + $0x48] sm:$0xf0]  ;;  %v2128_v16 = vld [vmem:[#allocation2 + $0x110] sm:$0xf] }
  0x5e   : > { %v2029_v35 = vor.u32 %v2329_v44, %v2026_v49  ;;  %v2325_v62 = vld [vmem:[#allocation2 + $0x24] sm:$0xf]  ;;  %v2323_v18 = vld [vmem:[#allocation2 + $0x14] sm:$0xf]  ;;  %v2354_v44 = vld [vmem:[#allocation2 + $0x104] sm:$0xf0] }
  0x5f   : > { %1303 = vmatpush.bf16.msra.mxu1 %v2105_v25  ;;  %v2382_v25 = vld [vmem:[#allocation2 + $0x1e4] sm:$0xf0]  ;;  %v2013_v2 = vor.u32 %v2325_v62, %v2010_v63  ;;  %v2005_v22 = vor.u32 %v2323_v18, %v2002_v20  ;;  %v2321_v49 = vld [vmem:[#allocation2 + $0x4] sm:$0xf]  ;;  %v2058_v62 = vld [vmem:[#allocation2 + $0x88] sm:$0xf0] }
  0x60   : > { %1284 = vmatpush.bf16.msra.mxu0 %v2041_v24  ;;  %v2232_v24 = vld [vmem:[#allocation2 + $0x1e0] sm:$0xf]  ;;  %v2381_v20 = vld [vmem:[#allocation2 + $0x1e4] sm:$0xf] }
  0x61   : > { %1322 = vmatpush.bf16.msra.mxu2 %v2169_v8 }
  0x63   : > { %1304 = vmatpush.bf16.msra.mxu1 %v2097_v33 }
  0x64   : > { %1285 = vmatpush.bf16.msra.mxu0 %v2033_v28  ;;  %v2233_v28 = vor.u32 %v2382_v25, %v2232_v24  ;;  %v2374_v24 = vld [vmem:[#allocation2 + $0x1a4] sm:$0xf0]  ;;  %v2341_v25 = vld [vmem:[#allocation2 + $0xa4] sm:$0xf] }
  0x65   : > { %1323 = vmatpush.bf16.msra.mxu2 %v2161_v21 }
  0x66   : > { %1341 = vmatpush.bf16.msra.mxu3 %v2233_v28  ;;  %v2074_v28 = vld [vmem:[#allocation2 + $0xa8] sm:$0xf0] }
  0x67   : > { %1305 = vmatpush.bf16.msra.mxu1 %v2089_v40  ;;  %v3095_v40 = vperm.slane %v371_v27, 0 }
  0x68   : > { %1286 = vmatpush.bf16.msra.mxu0 %v2025_v31  ;;  %v2152_v31 = vld [vmem:[#allocation2 + $0x140] sm:$0xf] }
  0x69   : > { %v2153_v33 = vor.u32 %v2362_v32, %v2152_v31  ;;  %v2077_v31 = vor.u32 %v2341_v25, %v2074_v28  ;;  %v2120_v32 = vld [vmem:[#allocation2 + $0x100] sm:$0xf]  ;;  %v373_v28 = vperm.slane %v3092_v14, 4 }
  0x6a   : > { %831 = vmatmul.bf16.gmra.mxu1 %v3009_v39  ;;  %850 = vmatmul.bf16.gmra.mxu2 %v2998_v34 }
  0x6b   : > { %812 = vmatmul.bf16.gmra.mxu0 %v2998_v34  ;;  %v2081_v34 = vor.u32 %v2344_v46, %v2080_v45  ;;  %1324 = vmatpush.bf16.msra.mxu2 %v2153_v33  ;;  %v2121_v33 = vor.u32 %v2354_v44, %v2120_v32  ;;  %v2226_v32 = vld [vmem:[#allocation2 + $0x1d8] sm:$0xf0] }
  0x6c   : > { %869 = vmatmul.bf16.gmra.mxu3 %v3009_v39  ;;  %1287 = vmatpush.bf16.msra.mxu0 %v2017_v36  ;;  %v2000_v39 = vld [vmem:[#allocation2 + $0x10] sm:$0xf] }
  0x6d   : > { %1306 = vmatpush.bf16.msra.mxu1 %v2081_v34  ;;  %v2001_v48 = vor.u32 %v2324_v47, %v2000_v39  ;;  %v2224_v36 = vld [vmem:[#allocation2 + $0x1d0] sm:$0xf]  ;;  %v2360_v39 = vld [vmem:[#allocation2 + $0x134] sm:$0xf0]  ;;  %v2327_v47 = vld [vmem:[#allocation2 + $0x34] sm:$0xf] }
  0x6e   : > { %v2225_v42 = vor.u32 %v2380_v37, %v2224_v36  ;;  %v2144_v34 = vld [vmem:[#allocation2 + $0x130] sm:$0xf]  ;;  %v2021_v51 = vor.u32 %v2327_v47, %v2018_v50 }
  0x70   : > { %1288 = vmatpush.bf16.msra.mxu0 %v2009_v43  ;;  %v2098_v43 = vld [vmem:[#allocation2 + $0xd8] sm:$0xf0]  ;;  %1342 = vmatpush.bf16.msra.mxu3 %v2225_v42  ;;  %v2372_v42 = vld [vmem:[#allocation2 + $0x194] sm:$0xf0] }
  0x71   : > { %1307 = vmatpush.bf16.msra.mxu1 %v2073_v52  ;;  %v2101_v46 = vor.u32 %v2347_v38, %v2098_v43  ;;  %v2216_v52 = vld [vmem:[#allocation2 + $0x1c0] sm:$0xf]  ;;  %v2339_v43 = vld [vmem:[#allocation2 + $0x94] sm:$0xf] }
  0x74   : > { %1289 = vmatpush.bf16.msra.mxu0 %v2001_v48  ;;  %v2145_v48 = vor.u32 %v2360_v39, %v2144_v34 }
  0x75   : > { %1308 = vmatpush.bf16.msra.mxu1 %v2065_v58 }
  0x76   : > { %1325 = vmatpush.bf16.msra.mxu2 %v2145_v48  ;;  %v2066_v48 = vld [vmem:[#allocation2 + $0x98] sm:$0xf0] }
  0x78   : > { %1290 = vmatpush.bf16.msra.mxu0 %v1993_v55  ;;  %v2217_v55 = vor.u32 %v2378_v53, %v2216_v52  ;;  %v2367_v52 = vld [vmem:[#allocation2 + $0x174] sm:$0xf]  ;;  %v2178_v53 = vld [vmem:[#allocation2 + $0x178] sm:$0xf0] }
  0x79   : > { %1309 = vmatpush.bf16.msra.mxu1 %v2057_v4  ;;  %v2376_v4 = vld [vmem:[#allocation2 + $0x1b4] sm:$0xf0] }
  0x7a   : > { %1343 = vmatpush.bf16.msra.mxu3 %v2217_v55  ;;  %v2209_v8 = vor.u32 %v2376_v4, %v2208_v3  ;;  %1326 = vmatpush.bf16.msra.mxu2 %v2137_v1  ;;  %v2181_v55 = vor.u32 %v2367_v52, %v2178_v53  ;;  %v2365_v1 = vld [vmem:[#allocation2 + $0x164] sm:$0xf]  ;;  %v2138_v52 = vld [vmem:[#allocation2 + $0x128] sm:$0xf0] }
  0x7c   : > { %1359 = vmatpush.bf16.msrb.mxu0 %v2053_v0 }
  0x7d   : > { %1378 = vmatpush.bf16.msrb.mxu1 %v2117_v17  ;;  %v2356_v17 = vld [vmem:[#allocation2 + $0x114] sm:$0xf0] }
  0x7e   : > { %1344 = vmatpush.bf16.msra.mxu3 %v2209_v8  ;;  %v2129_v19 = vor.u32 %v2356_v17, %v2128_v16  ;;  %v2242_v8 = vld [vmem:[#allocation2 + $0x1f8] sm:$0xf0]  ;;  %v2363_v16 = vld [vmem:[#allocation2 + $0x154] sm:$0xf] }
  0x7f   : > { %v2162_v17 = vld [vmem:[#allocation2 + $0x158] sm:$0xf0] }
  0x80   : > { %1360 = vmatpush.bf16.msrb.mxu0 %v2045_v10  ;;  %v2082_v10 = vld [vmem:[#allocation2 + $0xb8] sm:$0xf0]  ;;  %1327 = vmatpush.bf16.msra.mxu2 %v2129_v19  ;;  %v2165_v18 = vor.u32 %v2363_v16, %v2162_v17 }
  0x81   : > { %1379 = vmatpush.bf16.msrb.mxu1 %v2109_v30  ;;  %v2085_v15 = vor.u32 %v2343_v9, %v2082_v10 }
  0x84   : > { %1361 = vmatpush.bf16.msrb.mxu0 %v2037_v23  ;;  %v2200_v23 = vld [vmem:[#allocation2 + $0x1a0] sm:$0xf]  ;;  %1328 = vmatpush.bf16.msra.mxu2 %v2121_v33 }
  0x85   : > { %1380 = vmatpush.bf16.msrb.mxu1 %v2101_v46  ;;  %v2201_v27 = vor.u32 %v2374_v24, %v2200_v23 }
  0x87   : > { %1345 = vmatpush.bf16.msra.mxu3 %v2201_v27  ;;  %v2154_v27 = vld [vmem:[#allocation2 + $0x148] sm:$0xf0] }
  0x88   : > { %1362 = vmatpush.bf16.msrb.mxu0 %v2029_v35  ;;  %v1994_v35 = vld [vmem:[#allocation2 + $0x8] sm:$0xf0]  ;;  %1397 = vmatpush.bf16.msrb.mxu2 %v2181_v55 }
  0x89   : > { %1381 = vmatpush.bf16.msrb.mxu1 %v2093_v59  ;;  %v1997_v38 = vor.u32 %v2321_v49, %v1994_v35 }
  0x8c   : > { %1363 = vmatpush.bf16.msrb.mxu0 %v2021_v51  ;;  %v2069_v51 = vor.u32 %v2339_v43, %v2066_v48 }
  0x8d   : > { %1382 = vmatpush.bf16.msrb.mxu1 %v2085_v15 }
  0x90   : > { %1364 = vmatpush.bf16.msrb.mxu0 %v2013_v2  ;;  %v2170_v2 = vld [vmem:[#allocation2 + $0x168] sm:$0xf0] }
  0x91   : > { %1383 = vmatpush.bf16.msrb.mxu1 %v2077_v31  ;;  %v2173_v4 = vor.u32 %v2365_v1, %v2170_v2  ;;  %v2379_v31 = vld [vmem:[#allocation2 + $0x1d4] sm:$0xf]  ;;  %v2373_v1 = vld [vmem:[#allocation2 + $0x1a4] sm:$0xf] }
  0x92   : > { %v2229_v35 = vor.u32 %v2379_v31, %v2226_v32 }
  0x93   : > { %1398 = vmatpush.bf16.msrb.mxu2 %v2173_v4 }
  0x94   : > { %1365 = vmatpush.bf16.msrb.mxu0 %v2005_v22 }
  0x95   : > { %1384 = vmatpush.bf16.msrb.mxu1 %v2069_v51  ;;  %v2357_v51 = vld [vmem:[#allocation2 + $0x124] sm:$0xf] }
  0x96   : > { %v2141_v55 = vor.u32 %v2357_v51, %v2138_v52 }
  0x97   : > { %1399 = vmatpush.bf16.msrb.mxu2 %v2165_v18 }
  0x98   : > { %1366 = vmatpush.bf16.msrb.mxu0 %v1997_v38 }
  0xb6   : > { %v732_v41 = vpop.f32.mrf.mxu0 }
  0xb7   : > { %v751_v45 = vpop.f32.mrf.mxu1  ;;  %v733_v58 = vadd.f32 %v732_v41, %v3095_v40  ;;  %v2192_v41 = vld [vmem:[#allocation2 + $0x190] sm:$0xf] }
  0xb8   : > { %v2193_v47 = vor.u32 %v2372_v42, %v2192_v41  ;;  %v2359_v41 = vld [vmem:[#allocation2 + $0x134] sm:$0xf]  ;;  %v2146_v42 = vld [vmem:[#allocation2 + $0x138] sm:$0xf0] }
  0xb9   : > { %v752_v11 = vadd.f32 %v751_v45, %v733_v58  ;;  %v2337_v58 = vld [vmem:[#allocation2 + $0x84] sm:$0xf] }
  0xba   : > { %1346 = vmatpush.bf16.msra.mxu3 %v2193_v47 }
  0xbb   : > { %v875_v29 = vmax.f32 %v752_v11, 0.0 }
  0xbd   : > { %v770_v0 = vpop.f32.mrf.mxu2 }
  0xbe   : > { %v734_v7 = vpop.f32.mrf.mxu0  ;;  %v771_v26 = vadd.f32 %v770_v0, %v3099_v5  ;;  %v2061_v0 = vor.u32 %v2337_v58, %v2058_v62  ;;  %1347 = vmatpush.bf16.msra.mxu3 %v2185_v61 }
  0xbf   : > { %v789_v6 = vpop.f32.mrf.mxu3  ;;  %v735_v12 = vadd.f32 %v734_v7, %v3095_v40  ;;  %v753_v13 = vpop.f32.mrf.mxu1  ;;  %v2383_v7 = vld [vmem:[#allocation2 + $0x1f4] sm:$0xf] }
  0xc0   : > { %v790_v45 = vadd.f32 %v789_v6, %v771_v26  ;;  %1385 = vmatpush.bf16.msrb.mxu1 %v2061_v0  ;;  %v2245_v11 = vor.u32 %v2383_v7, %v2242_v8  ;;  %v2361_v26 = vld [vmem:[#allocation2 + $0x144] sm:$0xf]  ;;  %v2130_v0 = vld [vmem:[#allocation2 + $0x118] sm:$0xf0]  ;;  %v2202_v7 = vld [vmem:[#allocation2 + $0x1a8] sm:$0xf0] }
  0xc1   : > { %v754_v21 = vadd.f32 %v753_v13, %v735_v12  ;;  %v2353_v8 = vld [vmem:[#allocation2 + $0x104] sm:$0xf] }
  0xc2   : > { %v876_v59 = vmax.f32 %v790_v45, 0.0  ;;  %1416 = vmatpush.bf16.msrb.mxu3 %v2245_v11  ;;  %v3118_v45 = vperm.slane %v373_v28, 0  ;;  %v2371_v11 = vld [vmem:[#allocation2 + $0x194] sm:$0xf]  ;;  %v2186_v28 = vld [vmem:[#allocation2 + $0x188] sm:$0xf0] }
  0xc3   : > { %v879_v30 = vmax.f32 %v754_v21, 0.0  ;;  %v2234_v21 = vld [vmem:[#allocation2 + $0x1e8] sm:$0xf0] }
  0xc4   : > { %v2237_v23 = vor.u32 %v2381_v20, %v2234_v21 }
  0xc5   : > { %v3103_v36 = vpack.c.bf16 %v879_v30, %v875_v29  ;;  %v772_v37 = vpop.f32.mrf.mxu2 }
  0xc6   : > { %v773_v46 = vadd.f32 %v772_v37, %v3099_v5  ;;  %v737_v39 = vpop.f32.mrf.mxu0  ;;  %1417 = vmatpush.bf16.msrb.mxu3 %v2237_v23 }
  0xc7   : > { %v791_v34 = vpop.f32.mrf.mxu3  ;;  %v756_v50 = vpop.f32.mrf.mxu1  ;;  %1291 = vmatmul.bf16.vlgmr.msra.gmra.mxu0 %v3103_v36  ;;  %v738_v63 = vadd.f32 %v737_v39, %v3095_v40  ;;  %v2218_v39 = vld [vmem:[#allocation2 + $0x1c8] sm:$0xf0] }
  0xc8   : > { %v792_v54 = vadd.f32 %v791_v34, %v773_v46  ;;  %v2149_v46 = vor.u32 %v2359_v41, %v2146_v42  ;;  %v2377_v34 = vld [vmem:[#allocation2 + $0x1c4] sm:$0xf] }
  0xc9   : > { %v757_v12 = vadd.f32 %v756_v50, %v738_v63  ;;  %v2221_v50 = vor.u32 %v2377_v34, %v2218_v39  ;;  %v2355_v63 = vld [vmem:[#allocation2 + $0x114] sm:$0xf] }
  0xca   : > { %v880_v60 = vmax.f32 %v792_v54, 0.0  ;;  %1418 = vmatpush.bf16.msrb.mxu3 %v2229_v35 }
  0xcb   : > { %v883_v24 = vmax.f32 %v757_v12, 0.0  ;;  %v2194_v12 = vld [vmem:[#allocation2 + $0x198] sm:$0xf0] }
  0xcc   : > { %v3108_v3 = vpack.c.bf16 %v880_v60, %v876_v59 }
  0xcd   : > { %v775_v6 = vpop.f32.mrf.mxu2 }
  0xce   : > { %1310 = vmatmul.bf16.vlgmr.msra.gmra.mxu1 %v3108_v3  ;;  %v739_v10 = vpop.f32.mrf.mxu0  ;;  %v776_v22 = vadd.f32 %v775_v6, %v3099_v5  ;;  %1419 = vmatpush.bf16.msrb.mxu3 %v2221_v50  ;;  %v2133_v6 = vor.u32 %v2355_v63, %v2130_v0 }
  0xcf   : > { %v794_v9 = vpop.f32.mrf.mxu3  ;;  %v740_v13 = vadd.f32 %v739_v10, %v3095_v40  ;;  %v758_v15 = vpop.f32.mrf.mxu1  ;;  %v2157_v40 = vor.u32 %v2361_v26, %v2154_v27  ;;  %v2205_v10 = vor.u32 %v2373_v1, %v2202_v7  ;;  %v2369_v27 = vld [vmem:[#allocation2 + $0x184] sm:$0xf] }
  0xd0   : > { %v795_v44 = vadd.f32 %v794_v9, %v776_v22  ;;  %v2122_v9 = vld [vmem:[#allocation2 + $0x108] sm:$0xf0] }
  0xd1   : > { %v759_v19 = vadd.f32 %v758_v15, %v740_v13  ;;  %1400 = vmatpush.bf16.msrb.mxu2 %v2157_v40  ;;  %v2125_v15 = vor.u32 %v2353_v8, %v2122_v9  ;;  %v300_v9 = vld [vmem:[%s2845_s29] sm:$0xff] }
  0xd2   : > { %v884_v47 = vmax.f32 %v795_v44, 0.0 }
  0xd3   : > { %v887_v25 = vmax.f32 %v759_v19, 0.0  ;;  %v2197_v19 = vor.u32 %v2371_v11, %v2194_v12 }
  0xd5   : > { %v777_v29 = vpop.f32.mrf.mxu2  ;;  %v3114_v30 = vpack.c.bf16 %v887_v25, %v883_v24  ;;  %1401 = vmatpush.bf16.msrb.mxu2 %v2149_v46 }
  0xd6   : > { %v778_v33 = vadd.f32 %v777_v29, %v3099_v5  ;;  %v374_v5 = vperm.slane %v3092_v14, 6  ;;  %v2213_v14 = vor.u32 %v2375_v56, %v2210_v57  ;;  %v2189_v29 = vor.u32 %v2369_v27, %v2186_v28 }
  0xd7   : > { %v796_v49 = vpop.f32.mrf.mxu3  ;;  %v827_v38 = vpop.f32.mrf.mxu1  ;;  %1296 = vmatmul.bf16.gmra.mxu0 %v3114_v30 }
  0xd8   : > { %v808_v37 = vpop.f32.mrf.mxu0  ;;  %v797_v43 = vadd.f32 %v796_v49, %v778_v33  ;;  %v3124_v58 = vperm.slane %v374_v5, 0  ;;  %1420 = vmatpush.bf16.msrb.mxu3 %v2213_v14 }
  0xd9   : > { %v809_v53 = vadd.f32 %v808_v37, %v3118_v45  ;;  %1402 = vmatpush.bf16.msrb.mxu2 %v2141_v55 }
  0xda   : > { %v888_v48 = vmax.f32 %v797_v43, 0.0 }
  0xdb   : > { %v828_v2 = vadd.f32 %v827_v38, %v809_v53 }
  0xdc   : > { %v3122_v54 = vpack.c.bf16 %v888_v48, %v884_v47  ;;  %1421 = vmatpush.bf16.msrb.mxu3 %v2205_v10 }
  0xdd   : > { %v846_v59 = vpop.f32.mrf.mxu2  ;;  %1403 = vmatpush.bf16.msrb.mxu2 %v2133_v6  ;;  %v877_v17 = vmax.f32 %v828_v2, 0.0  ;;  %v1451_v6 = vld [vmem:[%s3286_s4] sm:$0x3] }
  0xde   : > { %1315 = vmatmul.bf16.gmra.mxu1 %v3122_v54  ;;  %v847_v16 = vadd.f32 %v846_v59, %v3124_v58  ;;  %v1452_v11 = vunpack.c.l.bf16 %v1451_v6 }
  0xdf   : > { %v865_v60 = vpop.f32.mrf.mxu3  ;;  %v829_v62 = vpop.f32.mrf.mxu1 }
  0xe0   : > { %v810_v61 = vpop.f32.mrf.mxu0  ;;  %v866_v23 = vadd.f32 %v865_v60, %v847_v16  ;;  %1422 = vmatpush.bf16.msrb.mxu3 %v2197_v19 }
  0xe1   : > { %v811_v4 = vadd.f32 %v810_v61, %v3118_v45  ;;  %1404 = vmatpush.bf16.msrb.mxu2 %v2125_v15 }
  0xe2   : > { %v878_v31 = vmax.f32 %v866_v23, 0.0 }
  0xe3   : > { %v830_v13 = vadd.f32 %v829_v62, %v811_v4 }
  0xe4   : > { %1423 = vmatpush.bf16.msrb.mxu3 %v2189_v29 }
  0xe5   : > { %v881_v18 = vmax.f32 %v830_v13, 0.0  ;;  %v848_v21 = vpop.f32.mrf.mxu2  ;;  %v1435_v13 = vunpack.c.l.bf16 %v300_v9 }
  0xe6   : > { %v849_v24 = vadd.f32 %v848_v21, %v3124_v58  ;;  %v1436_v21 = vunpack.c.h.bf16 %v300_v9 }
  0xe7   : > { %v893_v20 = vpack.c.bf16 %v881_v18, %v877_v17  ;;  %v867_v22 = vpop.f32.mrf.mxu3  ;;  %v832_v26 = vpop.f32.mrf.mxu1  ;;  %1367 = vmatmul.bf16.vlgmr.msrb.gmra.mxu0 %v3103_v36  ;;  %v1454_v17 = vperm.slane %v1452_v11, 0  ;;  %v1455_v18 = vperm.slane %v1452_v11, 2 }
  0xe8   : > { %v813_v25 = vpop.f32.mrf.mxu0  ;;  %v868_v40 = vadd.f32 %v867_v22, %v849_v24 }
  0xe9   : > { %1329 = vmatmul.bf16.vlgmr.msra.gmra.mxu2 %v893_v20  ;;  %v814_v44 = vadd.f32 %v813_v25, %v3118_v45  ;;  %v1459_v29 = vperm.slane %v1455_v18, 0 }
  0xea   : > { %v882_v32 = vmax.f32 %v868_v40, 0.0  ;;  %v1458_v40 = vperm.slane %v1454_v17, 0 }
  0xeb   : > { %v833_v38 = vadd.f32 %v832_v26, %v814_v44  ;;  %v301_v26 = vld [vmem:[%s2845_s29 + $0x8] sm:$0xff] }
  0xec   : > { %v894_v33 = vpack.c.bf16 %v882_v32, %v878_v31  ;;  %v1437_v44 = vunpack.c.l.bf16 %v301_v26 }
  0xed   : > { %v851_v49 = vpop.f32.mrf.mxu2  ;;  %v885_v46 = vmax.f32 %v833_v38, 0.0 }
  0xee   : > { %1386 = vmatmul.bf16.vlgmr.msrb.gmra.mxu1 %v3108_v3  ;;  %1348 = vmatmul.bf16.vlgmr.msra.gmra.mxu3 %v894_v33  ;;  %v852_v43 = vadd.f32 %v851_v49, %v3124_v58 }
  0xef   : > { %v870_v35 = vpop.f32.mrf.mxu3  ;;  %v834_v41 = vpop.f32.mrf.mxu1 }
  0xf0   : > { %v815_v37 = vpop.f32.mrf.mxu0  ;;  %v871_v48 = vadd.f32 %v870_v35, %v852_v43 }
  0xf1   : > { %v816_v36 = vadd.f32 %v815_v37, %v3118_v45 }
  0xf2   : > { %v886_v51 = vmax.f32 %v871_v48, 0.0 }
  0xf3   : > { %v835_v42 = vadd.f32 %v834_v41, %v816_v36  ;;  %v1438_v36 = vunpack.c.h.bf16 %v301_v26 }
  0xf5   : > { %v889_v34 = vmax.f32 %v835_v42, 0.0  ;;  %v853_v39 = vpop.f32.mrf.mxu2 }
  0xf6   : > { %v854_v5 = vadd.f32 %v853_v39, %v3124_v58  ;;  %v302_v39 = vld [vmem:[%s2845_s29 + $0x10] sm:$0xff] }
  0xf7   : > { %v897_v47 = vpack.c.bf16 %v889_v34, %v885_v46  ;;  %1372 = vmatmul.bf16.gmra.mxu0 %v3114_v30  ;;  %v872_v50 = vpop.f32.mrf.mxu3 }
  0xf8   : > { %v873_v3 = vadd.f32 %v872_v50, %v854_v5 }
  0xf9   : > { %1334 = vmatmul.bf16.gmra.mxu2 %v897_v47 }
  0xfa   : > { %v890_v52 = vmax.f32 %v873_v3, 0.0 }
  0xfc   : > { %v898_v53 = vpack.c.bf16 %v890_v52, %v886_v51  ;;  %v1439_v51 = vunpack.c.l.bf16 %v302_v39 }
  0xfe   : > { %1391 = vmatmul.bf16.gmra.mxu1 %v3122_v54  ;;  %1353 = vmatmul.bf16.gmra.mxu3 %v898_v53 }
 0x109   : > { %1405 = vmatmul.bf16.vlgmr.msrb.gmra.mxu2 %v893_v20 }
 0x10e   : > { %1424 = vmatmul.bf16.vlgmr.msrb.gmra.mxu3 %v894_v33 }
 0x119   : > { %1410 = vmatmul.bf16.gmra.mxu2 %v897_v47 }
 0x11e   : > { %1429 = vmatmul.bf16.gmra.mxu3 %v898_v53 }
 0x144   : > { %v1292_v55 = vpop.f32.mrf.mxu0 }
 0x14b   : > { %v1311_v45 = vpop.f32.mrf.mxu1 }
 0x14c   : > { %v1294_v57 = vpop.f32.mrf.mxu0  ;;  %v1312_v8 = vadd.f32 %v1311_v45, %v1292_v55 }
 0x153   : > { %v1313_v56 = vpop.f32.mrf.mxu1 }
 0x154   : > { %v1297_v14 = vpop.f32.mrf.mxu0  ;;  %v1314_v22 = vadd.f32 %v1313_v56, %v1294_v57  ;;  %v1440_v57 = vunpack.c.h.bf16 %v302_v39 }
 0x15b   : > { %v1316_v30 = vpop.f32.mrf.mxu1 }
 0x15c   : > { %v1299_v0 = vpop.f32.mrf.mxu0  ;;  %v1317_v46 = vadd.f32 %v1316_v30, %v1297_v14  ;;  %v303_v14 = vld [vmem:[%s2845_s29 + $0x18] sm:$0xff]  ;;  %s2498_s29 = scalar_lea.hbm %s2497_s8, 32 }
 0x15d   : > { %p2499_p0 = scmp.ne.s32.totalorder %s2497_s8, %s2498_s29  ;;  %p2504_p4 = scmp.lt.s32.totalorder %s2502_s15, %s2498_s29 }
 0x15f   : > { %p2500_p1 = pnand %p2499_p0, %p2634_p5  ;;  %p2505_p7 = por %p2504_p4, %p2503_p3 }
 0x161   : > { %p2501_p2 = pneg %p2500_p1 }
 0x163   : > { %v1318_v63 = vpop.f32.mrf.mxu1  ;;  %p2506_p8 = pnand %p2505_p7, %p2501_p2 }
 0x164   : > { %v1368_v4 = vpop.f32.mrf.mxu0 }
 0x16b   : > { %v1387_v2 = vpop.f32.mrf.mxu1 }
 0x16c   : > { %v1330_v58 = vpop.f32.mrf.mxu2  ;;  %v1388_v15 = vadd.f32 %v1387_v2, %v1368_v4  ;;  %v1370_v23 = vpop.f32.mrf.mxu0 }
 0x16d   : > { %v1331_v12 = vadd.f32 %v1330_v58, %v1312_v8  ;;  %v1441_v8 = vunpack.c.l.bf16 %v303_v14 }
 0x171   : > { %v1349_v59 = vpop.f32.mrf.mxu3 }
 0x172   : > { %v1350_v16 = vadd.f32 %v1349_v59, %v1331_v12 }
 0x173   : > { %v1389_v19 = vpop.f32.mrf.mxu1 }
 0x174   : > { %v1332_v60 = vpop.f32.mrf.mxu2  ;;  %v1443_v25 = vadd.f32 %v1435_v13, %v1350_v16  ;;  %v1390_v33 = vadd.f32 %v1389_v19, %v1370_v23  ;;  %v1373_v48 = vpop.f32.mrf.mxu0 }
 0x175   : > { %v1333_v31 = vadd.f32 %v1332_v60, %v1314_v22  ;;  %v1319_v60 = vadd.f32 %v1318_v63, %v1299_v0 }
 0x176   : > { %v3147_v35 = vadd.f32 %v1458_v40, %v1443_v25 }
 0x179   : > { %v1351_v61 = vpop.f32.mrf.mxu3 }
 0x17a   : > { %v1352_v49 = vadd.f32 %v1351_v61, %v1333_v31 }
 0x17b   : > { %v1392_v42 = vpop.f32.mrf.mxu1 }
 0x17c   : > { %v1335_v62 = vpop.f32.mrf.mxu2  ;;  %v1445_v34 = vadd.f32 %v1437_v44, %v1352_v49  ;;  %v1393_v52 = vadd.f32 %v1392_v42, %v1373_v48 }
 0x17d   : > { %v1336_v50 = vadd.f32 %v1335_v62, %v1317_v46  ;;  %v1375_v62 = vpop.f32.mrf.mxu0 }
 0x17e   : > { %v1462_v45 = vadd.f32 %v1458_v40, %v1445_v34 }
 0x181   : > { %v1354_v54 = vpop.f32.mrf.mxu3 }
 0x182   : > { %v1355_v53 = vadd.f32 %v1354_v54, %v1336_v50 }
 0x183   : > { %v1394_v2 = vpop.f32.mrf.mxu1 }
 0x184   : > { %v3138_v1 = vpop.f32.mrf.mxu2  ;;  %v1447_v30 = vadd.f32 %v1439_v51, %v1355_v53 }
 0x185   : > { %v1338_v4 = vadd.f32 %v3138_v1, %v1319_v60  ;;  %v1575_v60 = vld [vmem:[%s3287_s5] sm:$0x3] }
 0x186   : > { %v1464_v11 = vadd.f32 %v1458_v40, %v1447_v30 }
 0x189   : > { %v3143_v7 = vpop.f32.mrf.mxu3 }
 0x18a   : > { %v1357_v54 = vadd.f32 %v3143_v7, %v1338_v4  ;;  %v1576_v4 = vunpack.c.l.bf16 %v1575_v60 }
 0x18c   : > { %v1406_v10 = vpop.f32.mrf.mxu2  ;;  %v1449_v0 = vadd.f32 %v1441_v8, %v1357_v54  ;;  %v1579_v54 = vperm.slane %v1576_v4, 2 }
 0x18d   : > { %v1407_v20 = vadd.f32 %v1406_v10, %v1388_v15  ;;  %v1395_v10 = vadd.f32 %v1394_v2, %v1375_v62  ;;  %v1442_v15 = vunpack.c.h.bf16 %v303_v14 }
 0x18e   : > { %v1466_v19 = vadd.f32 %v1458_v40, %v1449_v0 }
 0x191   : > { %v1425_v24 = vpop.f32.mrf.mxu3 }
 0x192   : > { %v1426_v27 = vadd.f32 %v1425_v24, %v1407_v20 }
 0x194   : > { %v1408_v28 = vpop.f32.mrf.mxu2  ;;  %v1444_v32 = vadd.f32 %v1436_v21, %v1426_v27  ;;  %v2553_v21 = vmov 256.0  }
 0x195   : > { %v1409_v38 = vadd.f32 %v1408_v28, %v1390_v33  ;;  %2442 = vrcp.f32 %v2553_v21 }
 0x196   : > { %v3149_v37 = vadd.f32 %v1459_v29, %v1444_v32 }
 0x198   : > { %v1468_v41 = vadd.f32 %v3149_v37, %v3147_v35 }
 0x199   : > { %v1427_v43 = vpop.f32.mrf.mxu3 }
 0x19a   : > { %v1428_v47 = vadd.f32 %v1427_v43, %v1409_v38  ;;  %1469 = vadd.xlane.f32.xlu0 %v1468_v41 }
 0x19b   : > { %v2443_v22 = vpop.eup %2442 }
 0x19c   : > { %v1411_v5 = vpop.f32.mrf.mxu2  ;;  %v1446_v3 = vadd.f32 %v1438_v36, %v1428_v47  ;;  %v1481_v23 = vmul.f32 256.0, %v2443_v22  ;;  %vm1485_vm0 = vweird.f32 %v2443_v22 }
 0x19d   : > { %v1412_v56 = vadd.f32 %v1411_v5, %v1393_v52 }
 0x19e   : > { %v1463_v55 = vadd.f32 %v1459_v29, %v1446_v3  ;;  %v1482_v24 = vsub.f32 1.0, %v1481_v23 }
 0x1a0   : > { %v1471_v58 = vadd.f32 %v1463_v55, %v1462_v45  ;;  %v1483_v7 = vmul.f32 %v2443_v22, %v1482_v24 }
 0x1a1   : > { %v1430_v59 = vpop.f32.mrf.mxu3 }
 0x1a2   : > { %v1431_v61 = vadd.f32 %v1430_v59, %v1412_v56  ;;  %1472 = vadd.xlane.f32.xlu0 %v1471_v58  ;;  %v1484_v25 = vadd.f32 %v2443_v22, %v1483_v7 }
 0x1a4   : > { %v1448_v6 = vadd.f32 %v1440_v57, %v1431_v61  ;;  %v1413_v9 = vpop.f32.mrf.mxu2  ;;  %v3157_v26 = vsel %vm1485_vm0, %v2443_v22, %v1484_v25  ;;  %v1592_v61 = vld [vmem:[%s3288_s6] sm:$0x3] }
 0x1a5   : > { %v1414_v13 = vadd.f32 %v1413_v9, %v1395_v10  ;;  %v1593_v62 = vunpack.c.l.bf16 %v1592_v61  ;;  %v1578_v10 = vperm.slane %v1576_v4, 0 }
 0x1a6   : > { %v1465_v12 = vadd.f32 %v1459_v29, %v1448_v6 }
 0x1a8   : > { %v1474_v16 = vadd.f32 %v1465_v12, %v1464_v11 }
 0x1a9   : > { %v1432_v63 = vpop.f32.mrf.mxu3 }
 0x1aa   : > { %v1433_v17 = vadd.f32 %v1432_v63, %v1414_v13  ;;  %1475 = vadd.xlane.f32.xlu1 %v1474_v16  ;;  %v1596_v16 = vperm.slane %v1593_v62, 2 }
 0x1ac   : > { %v1450_v18 = vadd.f32 %v1442_v15, %v1433_v17  ;;  %v1595_v15 = vperm.slane %v1593_v62, 0  ;;  %v3213_v22 = vperm.slane %v1596_v16, 0 }
 0x1ae   : > { %v1467_v20 = vadd.f32 %v1459_v29, %v1450_v18  ;;  %v3206_v18 = vperm.slane %v1578_v10, 0  ;;  %v3211_v21 = vperm.slane %v1595_v15, 0 }
 0x1b0   : > { %v1477_v1 = vadd.f32 %v1467_v20, %v1466_v19 }
 0x1b2   : > { %1478 = vadd.xlane.f32.xlu1 %v1477_v1 }
 0x20d   : > { %v1470_v27 = vpop.xlane.xlu0 %1469 }
 0x20e   : > { %v1487_v28 = vmul.f32 %v3157_v26, %v1470_v27 }
 0x210   : > { %v3161_v31 = vsub.f32 %v3147_v35, %v1487_v28  ;;  %v3164_v40 = vsub.f32 %v3149_v37, %v1487_v28 }
 0x212   : > { %v1499_v29 = vmul.f32 %v3161_v31, %v3161_v31  ;;  %v1500_v32 = vmul.f32 %v3164_v40, %v3164_v40 }
 0x214   : > { %v1507_v44 = vadd.f32 %v1500_v32, %v1499_v29 }
 0x215   : > { %v1473_v33 = vpop.xlane.xlu0 %1472 }
 0x216   : > { %v1488_v49 = vmul.f32 %v3157_v26, %v1473_v33  ;;  %1508 = vadd.xlane.f32.xlu2 %v1507_v44 }
 0x218   : > { %v3171_v38 = vsub.f32 %v1462_v45, %v1488_v49  ;;  %v3173_v36 = vsub.f32 %v1463_v55, %v1488_v49 }
 0x21a   : > { %v1501_v35 = vmul.f32 %v3171_v38, %v3171_v38  ;;  %v1502_v37 = vmul.f32 %v3173_v36, %v3173_v36 }
 0x21c   : > { %v1510_v41 = vadd.f32 %v1502_v37, %v1501_v35 }
 0x21d   : > { %v1476_v42 = vpop.xlane.xlu1 %1475 }
 0x21e   : > { %v1489_v43 = vmul.f32 %v3157_v26, %v1476_v42  ;;  %1511 = vadd.xlane.f32.xlu2 %v1510_v41 }
 0x220   : > { %v3180_v46 = vsub.f32 %v1464_v11, %v1489_v43  ;;  %v3182_v34 = vsub.f32 %v1465_v12, %v1489_v43 }
 0x222   : > { %v1503_v39 = vmul.f32 %v3180_v46, %v3180_v46  ;;  %v1504_v47 = vmul.f32 %v3182_v34, %v3182_v34 }
 0x224   : > { %v1513_v48 = vadd.f32 %v1504_v47, %v1503_v39 }
 0x225   : > { %v1479_v5 = vpop.xlane.xlu1 %1478 }
 0x226   : > { %v1490_v50 = vmul.f32 %v3157_v26, %v1479_v5  ;;  %1514 = vadd.xlane.f32.xlu0 %v1513_v48 }
 0x228   : > { %v3189_v3 = vsub.f32 %v1466_v19, %v1490_v50  ;;  %v3191_v51 = vsub.f32 %v1467_v20, %v1490_v50  ;;  %v3208_v19 = vperm.slane %v1579_v54, 0 }
 0x22a   : > { %v1505_v52 = vmul.f32 %v3189_v3, %v3189_v3  ;;  %v1506_v53 = vmul.f32 %v3191_v51, %v3191_v51 }
 0x22c   : > { %v1516_v45 = vadd.f32 %v1506_v53, %v1505_v52 }
 0x22e   : > { %1517 = vadd.xlane.f32.xlu1 %v1516_v45 }
 0x289   : > { %v1509_v55 = vpop.xlane.xlu2 %1508 }
 0x28a   : > { %v1519_v56 = vmul.f32 %v1509_v55, %v3157_v26 }
 0x28c   : > { %v1523_v57 = vadd.f32 1e-05, %v1519_v56 }
 0x28e   : > { %2444 = vrsqrt.f32 %v1523_v57  ;;  %vm1533_vm2 = vweird.f32 %v1523_v57 }
 0x291   : > { %v1512_v58 = vpop.xlane.xlu2 %1511 }
 0x292   : > { %v1520_v59 = vmul.f32 %v1512_v58, %v3157_v26 }
 0x294   : > { %v2445_v30 = vpop.eup %2444  ;;  %v1524_v14 = vadd.f32 1e-05, %v1520_v59 }
 0x295   : > { %v1528_v2 = vmul.f32 %v2445_v30, %v1523_v57  ;;  %vm1534_vm1 = vweird.f32 %v2445_v30 }
 0x296   : > { %2446 = vrsqrt.f32 %v1524_v14  ;;  %vm1535_vm3 = vmor %vm1533_vm2, %vm1534_vm1  ;;  %vm1543_vm5 = vweird.f32 %v1524_v14 }
 0x297   : > { %v1529_v6 = vmul.f32 %v2445_v30, %v1528_v2 }
 0x299   : > { %v1530_v8 = vmul.f32 0.5, %v1529_v6  ;;  %v1515_v9 = vpop.xlane.xlu0 %1514 }
 0x29a   : > { %v1521_v11 = vmul.f32 %v1515_v9, %v3157_v26 }
 0x29b   : > { %v1531_v12 = vsub.f32 1.5, %v1530_v8 }
 0x29c   : > { %v2447_v13 = vpop.eup %2446  ;;  %v1525_v63 = vadd.f32 1e-05, %v1521_v11 }
 0x29d   : > { %v1532_v0 = vmul.f32 %v2445_v30, %v1531_v12  ;;  %v1538_v17 = vmul.f32 %v2447_v13, %v1524_v14  ;;  %vm1544_vm4 = vweird.f32 %v2447_v13 }
 0x29e   : > { %2448 = vrsqrt.f32 %v1525_v63  ;;  %vm1545_vm6 = vmor %vm1543_vm5, %vm1544_vm4  ;;  %vm1553_vm8 = vweird.f32 %v1525_v63 }
 0x29f   : > { %v1536_v20 = vsel %vm1535_vm3, %v2445_v30, %v1532_v0  ;;  %v1539_v1 = vmul.f32 %v2447_v13, %v1538_v17 }
 0x2a0   : > { %v1567_v23 = vmul.f32 %v1536_v20, %v3161_v31  ;;  %v1568_v24 = vmul.f32 %v1536_v20, %v3164_v40 }
 0x2a1   : > { %v1540_v7 = vmul.f32 0.5, %v1539_v1  ;;  %v1518_v25 = vpop.xlane.xlu1 %1517 }
 0x2a2   : > { %v1584_v27 = vmul.f32 %v3206_v18, %v1567_v23  ;;  %v1585_v28 = vmul.f32 %v3208_v19, %v1568_v24  ;;  %v1522_v29 = vmul.f32 %v1518_v25, %v3157_v26 }
 0x2a3   : > { %v1541_v32 = vsub.f32 1.5, %v1540_v7 }
 0x2a4   : > { %v2449_v44 = vpop.eup %2448  ;;  %v1601_v33 = vadd.f32 %v3211_v21, %v1584_v27  ;;  %v1602_v49 = vadd.f32 %v3213_v22, %v1585_v28  ;;  %v1526_v31 = vadd.f32 1e-05, %v1522_v29 }
 0x2a5   : > { %v1542_v35 = vmul.f32 %v2447_v13, %v1541_v32  ;;  %v1548_v40 = vmul.f32 %v2449_v44, %v1525_v63  ;;  %vm1554_vm7 = vweird.f32 %v2449_v44 }
 0x2a6   : > { %v1609_v37 = vpack.c.bf16 %v1602_v49, %v1601_v33  ;;  %2450 = vrsqrt.f32 %v1526_v31  ;;  %vm1555_vm9 = vmor %vm1553_vm8, %vm1554_vm7  ;;  %vm1563_vm11 = vweird.f32 %v1526_v31 }
 0x2a7   : > { %v1546_v41 = vsel %vm1545_vm6, %v2447_v13, %v1542_v35  ;;  %v1549_v42 = vmul.f32 %v2449_v44, %v1548_v40 }
 0x2a8   : > { %1613 = vst [vmem:[%s3224_s14] sm:$0xff] %v1609_v37  ;;  %v1569_v26 = vmul.f32 %v1546_v41, %v3171_v38  ;;  %v1570_v43 = vmul.f32 %v1546_v41, %v3173_v36 }
 0x2a9   : > { %v1550_v39 = vmul.f32 0.5, %v1549_v42 }
 0x2aa   : > { %v1586_v47 = vmul.f32 %v3206_v18, %v1569_v26  ;;  %v1587_v48 = vmul.f32 %v3208_v19, %v1570_v43 }
 0x2ab   : > { %v1551_v5 = vsub.f32 1.5, %v1550_v39 }
 0x2ac   : > { %v2451_v50 = vpop.eup %2450  ;;  %v1603_v52 = vadd.f32 %v3211_v21, %v1586_v47  ;;  %v1604_v53 = vadd.f32 %v3213_v22, %v1587_v48 }
 0x2ad   : > { %v1552_v45 = vmul.f32 %v2449_v44, %v1551_v5  ;;  %v1558_v55 = vmul.f32 %v2451_v50, %v1526_v31  ;;  %vm1564_vm10 = vweird.f32 %v2451_v50 }
 0x2ae   : > { %v1610_v38 = vpack.c.bf16 %v1604_v53, %v1603_v52  ;;  %vm1565_vm12 = vmor %vm1563_vm11, %vm1564_vm10 }
 0x2af   : > { %v1556_v36 = vsel %vm1555_vm9, %v2449_v44, %v1552_v45  ;;  %v1559_v56 = vmul.f32 %v2451_v50, %v1558_v55 }
 0x2b0   : > { %1614 = vst [vmem:[%s3224_s14 + $0x8] sm:$0xff] %v1610_v38  ;;  %v1571_v57 = vmul.f32 %v1556_v36, %v3180_v46  ;;  %v1572_v58 = vmul.f32 %v1556_v36, %v3182_v34 }
 0x2b1   : > { %v1560_v59 = vmul.f32 0.5, %v1559_v56 }
 0x2b2   : > { %v1588_v60 = vmul.f32 %v3206_v18, %v1571_v57  ;;  %v1589_v30 = vmul.f32 %v3208_v19, %v1572_v58 }
 0x2b3   : > { %v1561_v14 = vsub.f32 1.5, %v1560_v59 }
 0x2b4   : > { %v1605_v61 = vadd.f32 %v3211_v21, %v1588_v60  ;;  %v1606_v2 = vadd.f32 %v3213_v22, %v1589_v30 }
 0x2b5   : > { %v1562_v4 = vmul.f32 %v2451_v50, %v1561_v14 }
 0x2b6   : > { %v1611_v6 = vpack.c.bf16 %v1606_v2, %v1605_v61 }
 0x2b7   : > { %v1566_v46 = vsel %vm1565_vm12, %v2451_v50, %v1562_v4 }
 0x2b8   : > { %1615 = vst [vmem:[%s3224_s14 + $0x10] sm:$0xff] %v1611_v6  ;;  %v1573_v34 = vmul.f32 %v1566_v46, %v3189_v3  ;;  %v1574_v62 = vmul.f32 %v1566_v46, %v3191_v51 }
 0x2ba   : > { %v1590_v8 = vmul.f32 %v3206_v18, %v1573_v34  ;;  %v1591_v9 = vmul.f32 %v3208_v19, %v1574_v62 }
 0x2bc   : > { %v1607_v10 = vadd.f32 %v3211_v21, %v1590_v8  ;;  %v1608_v54 = vadd.f32 %v3213_v22, %v1591_v9 }
 0x2be   : > { %v1612_v11 = vpack.c.bf16 %v1608_v54, %v1607_v10 }
 0x2c0   : > { %1616 = vst [vmem:[%s3224_s14 + $0x18] sm:$0xff] %v1612_v11 }
 0x2c1   : > { %2509 = shalt.err (!%p2506_p8)
}
 0x2c2   : > { %s2554_s16 = smov 128   ;;  %s2555_s14 = smov 8  }
 0x2c3   : > { %2391 = dma.vmem_to_hbm [thread:$0]  (%p2634_p5), %s1632_s28, 512, %s1634_s20, %s1618_s23, %s2554_s16, %s2554_s16, %s2555_s14  }
 0x2c4 PF: > { %p2403_p9 = scmp.ge.s32.totalorder %s2548_s27, 2  ;;  %s1648_s18 = sand.u32 1, %s2536_s24  }
 0x2c5   : > { %s1649_s21 = scalar_lea.sflag [#allocation4], %s1648_s18 }
 0x2c6   : > { %p2398_p10 = pnand %p2403_p9, %p2638_p6 }
 0x2c8   : > { %p2399_p11 = pneg %p2398_p10 }
 0x2ca   : > { %2531 = dma.done.wait (%p2399_p11), %s1649_s21, 512  }
 0x2cb   : > { %2533 = vsyncadd (%p2399_p11), %s1649_s21, 4294966784  ;;  %p18_p12 = scmp.ge.s32.totalorder %s2621_s30, 4   ;;  %s3293_s24 = smov %s2540_s25 }
 0x2cc   : > { %s3294_s25 = smov %s2544_s26  ;;  %s3295_s26 = smov %s2632_s10 }
 0x2cd   : > { %s3296_s27 = smov %s2621_s30  ;;  %20 = sbr.rel (!%p18_p12) target bundleno = 4 (0x4), region = 88 }
 0x2d2   :  { %1655 = vsyncpa [#allocation3], 1 }
 0x2d3   :  { %1657 = vsyncpa [#allocation3 + $0x1], 1 }
 0x2d4   :  { %1658 = vsyncpa [#allocation4], 1 }
 0x2d5   :  { %1660 = vsyncpa [#allocation4 + $0x1], 1 }

</bundles_post_ra>
